<compile_context>
chip_gen: v7x
topology: tpu7x:2x2x1
jax: 0.10.0
libtpu: 0.0.40
codegen_flags: <defaults>
</compile_context>

<pallas_src>
import jax
import jax.numpy as jnp
from jax import lax
from jax.experimental import pallas as pl
from jax.experimental.pallas import tpu as pltpu

# ----------------------- model hyper-parameters (small) ---------------------
D = 128          # hidden size
H = 4            # attention heads
DH = 32          # head dim (H * DH == D)
I = 256          # MLP intermediate size
L = 4            # number of decoder layers (small stand-in for 32)
L_BLOCK = 2      # layers processed per grid step
S = 8            # chunk_size == seq len of hidden / beacon / forget / memory
V = 64           # vocab size
EPS = 1e-6
ROPE_THETA = 10000.0
NEG_INF = -1e9

# slab lane offsets (units of D=128 lanes)
_HQKV, _BQKV, _FQKV, _PKV, _O, _GU, _END = 0, 3, 6, 9, 11, 12, 16


# --------------------------- in-kernel helpers -------------------------------
def _rmsnorm(x):
    # unit-gain: the RMSNorm weight is folded into the following matmul weights
    var = jnp.mean(x * x, axis=-1, keepdims=True)
    return x * lax.rsqrt(var + EPS)


def _fused_attention(q, k, v, mask):
    """q:(3S,D) k,v:(4S,D) merged-head lane-dense layout; mask:(3S,4S) additive."""
    scale = 1.0 / (DH ** 0.5)
    outs = []
    for h in range(H):                                    # unrolled, H = 4
        qh = q[:, h * DH:(h + 1) * DH]
        kh = k[:, h * DH:(h + 1) * DH]
        vh = v[:, h * DH:(h + 1) * DH]
        s = lax.dot_general(qh, kh, (((1,), (1,)), ((), ())),
                            preferred_element_type=jnp.float32)
        s = s * scale + mask
        m = jnp.max(s, axis=-1, keepdims=True)
        p = jnp.exp(s - m)
        p = p / jnp.sum(p, axis=-1, keepdims=True)        # exact reciprocal
        outs.append(jnp.dot(p, vh, preferred_element_type=jnp.float32))
    return jnp.concatenate(outs, axis=-1)                 # (3S, D)


# ------------------------------ fused kernel ---------------------------------
def _encoder_kernel(init_ref, mem_ref, cos_ref, sin_ref, rot_ref, mask_ref,
                    slab_ref, wd_ref, new_mem_ref, state_s):
    @pl.when(pl.program_id(0) == 0)
    def _init():
        state_s[...] = init_ref[...]

    x = state_s[...]                                      # (3S, D) carried state

    for ll in range(L_BLOCK):                             # static inner layer loop
        mem = mem_ref[ll]                                 # (S, D) f32

        # ---- memory gate: uses beacon/forget states ENTERING this layer ----
        bcn_in = x[S:2 * S]
        fgt_in = x[2 * S:]
        gate = jax.nn.sigmoid(fgt_in)
        new_mem_ref[ll] = mem * gate + bcn_in * (1.0 - gate)

        # ---- decoder layer forward -----------------------------------------
        residual = x
        xn = _rmsnorm(x)                                  # f32 (ln1 folded)
        xn_b = xn.astype(jnp.bfloat16)
        h = xn_b[:S]
        b = xn_b[S:2 * S]
        f = xn_b[2 * S:]
        mem_b = mem.astype(jnp.bfloat16)

        hqkv = jnp.dot(h, slab_ref[ll, :, _HQKV * D:_BQKV * D],
                       preferred_element_type=jnp.float32)
        bqkv = jnp.dot(b, slab_ref[ll, :, _BQKV * D:_FQKV * D],
                       preferred_element_type=jnp.float32)
        fqkv = jnp.dot(f, slab_ref[ll, :, _FQKV * D:_PKV * D],
                       preferred_element_type=jnp.float32)
        mem_kv = jnp.dot(mem_b, slab_ref[ll, :, _PKV * D:_O * D],
                         preferred_element_type=jnp.float32)

        hq, hk, hv = hqkv[:, :D], hqkv[:, D:2 * D], hqkv[:, 2 * D:]
        bq, bk, bv = bqkv[:, :D], bqkv[:, D:2 * D], bqkv[:, 2 * D:]
        fq, fk, fv = fqkv[:, :D], fqkv[:, D:2 * D], fqkv[:, 2 * D:]
        mem_k, mem_v = mem_kv[:, :D], mem_kv[:, D:]

        # ---- single fused RoPE pass (rotate_half == matmul with signed perm)
        rope_in = jnp.concatenate([mem_k, hk, hq, bq, fq, bk, fk], axis=0)  # (7S,D)
        rotated = jnp.dot(rope_in, rot_ref[...], preferred_element_type=jnp.float32)
        roped = rope_in * cos_ref[...] + rotated * sin_ref[...]
        mem_k_r = roped[0:S]
        hk_r = roped[S:2 * S]
        hq_r = roped[2 * S:3 * S]
        bq_r = roped[3 * S:4 * S]
        fq_r = roped[4 * S:5 * S]
        bk_r = roped[5 * S:6 * S]
        fk_r = roped[6 * S:7 * S]

        # ---- fused 3-stream attention ---------------------------------------
        q_all = jnp.concatenate([hq_r, bq_r, fq_r], axis=0)            # (3S, D)
        k_all = jnp.concatenate([mem_k_r, hk_r, bk_r, fk_r], axis=0)   # (4S, D)
        v_all = jnp.concatenate([mem_v, hv, bv, fv], axis=0)           # (4S, D)
        attn = _fused_attention(q_all, k_all, v_all, mask_ref[...])
        attn_o = jnp.dot(attn.astype(jnp.bfloat16),
                         slab_ref[ll, :, _O * D:_GU * D],
                         preferred_element_type=jnp.float32)

        x = residual + attn_o
        residual = x
        xn = _rmsnorm(x)                                  # f32 (ln2 folded)
        gu = jnp.dot(xn.astype(jnp.bfloat16),
                     slab_ref[ll, :, _GU * D:_END * D],
                     preferred_element_type=jnp.float32)  # (3S, 2I)
        g, u = gu[:, :I], gu[:, I:]
        act = (g * jax.nn.sigmoid(g) * u).astype(jnp.bfloat16)
        x = residual + jnp.dot(act, wd_ref[ll], preferred_element_type=jnp.float32)

    state_s[...] = x


# ------------------------------ host-side glue -------------------------------
def _rope_tables():
    inv_freq = 1.0 / (ROPE_THETA ** (jnp.arange(0, DH, 2, dtype=jnp.float32) / DH))
    pos = jnp.arange(3 * S, dtype=jnp.float32)
    freqs = pos[:, None] * inv_freq[None, :]              # (3S, DH/2)
    emb = jnp.concatenate([freqs, freqs], axis=-1)        # (3S, DH)
    cos = jnp.tile(jnp.cos(emb), (1, H))                  # (3S, D) merged heads
    sin = jnp.tile(jnp.sin(emb), (1, H))

    # row ordering of the fused RoPE pass: mem_k | hk | hq | bq | fq | bk | fk
    # positions:                           0..S  S..2S S..2S 2S..  2S..  2S.. 2S..
    def sel(t):
        return jnp.concatenate([t[0:2 * S], t[S:2 * S],
                                t[2 * S:], t[2 * S:], t[2 * S:], t[2 * S:]], axis=0)
    return sel(cos), sel(sin)                             # (7S, D) each


def _rotate_half_matrix():
    """Signed permutation R so that (x @ R) == rotate_half(x) per 32-lane head."""
    half = DH // 2
    r = jnp.zeros((DH, DH), jnp.float32)
    idx = jnp.arange(half)
    r = r.at[idx + half, idx].set(-1.0)                   # out[:16] = -x[16:]
    r = r.at[idx, idx + half].set(1.0)                    # out[16:] =  x[:16]
    return jnp.kron(jnp.eye(H, dtype=jnp.float32), r)     # (D, D) block-diagonal


def _fused_mask():
    """(3S, 4S) additive mask for the fused 3-stream attention."""
    q_pos = jnp.concatenate([jnp.arange(S) + S,           # hidden queries
                             jnp.arange(S) + 2 * S,       # beacon queries
                             jnp.arange(S) + 2 * S])      # forget queries
    k_pos = jnp.concatenate([jnp.arange(S),               # memory keys
                             jnp.arange(S) + S,           # hidden keys
                             jnp.arange(S) + 2 * S,       # beacon keys
                             jnp.arange(S) + 2 * S])      # forget keys
    q_stream = jnp.concatenate([jnp.full((S,), 0), jnp.full((S,), 1), jnp.full((S,), 2)])
    k_stream = jnp.concatenate([jnp.full((2 * S,), 0), jnp.full((S,), 1), jnp.full((S,), 2)])
    causal = k_pos[None, :] <= q_pos[:, None]
    stream_ok = (k_stream[None, :] == 0) | (k_stream[None, :] == q_stream[:, None])
    return jnp.where(causal & stream_ok, 0.0, NEG_INF).astype(jnp.float32)


def _pack_weights(params):
    """Fold RMSNorm gains, pack all D-row weights into one bf16 slab per layer."""
    ln1 = jnp.transpose(params["ln1"], (0, 2, 1))          # (L, D, 1) row scales
    ln2 = jnp.transpose(params["ln2"], (0, 2, 1))
    slab = jnp.concatenate([
        params["w_hqkv"] * ln1,                            # lanes   0: 384
        params["w_bqkv"] * ln1,                            # lanes 384: 768
        params["w_fqkv"] * ln1,                            # lanes 768:1152
        params["w_pkv"],                                   # lanes 1152:1408 (raw mem)
        params["w_o"],                                     # lanes 1408:1536
        params["w_gu"] * ln2,                              # lanes 1536:2048
    ], axis=-1).astype(jnp.bfloat16)                       # (L, D, 16*D)
    wd = params["w_d"].astype(jnp.bfloat16)                # (L, I, D)
    return slab, wd


@jax.jit
def encoder_forward(params, input_ids, memory, beacon, forget):
    # input_ids: (1, S) int32; memory: (L, S, D); beacon/forget: (1, S, D)
    embeds = jnp.take(params["embed"], input_ids[0], axis=0)            # (S, D)
    init_state = jnp.concatenate([embeds, beacon[0], forget[0]], axis=0)  # (3S, D)
    cos_sel, sin_sel = _rope_tables()
    rot = _rotate_half_matrix()
    mask = _fused_mask()
    slab, wd = _pack_weights(params)

    def const(shape):
        zeros = (0,) * len(shape)
        return pl.BlockSpec(shape, lambda g, z=zeros: z)

    def per_block(shape):
        return pl.BlockSpec((L_BLOCK,) + shape, lambda g: (g, 0, 0))

    grid_spec = pltpu.PrefetchScalarGridSpec(
        num_scalar_prefetch=0,
        grid=(L // L_BLOCK,),
        in_specs=[
            const((3 * S, D)),            # init_state (embeds|beacon|forget)
            per_block((S, D)),            # memory[l]
            const((7 * S, D)),            # cos selection table
            const((7 * S, D)),            # sin selection table
            const((D, D)),                # rotate_half matrix
            const((3 * S, 4 * S)),        # fused causal+stream mask
            per_block((D, 16 * D)),       # packed bf16 weight slab
            per_block((I, D)),            # bf16 down projection
        ],
        out_specs=pl.BlockSpec((L_BLOCK, S, D), lambda g: (g, 0, 0)),
        scratch_shapes=[pltpu.VMEM((3 * S, D), jnp.float32)],
    )
    return pl.pallas_call(
        _encoder_kernel,
        out_shape=jax.ShapeDtypeStruct((L, S, D), jnp.float32),
        grid_spec=grid_spec,
        compiler_params=pltpu.CompilerParams(
            dimension_semantics=("arbitrary",)),
    )(init_state, memory, cos_sel, sin_sel, rot, mask, slab, wd)


# ------------------------------ parameter init -------------------------------
def init_params(key):
    def w(k, shape, scale=0.02):
        return scale * jax.random.normal(k, shape, dtype=jnp.float32)

    keys = jax.random.split(key, 9)
    return {
        "embed": w(keys[0], (V, D)),
        "ln1": jnp.ones((L, 1, D), jnp.float32),
        "ln2": jnp.ones((L, 1, D), jnp.float32),
        "w_hqkv": w(keys[1], (L, D, 3 * D)),
        "w_bqkv": w(keys[2], (L, D, 3 * D)),
        "w_fqkv": w(keys[3], (L, D, 3 * D)),
        "w_pkv": w(keys[4], (L, D, 2 * D)),
        "w_o": w(keys[5], (L, D, D)),
        "w_gu": w(keys[6], (L, D, 2 * I)),
        "w_d": w(keys[7], (L, I, D)),
    }


# ----------------------------------- main ------------------------------------
if __name__ == "__main__":
    key = jax.random.PRNGKey(0)
    k_ids, k_mem, k_bcn, k_fgt, k_par = jax.random.split(key, 5)
    params = init_params(k_par)

    input_ids = jax.random.randint(k_ids, (1, S), 0, V, dtype=jnp.int32)
    memory = 0.1 * jax.random.normal(k_mem, (L, S, D), jnp.float32)
    beacon = 0.1 * jax.random.normal(k_bcn, (1, S, D), jnp.float32)
    forget = 0.1 * jax.random.normal(k_fgt, (1, S, D), jnp.float32)

    out = encoder_forward(params, input_ids, memory, beacon, forget)
    out = jax.block_until_ready(out)
    assert out.shape == (L, S, D)
    assert bool(jnp.all(jnp.isfinite(out)))
    print("KERNEL_OK")
</pallas_src>

<mosaic_0001>
module attributes {stable_mosaic.version = 11 : i64} {
  func.func @_encoder_kernel(%arg0: i32, %arg1: memref<24x128xf32, #tpu.memory_space<vmem>>, %arg2: memref<2x8x128xf32, #tpu.memory_space<vmem>>, %arg3: memref<56x128xf32, #tpu.memory_space<vmem>>, %arg4: memref<56x128xf32, #tpu.memory_space<vmem>>, %arg5: memref<128x128xf32, #tpu.memory_space<vmem>>, %arg6: memref<24x32xf32, #tpu.memory_space<vmem>>, %arg7: memref<2x128x2048xbf16, #tpu.memory_space<vmem>>, %arg8: memref<2x256x128xbf16, #tpu.memory_space<vmem>>, %arg9: memref<2x8x128xf32, #tpu.memory_space<vmem>>, %arg10: memref<24x128xf32, #tpu.memory_space<vmem>>) attributes {dimension_semantics = [#tpu.dimension_semantics<arbitrary>], iteration_bounds = array<i64: 2>, scalar_prefetch = 0 : i64, scratch_operands = 1 : i64, tpu.core_type = #tpu.core_type<tc>, window_params = [{pipeline_mode = #tpu.pipeline_mode<synchronous>, transform_indices = @transform_0, window_bounds = array<i64: 24, 128>}, {transform_indices = @transform_1, window_bounds = array<i64: 2, 8, 128>}, {pipeline_mode = #tpu.pipeline_mode<synchronous>, transform_indices = @transform_2, window_bounds = array<i64: 56, 128>}, {pipeline_mode = #tpu.pipeline_mode<synchronous>, transform_indices = @transform_3, window_bounds = array<i64: 56, 128>}, {pipeline_mode = #tpu.pipeline_mode<synchronous>, transform_indices = @transform_4, window_bounds = array<i64: 128, 128>}, {pipeline_mode = #tpu.pipeline_mode<synchronous>, transform_indices = @transform_5, window_bounds = array<i64: 24, 32>}, {transform_indices = @transform_6, window_bounds = array<i64: 2, 128, 2048>}, {transform_indices = @transform_7, window_bounds = array<i64: 2, 256, 128>}, {transform_indices = @transform_8, window_bounds = array<i64: 2, 8, 128>}]} {
    %c0_i32 = arith.constant 0 : i32
    %0 = arith.cmpi eq, %arg0, %c0_i32 : i32
    %1 = arith.extui %0 : i1 to i32
    %c0_i32_0 = arith.constant 0 : i32
    %2 = arith.cmpi ne, %1, %c0_i32_0 : i32
    scf.if %2 {
      %c0_141 = arith.constant 0 : index
      %c0_142 = arith.constant 0 : index
      %357 = vector.load %arg1[%c0_141, %c0_142] : memref<24x128xf32, #tpu.memory_space<vmem>>, vector<24x128xf32>
      %c0_143 = arith.constant 0 : index
      %c0_144 = arith.constant 0 : index
      %358 = vector.load %arg10[%c0_143, %c0_144] : memref<24x128xf32, #tpu.memory_space<vmem>>, vector<24x128xf32>
      tpu.vector_store %arg10[%c0_143, %c0_144], %357 {strides = array<i32>} : memref<24x128xf32, #tpu.memory_space<vmem>>, vector<24x128xf32>,
    } else {
    }
    %c0 = arith.constant 0 : index
    %c0_1 = arith.constant 0 : index
    %3 = vector.load %arg10[%c0, %c0_1] : memref<24x128xf32, #tpu.memory_space<vmem>>, vector<24x128xf32>
    %c0_2 = arith.constant 0 : index
    %c0_3 = arith.constant 0 : index
    %c0_4 = arith.constant 0 : index
    %4 = vector.load %arg2[%c0_2, %c0_3, %c0_4] : memref<2x8x128xf32, #tpu.memory_space<vmem>>, vector<1x8x128xf32>
    %5 = vector.shape_cast %4 : vector<1x8x128xf32> to vector<8x128xf32>
    %6 = vector.extract_strided_slice %3 {offsets = [8, 0], sizes = [8, 128], strides = [1, 1]} : vector<24x128xf32> to vector<8x128xf32>
    %7 = vector.extract_strided_slice %3 {offsets = [16, 0], sizes = [8, 128], strides = [1, 1]} : vector<24x128xf32> to vector<8x128xf32>
    %8 = arith.negf %7 : vector<8x128xf32>
    %9 = math.exp %8 : vector<8x128xf32>
    %cst = arith.constant 1.000000e+00 : f32
    %10 = vector.broadcast %cst : f32 to vector<8x128xf32>
    %11 = arith.addf %10, %9 : vector<8x128xf32>
    %12 = arith.divf %10, %11 : vector<8x128xf32>
    %13 = arith.mulf %5, %12 : vector<8x128xf32>
    %cst_5 = arith.constant 1.000000e+00 : f32
    %14 = vector.broadcast %cst_5 : f32 to vector<8x128xf32>
    %15 = arith.subf %14, %12 : vector<8x128xf32>
    %16 = arith.mulf %6, %15 : vector<8x128xf32>
    %17 = arith.addf %13, %16 : vector<8x128xf32>
    %c0_6 = arith.constant 0 : index
    %c0_7 = arith.constant 0 : index
    %c0_8 = arith.constant 0 : index
    %18 = vector.load %arg9[%c0_6, %c0_7, %c0_8] : memref<2x8x128xf32, #tpu.memory_space<vmem>>, vector<1x8x128xf32>
    %19 = vector.shape_cast %18 : vector<1x8x128xf32> to vector<8x128xf32>
    %20 = vector.shape_cast %17 : vector<8x128xf32> to vector<1x8x128xf32>
    tpu.vector_store %arg9[%c0_6, %c0_7, %c0_8], %20 {strides = array<i32>} : memref<2x8x128xf32, #tpu.memory_space<vmem>>, vector<1x8x128xf32>,
    %21 = arith.mulf %3, %3 : vector<24x128xf32>
    %cst_9 = arith.constant dense<0.000000e+00> : vector<24xf32>
    %22 = vector.multi_reduction <add>, %21, %cst_9 [1] : vector<24x128xf32> to vector<24xf32>
    %23 = vector.shape_cast %22 : vector<24xf32> to vector<24x1xf32>
    %cst_10 = arith.constant 1.280000e+02 : f32
    %24 = vector.broadcast %cst_10 : f32 to vector<24x1xf32>
    %25 = arith.divf %23, %24 : vector<24x1xf32>
    %cst_11 = arith.constant 9.99999997E-7 : f32
    %26 = vector.broadcast %cst_11 : f32 to vector<24x1xf32>
    %27 = arith.addf %25, %26 : vector<24x1xf32>
    %28 = math.rsqrt %27 : vector<24x1xf32>
    %29 = vector.broadcast %28 : vector<24x1xf32> to vector<24x128xf32>
    %30 = arith.mulf %3, %29 : vector<24x128xf32>
    %31 = arith.truncf %30 : vector<24x128xf32> to vector<24x128xbf16>
    %32 = vector.extract_strided_slice %31 {offsets = [0, 0], sizes = [8, 128], strides = [1, 1]} : vector<24x128xbf16> to vector<8x128xbf16>
    %33 = vector.extract_strided_slice %31 {offsets = [8, 0], sizes = [8, 128], strides = [1, 1]} : vector<24x128xbf16> to vector<8x128xbf16>
    %34 = vector.extract_strided_slice %31 {offsets = [16, 0], sizes = [8, 128], strides = [1, 1]} : vector<24x128xbf16> to vector<8x128xbf16>
    %35 = arith.truncf %5 : vector<8x128xf32> to vector<8x128xbf16>
    %c0_12 = arith.constant 0 : index
    %c0_13 = arith.constant 0 : index
    %c0_14 = arith.constant 0 : index
    %36 = vector.load %arg7[%c0_12, %c0_13, %c0_14] : memref<2x128x2048xbf16, #tpu.memory_space<vmem>>, vector<1x128x384xbf16>
    %37 = vector.shape_cast %36 : vector<1x128x384xbf16> to vector<128x384xbf16>
    %cst_15 = arith.constant dense<0.000000e+00> : vector<8x384xf32>
    %38 = tpu.matmul %32, %37, %cst_15 {dimension_numbers = #tpu.dot_dimension_numbers<[1], [0], [0], [1], [0, 0, 1, 1], [], []>} : vector<8x128xbf16>, vector<128x384xbf16>, vector<8x384xf32> -> vector<8x384xf32>
    %c0_16 = arith.constant 0 : index
    %c0_17 = arith.constant 0 : index
    %c384 = arith.constant 384 : index
    %39 = vector.load %arg7[%c0_16, %c0_17, %c384] : memref<2x128x2048xbf16, #tpu.memory_space<vmem>>, vector<1x128x384xbf16>
    %40 = vector.shape_cast %39 : vector<1x128x384xbf16> to vector<128x384xbf16>
    %cst_18 = arith.constant dense<0.000000e+00> : vector<8x384xf32>
    %41 = tpu.matmul %33, %40, %cst_18 {dimension_numbers = #tpu.dot_dimension_numbers<[1], [0], [0], [1], [0, 0, 1, 1], [], []>} : vector<8x128xbf16>, vector<128x384xbf16>, vector<8x384xf32> -> vector<8x384xf32>
    %c0_19 = arith.constant 0 : index
    %c0_20 = arith.constant 0 : index
    %c768 = arith.constant 768 : index
    %42 = vector.load %arg7[%c0_19, %c0_20, %c768] : memref<2x128x2048xbf16, #tpu.memory_space<vmem>>, vector<1x128x384xbf16>
    %43 = vector.shape_cast %42 : vector<1x128x384xbf16> to vector<128x384xbf16>
    %cst_21 = arith.constant dense<0.000000e+00> : vector<8x384xf32>
    %44 = tpu.matmul %34, %43, %cst_21 {dimension_numbers = #tpu.dot_dimension_numbers<[1], [0], [0], [1], [0, 0, 1, 1], [], []>} : vector<8x128xbf16>, vector<128x384xbf16>, vector<8x384xf32> -> vector<8x384xf32>
    %c0_22 = arith.constant 0 : index
    %c0_23 = arith.constant 0 : index
    %c1152 = arith.constant 1152 : index
    %45 = vector.load %arg7[%c0_22, %c0_23, %c1152] : memref<2x128x2048xbf16, #tpu.memory_space<vmem>>, vector<1x128x256xbf16>
    %46 = vector.shape_cast %45 : vector<1x128x256xbf16> to vector<128x256xbf16>
    %cst_24 = arith.constant dense<0.000000e+00> : vector<8x256xf32>
    %47 = tpu.matmul %35, %46, %cst_24 {dimension_numbers = #tpu.dot_dimension_numbers<[1], [0], [0], [1], [0, 0, 1, 1], [], []>} : vector<8x128xbf16>, vector<128x256xbf16>, vector<8x256xf32> -> vector<8x256xf32>
    %48 = vector.extract_strided_slice %38 {offsets = [0, 0], sizes = [8, 128], strides = [1, 1]} : vector<8x384xf32> to vector<8x128xf32>
    %49 = vector.extract_strided_slice %38 {offsets = [0, 128], sizes = [8, 128], strides = [1, 1]} : vector<8x384xf32> to vector<8x128xf32>
    %50 = vector.extract_strided_slice %38 {offsets = [0, 256], sizes = [8, 128], strides = [1, 1]} : vector<8x384xf32> to vector<8x128xf32>
    %51 = vector.extract_strided_slice %41 {offsets = [0, 0], sizes = [8, 128], strides = [1, 1]} : vector<8x384xf32> to vector<8x128xf32>
    %52 = vector.extract_strided_slice %41 {offsets = [0, 128], sizes = [8, 128], strides = [1, 1]} : vector<8x384xf32> to vector<8x128xf32>
    %53 = vector.extract_strided_slice %41 {offsets = [0, 256], sizes = [8, 128], strides = [1, 1]} : vector<8x384xf32> to vector<8x128xf32>
    %54 = vector.extract_strided_slice %44 {offsets = [0, 0], sizes = [8, 128], strides = [1, 1]} : vector<8x384xf32> to vector<8x128xf32>
    %55 = vector.extract_strided_slice %44 {offsets = [0, 128], sizes = [8, 128], strides = [1, 1]} : vector<8x384xf32> to vector<8x128xf32>
    %56 = vector.extract_strided_slice %44 {offsets = [0, 256], sizes = [8, 128], strides = [1, 1]} : vector<8x384xf32> to vector<8x128xf32>
    %57 = vector.extract_strided_slice %47 {offsets = [0, 0], sizes = [8, 128], strides = [1, 1]} : vector<8x256xf32> to vector<8x128xf32>
    %58 = vector.extract_strided_slice %47 {offsets = [0, 128], sizes = [8, 128], strides = [1, 1]} : vector<8x256xf32> to vector<8x128xf32>
    %59 = tpu.concatenate %57, %49, %48, %51, %54, %52, %55 in 0 : vector<8x128xf32>, vector<8x128xf32>, vector<8x128xf32>, vector<8x128xf32>, vector<8x128xf32>, vector<8x128xf32>, vector<8x128xf32> -> vector<56x128xf32>
    %c0_25 = arith.constant 0 : index
    %c0_26 = arith.constant 0 : index
    %60 = vector.load %arg5[%c0_25, %c0_26] : memref<128x128xf32, #tpu.memory_space<vmem>>, vector<128x128xf32>
    %cst_27 = arith.constant dense<0.000000e+00> : vector<56x128xf32>
    %61 = tpu.matmul %59, %60, %cst_27 {dimension_numbers = #tpu.dot_dimension_numbers<[1], [0], [0], [1], [0, 0, 1, 1], [], []>} : vector<56x128xf32>, vector<128x128xf32>, vector<56x128xf32> -> vector<56x128xf32>
    %c0_28 = arith.constant 0 : index
    %c0_29 = arith.constant 0 : index
    %62 = vector.load %arg3[%c0_28, %c0_29] : memref<56x128xf32, #tpu.memory_space<vmem>>, vector<56x128xf32>
    %63 = arith.mulf %59, %62 : vector<56x128xf32>
    %c0_30 = arith.constant 0 : index
    %c0_31 = arith.constant 0 : index
    %64 = vector.load %arg4[%c0_30, %c0_31] : memref<56x128xf32, #tpu.memory_space<vmem>>, vector<56x128xf32>
    %65 = arith.mulf %61, %64 : vector<56x128xf32>
    %66 = arith.addf %63, %65 : vector<56x128xf32>
    %67 = vector.extract_strided_slice %66 {offsets = [0, 0], sizes = [8, 128], strides = [1, 1]} : vector<56x128xf32> to vector<8x128xf32>
    %68 = vector.extract_strided_slice %66 {offsets = [8, 0], sizes = [8, 128], strides = [1, 1]} : vector<56x128xf32> to vector<8x128xf32>
    %69 = vector.extract_strided_slice %66 {offsets = [16, 0], sizes = [8, 128], strides = [1, 1]} : vector<56x128xf32> to vector<8x128xf32>
    %70 = vector.extract_strided_slice %66 {offsets = [24, 0], sizes = [8, 128], strides = [1, 1]} : vector<56x128xf32> to vector<8x128xf32>
    %71 = vector.extract_strided_slice %66 {offsets = [32, 0], sizes = [8, 128], strides = [1, 1]} : vector<56x128xf32> to vector<8x128xf32>
    %72 = vector.extract_strided_slice %66 {offsets = [40, 0], sizes = [8, 128], strides = [1, 1]} : vector<56x128xf32> to vector<8x128xf32>
    %73 = vector.extract_strided_slice %66 {offsets = [48, 0], sizes = [8, 128], strides = [1, 1]} : vector<56x128xf32> to vector<8x128xf32>
    %74 = tpu.concatenate %69, %70, %71 in 0 : vector<8x128xf32>, vector<8x128xf32>, vector<8x128xf32> -> vector<24x128xf32>
    %75 = tpu.concatenate %67, %68, %72, %73 in 0 : vector<8x128xf32>, vector<8x128xf32>, vector<8x128xf32>, vector<8x128xf32> -> vector<32x128xf32>
    %76 = tpu.concatenate %58, %50, %53, %56 in 0 : vector<8x128xf32>, vector<8x128xf32>, vector<8x128xf32>, vector<8x128xf32> -> vector<32x128xf32>
    %c0_32 = arith.constant 0 : index
    %c0_33 = arith.constant 0 : index
    %77 = vector.load %arg6[%c0_32, %c0_33] : memref<24x32xf32, #tpu.memory_space<vmem>>, vector<24x32xf32>
    %78 = vector.extract_strided_slice %74 {offsets = [0, 0], sizes = [24, 32], strides = [1, 1]} : vector<24x128xf32> to vector<24x32xf32>
    %79 = vector.extract_strided_slice %75 {offsets = [0, 0], sizes = [32, 32], strides = [1, 1]} : vector<32x128xf32> to vector<32x32xf32>
    %80 = vector.extract_strided_slice %76 {offsets = [0, 0], sizes = [32, 32], strides = [1, 1]} : vector<32x128xf32> to vector<32x32xf32>
    %cst_34 = arith.constant dense<0.000000e+00> : vector<24x32xf32>
    %81 = tpu.matmul %78, %79, %cst_34 {dimension_numbers = #tpu.dot_dimension_numbers<[1], [1], [0], [0], [0, 0, 1, 0], [], []>} : vector<24x32xf32>, vector<32x32xf32>, vector<24x32xf32> -> vector<24x32xf32>
    %cst_35 = arith.constant 0.176776692 : f32
    %82 = vector.broadcast %cst_35 : f32 to vector<24x32xf32>
    %83 = arith.mulf %81, %82 : vector<24x32xf32>
    %84 = arith.addf %83, %77 : vector<24x32xf32>
    %cst_36 = arith.constant dense<0xFF800000> : vector<24xf32>
    %85 = vector.multi_reduction <maximumf>, %84, %cst_36 [1] : vector<24x32xf32> to vector<24xf32>
    %86 = vector.shape_cast %85 : vector<24xf32> to vector<24x1xf32>
    %87 = vector.broadcast %86 : vector<24x1xf32> to vector<24x32xf32>
    %88 = arith.subf %84, %87 : vector<24x32xf32>
    %89 = math.exp %88 : vector<24x32xf32>
    %cst_37 = arith.constant dense<0.000000e+00> : vector<24xf32>
    %90 = vector.multi_reduction <add>, %89, %cst_37 [1] : vector<24x32xf32> to vector<24xf32>
    %91 = vector.shape_cast %90 : vector<24xf32> to vector<24x1xf32>
    %92 = vector.broadcast %91 : vector<24x1xf32> to vector<24x32xf32>
    %93 = arith.divf %89, %92 : vector<24x32xf32>
    %cst_38 = arith.constant dense<0.000000e+00> : vector<24x32xf32>
    %94 = tpu.matmul %93, %80, %cst_38 {dimension_numbers = #tpu.dot_dimension_numbers<[1], [0], [0], [1], [0, 0, 1, 1], [], []>} : vector<24x32xf32>, vector<32x32xf32>, vector<24x32xf32> -> vector<24x32xf32>
    %95 = vector.extract_strided_slice %74 {offsets = [0, 32], sizes = [24, 32], strides = [1, 1]} : vector<24x128xf32> to vector<24x32xf32>
    %96 = vector.extract_strided_slice %75 {offsets = [0, 32], sizes = [32, 32], strides = [1, 1]} : vector<32x128xf32> to vector<32x32xf32>
    %97 = vector.extract_strided_slice %76 {offsets = [0, 32], sizes = [32, 32], strides = [1, 1]} : vector<32x128xf32> to vector<32x32xf32>
    %cst_39 = arith.constant dense<0.000000e+00> : vector<24x32xf32>
    %98 = tpu.matmul %95, %96, %cst_39 {dimension_numbers = #tpu.dot_dimension_numbers<[1], [1], [0], [0], [0, 0, 1, 0], [], []>} : vector<24x32xf32>, vector<32x32xf32>, vector<24x32xf32> -> vector<24x32xf32>
    %cst_40 = arith.constant 0.176776692 : f32
    %99 = vector.broadcast %cst_40 : f32 to vector<24x32xf32>
    %100 = arith.mulf %98, %99 : vector<24x32xf32>
    %101 = arith.addf %100, %77 : vector<24x32xf32>
    %cst_41 = arith.constant dense<0xFF800000> : vector<24xf32>
    %102 = vector.multi_reduction <maximumf>, %101, %cst_41 [1] : vector<24x32xf32> to vector<24xf32>
    %103 = vector.shape_cast %102 : vector<24xf32> to vector<24x1xf32>
    %104 = vector.broadcast %103 : vector<24x1xf32> to vector<24x32xf32>
    %105 = arith.subf %101, %104 : vector<24x32xf32>
    %106 = math.exp %105 : vector<24x32xf32>
    %cst_42 = arith.constant dense<0.000000e+00> : vector<24xf32>
    %107 = vector.multi_reduction <add>, %106, %cst_42 [1] : vector<24x32xf32> to vector<24xf32>
    %108 = vector.shape_cast %107 : vector<24xf32> to vector<24x1xf32>
    %109 = vector.broadcast %108 : vector<24x1xf32> to vector<24x32xf32>
    %110 = arith.divf %106, %109 : vector<24x32xf32>
    %cst_43 = arith.constant dense<0.000000e+00> : vector<24x32xf32>
    %111 = tpu.matmul %110, %97, %cst_43 {dimension_numbers = #tpu.dot_dimension_numbers<[1], [0], [0], [1], [0, 0, 1, 1], [], []>} : vector<24x32xf32>, vector<32x32xf32>, vector<24x32xf32> -> vector<24x32xf32>
    %112 = vector.extract_strided_slice %74 {offsets = [0, 64], sizes = [24, 32], strides = [1, 1]} : vector<24x128xf32> to vector<24x32xf32>
    %113 = vector.extract_strided_slice %75 {offsets = [0, 64], sizes = [32, 32], strides = [1, 1]} : vector<32x128xf32> to vector<32x32xf32>
    %114 = vector.extract_strided_slice %76 {offsets = [0, 64], sizes = [32, 32], strides = [1, 1]} : vector<32x128xf32> to vector<32x32xf32>
    %cst_44 = arith.constant dense<0.000000e+00> : vector<24x32xf32>
    %115 = tpu.matmul %112, %113, %cst_44 {dimension_numbers = #tpu.dot_dimension_numbers<[1], [1], [0], [0], [0, 0, 1, 0], [], []>} : vector<24x32xf32>, vector<32x32xf32>, vector<24x32xf32> -> vector<24x32xf32>
    %cst_45 = arith.constant 0.176776692 : f32
    %116 = vector.broadcast %cst_45 : f32 to vector<24x32xf32>
    %117 = arith.mulf %115, %116 : vector<24x32xf32>
    %118 = arith.addf %117, %77 : vector<24x32xf32>
    %cst_46 = arith.constant dense<0xFF800000> : vector<24xf32>
    %119 = vector.multi_reduction <maximumf>, %118, %cst_46 [1] : vector<24x32xf32> to vector<24xf32>
    %120 = vector.shape_cast %119 : vector<24xf32> to vector<24x1xf32>
    %121 = vector.broadcast %120 : vector<24x1xf32> to vector<24x32xf32>
    %122 = arith.subf %118, %121 : vector<24x32xf32>
    %123 = math.exp %122 : vector<24x32xf32>
    %cst_47 = arith.constant dense<0.000000e+00> : vector<24xf32>
    %124 = vector.multi_reduction <add>, %123, %cst_47 [1] : vector<24x32xf32> to vector<24xf32>
    %125 = vector.shape_cast %124 : vector<24xf32> to vector<24x1xf32>
    %126 = vector.broadcast %125 : vector<24x1xf32> to vector<24x32xf32>
    %127 = arith.divf %123, %126 : vector<24x32xf32>
    %cst_48 = arith.constant dense<0.000000e+00> : vector<24x32xf32>
    %128 = tpu.matmul %127, %114, %cst_48 {dimension_numbers = #tpu.dot_dimension_numbers<[1], [0], [0], [1], [0, 0, 1, 1], [], []>} : vector<24x32xf32>, vector<32x32xf32>, vector<24x32xf32> -> vector<24x32xf32>
    %129 = vector.extract_strided_slice %74 {offsets = [0, 96], sizes = [24, 32], strides = [1, 1]} : vector<24x128xf32> to vector<24x32xf32>
    %130 = vector.extract_strided_slice %75 {offsets = [0, 96], sizes = [32, 32], strides = [1, 1]} : vector<32x128xf32> to vector<32x32xf32>
    %131 = vector.extract_strided_slice %76 {offsets = [0, 96], sizes = [32, 32], strides = [1, 1]} : vector<32x128xf32> to vector<32x32xf32>
    %cst_49 = arith.constant dense<0.000000e+00> : vector<24x32xf32>
    %132 = tpu.matmul %129, %130, %cst_49 {dimension_numbers = #tpu.dot_dimension_numbers<[1], [1], [0], [0], [0, 0, 1, 0], [], []>} : vector<24x32xf32>, vector<32x32xf32>, vector<24x32xf32> -> vector<24x32xf32>
    %cst_50 = arith.constant 0.176776692 : f32
    %133 = vector.broadcast %cst_50 : f32 to vector<24x32xf32>
    %134 = arith.mulf %132, %133 : vector<24x32xf32>
    %135 = arith.addf %134, %77 : vector<24x32xf32>
    %cst_51 = arith.constant dense<0xFF800000> : vector<24xf32>
    %136 = vector.multi_reduction <maximumf>, %135, %cst_51 [1] : vector<24x32xf32> to vector<24xf32>
    %137 = vector.shape_cast %136 : vector<24xf32> to vector<24x1xf32>
    %138 = vector.broadcast %137 : vector<24x1xf32> to vector<24x32xf32>
    %139 = arith.subf %135, %138 : vector<24x32xf32>
    %140 = math.exp %139 : vector<24x32xf32>
    %cst_52 = arith.constant dense<0.000000e+00> : vector<24xf32>
    %141 = vector.multi_reduction <add>, %140, %cst_52 [1] : vector<24x32xf32> to vector<24xf32>
    %142 = vector.shape_cast %141 : vector<24xf32> to vector<24x1xf32>
    %143 = vector.broadcast %142 : vector<24x1xf32> to vector<24x32xf32>
    %144 = arith.divf %140, %143 : vector<24x32xf32>
    %cst_53 = arith.constant dense<0.000000e+00> : vector<24x32xf32>
    %145 = tpu.matmul %144, %131, %cst_53 {dimension_numbers = #tpu.dot_dimension_numbers<[1], [0], [0], [1], [0, 0, 1, 1], [], []>} : vector<24x32xf32>, vector<32x32xf32>, vector<24x32xf32> -> vector<24x32xf32>
    %146 = tpu.concatenate %94, %111, %128, %145 in 1 : vector<24x32xf32>, vector<24x32xf32>, vector<24x32xf32>, vector<24x32xf32> -> vector<24x128xf32>
    %147 = arith.truncf %146 : vector<24x128xf32> to vector<24x128xbf16>
    %c0_54 = arith.constant 0 : index
    %c0_55 = arith.constant 0 : index
    %c1408 = arith.constant 1408 : index
    %148 = vector.load %arg7[%c0_54, %c0_55, %c1408] : memref<2x128x2048xbf16, #tpu.memory_space<vmem>>, vector<1x128x128xbf16>
    %149 = vector.shape_cast %148 : vector<1x128x128xbf16> to vector<128x128xbf16>
    %cst_56 = arith.constant dense<0.000000e+00> : vector<24x128xf32>
    %150 = tpu.matmul %147, %149, %cst_56 {dimension_numbers = #tpu.dot_dimension_numbers<[1], [0], [0], [1], [0, 0, 1, 1], [], []>} : vector<24x128xbf16>, vector<128x128xbf16>, vector<24x128xf32> -> vector<24x128xf32>
    %151 = arith.addf %3, %150 : vector<24x128xf32>
    %152 = arith.mulf %151, %151 : vector<24x128xf32>
    %cst_57 = arith.constant dense<0.000000e+00> : vector<24xf32>
    %153 = vector.multi_reduction <add>, %152, %cst_57 [1] : vector<24x128xf32> to vector<24xf32>
    %154 = vector.shape_cast %153 : vector<24xf32> to vector<24x1xf32>
    %cst_58 = arith.constant 1.280000e+02 : f32
    %155 = vector.broadcast %cst_58 : f32 to vector<24x1xf32>
    %156 = arith.divf %154, %155 : vector<24x1xf32>
    %cst_59 = arith.constant 9.99999997E-7 : f32
    %157 = vector.broadcast %cst_59 : f32 to vector<24x1xf32>
    %158 = arith.addf %156, %157 : vector<24x1xf32>
    %159 = math.rsqrt %158 : vector<24x1xf32>
    %160 = vector.broadcast %159 : vector<24x1xf32> to vector<24x128xf32>
    %161 = arith.mulf %151, %160 : vector<24x128xf32>
    %162 = arith.truncf %161 : vector<24x128xf32> to vector<24x128xbf16>
    %c0_60 = arith.constant 0 : index
    %c0_61 = arith.constant 0 : index
    %c1536 = arith.constant 1536 : index
    %163 = vector.load %arg7[%c0_60, %c0_61, %c1536] : memref<2x128x2048xbf16, #tpu.memory_space<vmem>>, vector<1x128x512xbf16>
    %164 = vector.shape_cast %163 : vector<1x128x512xbf16> to vector<128x512xbf16>
    %cst_62 = arith.constant dense<0.000000e+00> : vector<24x512xf32>
    %165 = tpu.matmul %162, %164, %cst_62 {dimension_numbers = #tpu.dot_dimension_numbers<[1], [0], [0], [1], [0, 0, 1, 1], [], []>} : vector<24x128xbf16>, vector<128x512xbf16>, vector<24x512xf32> -> vector<24x512xf32>
    %166 = vector.extract_strided_slice %165 {offsets = [0, 0], sizes = [24, 256], strides = [1, 1]} : vector<24x512xf32> to vector<24x256xf32>
    %167 = vector.extract_strided_slice %165 {offsets = [0, 256], sizes = [24, 256], strides = [1, 1]} : vector<24x512xf32> to vector<24x256xf32>
    %168 = arith.negf %166 : vector<24x256xf32>
    %169 = math.exp %168 : vector<24x256xf32>
    %cst_63 = arith.constant 1.000000e+00 : f32
    %170 = vector.broadcast %cst_63 : f32 to vector<24x256xf32>
    %171 = arith.addf %170, %169 : vector<24x256xf32>
    %172 = arith.divf %170, %171 : vector<24x256xf32>
    %173 = arith.mulf %166, %172 : vector<24x256xf32>
    %174 = arith.mulf %173, %167 : vector<24x256xf32>
    %175 = arith.truncf %174 : vector<24x256xf32> to vector<24x256xbf16>
    %c0_64 = arith.constant 0 : index
    %c0_65 = arith.constant 0 : index
    %c0_66 = arith.constant 0 : index
    %176 = vector.load %arg8[%c0_64, %c0_65, %c0_66] : memref<2x256x128xbf16, #tpu.memory_space<vmem>>, vector<1x256x128xbf16>
    %177 = vector.shape_cast %176 : vector<1x256x128xbf16> to vector<256x128xbf16>
    %cst_67 = arith.constant dense<0.000000e+00> : vector<24x128xf32>
    %178 = tpu.matmul %175, %177, %cst_67 {dimension_numbers = #tpu.dot_dimension_numbers<[1], [0], [0], [1], [0, 0, 1, 1], [], []>} : vector<24x256xbf16>, vector<256x128xbf16>, vector<24x128xf32> -> vector<24x128xf32>
    %179 = arith.addf %151, %178 : vector<24x128xf32>
    %c1 = arith.constant 1 : index
    %c0_68 = arith.constant 0 : index
    %c0_69 = arith.constant 0 : index
    %180 = vector.load %arg2[%c1, %c0_68, %c0_69] : memref<2x8x128xf32, #tpu.memory_space<vmem>>, vector<1x8x128xf32>
    %181 = vector.shape_cast %180 : vector<1x8x128xf32> to vector<8x128xf32>
    %182 = vector.extract_strided_slice %179 {offsets = [8, 0], sizes = [8, 128], strides = [1, 1]} : vector<24x128xf32> to vector<8x128xf32>
    %183 = vector.extract_strided_slice %179 {offsets = [16, 0], sizes = [8, 128], strides = [1, 1]} : vector<24x128xf32> to vector<8x128xf32>
    %184 = arith.negf %183 : vector<8x128xf32>
    %185 = math.exp %184 : vector<8x128xf32>
    %cst_70 = arith.constant 1.000000e+00 : f32
    %186 = vector.broadcast %cst_70 : f32 to vector<8x128xf32>
    %187 = arith.addf %186, %185 : vector<8x128xf32>
    %188 = arith.divf %186, %187 : vector<8x128xf32>
    %189 = arith.mulf %181, %188 : vector<8x128xf32>
    %cst_71 = arith.constant 1.000000e+00 : f32
    %190 = vector.broadcast %cst_71 : f32 to vector<8x128xf32>
    %191 = arith.subf %190, %188 : vector<8x128xf32>
    %192 = arith.mulf %182, %191 : vector<8x128xf32>
    %193 = arith.addf %189, %192 : vector<8x128xf32>
    %c1_72 = arith.constant 1 : index
    %c0_73 = arith.constant 0 : index
    %c0_74 = arith.constant 0 : index
    %194 = vector.load %arg9[%c1_72, %c0_73, %c0_74] : memref<2x8x128xf32, #tpu.memory_space<vmem>>, vector<1x8x128xf32>
    %195 = vector.shape_cast %194 : vector<1x8x128xf32> to vector<8x128xf32>
    %196 = vector.shape_cast %193 : vector<8x128xf32> to vector<1x8x128xf32>
    tpu.vector_store %arg9[%c1_72, %c0_73, %c0_74], %196 {strides = array<i32>} : memref<2x8x128xf32, #tpu.memory_space<vmem>>, vector<1x8x128xf32>,
    %197 = arith.mulf %179, %179 : vector<24x128xf32>
    %cst_75 = arith.constant dense<0.000000e+00> : vector<24xf32>
    %198 = vector.multi_reduction <add>, %197, %cst_75 [1] : vector<24x128xf32> to vector<24xf32>
    %199 = vector.shape_cast %198 : vector<24xf32> to vector<24x1xf32>
    %cst_76 = arith.constant 1.280000e+02 : f32
    %200 = vector.broadcast %cst_76 : f32 to vector<24x1xf32>
    %201 = arith.divf %199, %200 : vector<24x1xf32>
    %cst_77 = arith.constant 9.99999997E-7 : f32
    %202 = vector.broadcast %cst_77 : f32 to vector<24x1xf32>
    %203 = arith.addf %201, %202 : vector<24x1xf32>
    %204 = math.rsqrt %203 : vector<24x1xf32>
    %205 = vector.broadcast %204 : vector<24x1xf32> to vector<24x128xf32>
    %206 = arith.mulf %179, %205 : vector<24x128xf32>
    %207 = arith.truncf %206 : vector<24x128xf32> to vector<24x128xbf16>
    %208 = vector.extract_strided_slice %207 {offsets = [0, 0], sizes = [8, 128], strides = [1, 1]} : vector<24x128xbf16> to vector<8x128xbf16>
    %209 = vector.extract_strided_slice %207 {offsets = [8, 0], sizes = [8, 128], strides = [1, 1]} : vector<24x128xbf16> to vector<8x128xbf16>
    %210 = vector.extract_strided_slice %207 {offsets = [16, 0], sizes = [8, 128], strides = [1, 1]} : vector<24x128xbf16> to vector<8x128xbf16>
    %211 = arith.truncf %181 : vector<8x128xf32> to vector<8x128xbf16>
    %c1_78 = arith.constant 1 : index
    %c0_79 = arith.constant 0 : index
    %c0_80 = arith.constant 0 : index
    %212 = vector.load %arg7[%c1_78, %c0_79, %c0_80] : memref<2x128x2048xbf16, #tpu.memory_space<vmem>>, vector<1x128x384xbf16>
    %213 = vector.shape_cast %212 : vector<1x128x384xbf16> to vector<128x384xbf16>
    %cst_81 = arith.constant dense<0.000000e+00> : vector<8x384xf32>
    %214 = tpu.matmul %208, %213, %cst_81 {dimension_numbers = #tpu.dot_dimension_numbers<[1], [0], [0], [1], [0, 0, 1, 1], [], []>} : vector<8x128xbf16>, vector<128x384xbf16>, vector<8x384xf32> -> vector<8x384xf32>
    %c1_82 = arith.constant 1 : index
    %c0_83 = arith.constant 0 : index
    %c384_84 = arith.constant 384 : index
    %215 = vector.load %arg7[%c1_82, %c0_83, %c384_84] : memref<2x128x2048xbf16, #tpu.memory_space<vmem>>, vector<1x128x384xbf16>
    %216 = vector.shape_cast %215 : vector<1x128x384xbf16> to vector<128x384xbf16>
    %cst_85 = arith.constant dense<0.000000e+00> : vector<8x384xf32>
    %217 = tpu.matmul %209, %216, %cst_85 {dimension_numbers = #tpu.dot_dimension_numbers<[1], [0], [0], [1], [0, 0, 1, 1], [], []>} : vector<8x128xbf16>, vector<128x384xbf16>, vector<8x384xf32> -> vector<8x384xf32>
    %c1_86 = arith.constant 1 : index
    %c0_87 = arith.constant 0 : index
    %c768_88 = arith.constant 768 : index
    %218 = vector.load %arg7[%c1_86, %c0_87, %c768_88] : memref<2x128x2048xbf16, #tpu.memory_space<vmem>>, vector<1x128x384xbf16>
    %219 = vector.shape_cast %218 : vector<1x128x384xbf16> to vector<128x384xbf16>
    %cst_89 = arith.constant dense<0.000000e+00> : vector<8x384xf32>
    %220 = tpu.matmul %210, %219, %cst_89 {dimension_numbers = #tpu.dot_dimension_numbers<[1], [0], [0], [1], [0, 0, 1, 1], [], []>} : vector<8x128xbf16>, vector<128x384xbf16>, vector<8x384xf32> -> vector<8x384xf32>
    %c1_90 = arith.constant 1 : index
    %c0_91 = arith.constant 0 : index
    %c1152_92 = arith.constant 1152 : index
    %221 = vector.load %arg7[%c1_90, %c0_91, %c1152_92] : memref<2x128x2048xbf16, #tpu.memory_space<vmem>>, vector<1x128x256xbf16>
    %222 = vector.shape_cast %221 : vector<1x128x256xbf16> to vector<128x256xbf16>
    %cst_93 = arith.constant dense<0.000000e+00> : vector<8x256xf32>
    %223 = tpu.matmul %211, %222, %cst_93 {dimension_numbers = #tpu.dot_dimension_numbers<[1], [0], [0], [1], [0, 0, 1, 1], [], []>} : vector<8x128xbf16>, vector<128x256xbf16>, vector<8x256xf32> -> vector<8x256xf32>
    %224 = vector.extract_strided_slice %214 {offsets = [0, 0], sizes = [8, 128], strides = [1, 1]} : vector<8x384xf32> to vector<8x128xf32>
    %225 = vector.extract_strided_slice %214 {offsets = [0, 128], sizes = [8, 128], strides = [1, 1]} : vector<8x384xf32> to vector<8x128xf32>
    %226 = vector.extract_strided_slice %214 {offsets = [0, 256], sizes = [8, 128], strides = [1, 1]} : vector<8x384xf32> to vector<8x128xf32>
    %227 = vector.extract_strided_slice %217 {offsets = [0, 0], sizes = [8, 128], strides = [1, 1]} : vector<8x384xf32> to vector<8x128xf32>
    %228 = vector.extract_strided_slice %217 {offsets = [0, 128], sizes = [8, 128], strides = [1, 1]} : vector<8x384xf32> to vector<8x128xf32>
    %229 = vector.extract_strided_slice %217 {offsets = [0, 256], sizes = [8, 128], strides = [1, 1]} : vector<8x384xf32> to vector<8x128xf32>
    %230 = vector.extract_strided_slice %220 {offsets = [0, 0], sizes = [8, 128], strides = [1, 1]} : vector<8x384xf32> to vector<8x128xf32>
    %231 = vector.extract_strided_slice %220 {offsets = [0, 128], sizes = [8, 128], strides = [1, 1]} : vector<8x384xf32> to vector<8x128xf32>
    %232 = vector.extract_strided_slice %220 {offsets = [0, 256], sizes = [8, 128], strides = [1, 1]} : vector<8x384xf32> to vector<8x128xf32>
    %233 = vector.extract_strided_slice %223 {offsets = [0, 0], sizes = [8, 128], strides = [1, 1]} : vector<8x256xf32> to vector<8x128xf32>
    %234 = vector.extract_strided_slice %223 {offsets = [0, 128], sizes = [8, 128], strides = [1, 1]} : vector<8x256xf32> to vector<8x128xf32>
    %235 = tpu.concatenate %233, %225, %224, %227, %230, %228, %231 in 0 : vector<8x128xf32>, vector<8x128xf32>, vector<8x128xf32>, vector<8x128xf32>, vector<8x128xf32>, vector<8x128xf32>, vector<8x128xf32> -> vector<56x128xf32>
    %c0_94 = arith.constant 0 : index
    %c0_95 = arith.constant 0 : index
    %236 = vector.load %arg5[%c0_94, %c0_95] : memref<128x128xf32, #tpu.memory_space<vmem>>, vector<128x128xf32>
    %cst_96 = arith.constant dense<0.000000e+00> : vector<56x128xf32>
    %237 = tpu.matmul %235, %236, %cst_96 {dimension_numbers = #tpu.dot_dimension_numbers<[1], [0], [0], [1], [0, 0, 1, 1], [], []>} : vector<56x128xf32>, vector<128x128xf32>, vector<56x128xf32> -> vector<56x128xf32>
    %c0_97 = arith.constant 0 : index
    %c0_98 = arith.constant 0 : index
    %238 = vector.load %arg3[%c0_97, %c0_98] : memref<56x128xf32, #tpu.memory_space<vmem>>, vector<56x128xf32>
    %239 = arith.mulf %235, %238 : vector<56x128xf32>
    %c0_99 = arith.constant 0 : index
    %c0_100 = arith.constant 0 : index
    %240 = vector.load %arg4[%c0_99, %c0_100] : memref<56x128xf32, #tpu.memory_space<vmem>>, vector<56x128xf32>
    %241 = arith.mulf %237, %240 : vector<56x128xf32>
    %242 = arith.addf %239, %241 : vector<56x128xf32>
    %243 = vector.extract_strided_slice %242 {offsets = [0, 0], sizes = [8, 128], strides = [1, 1]} : vector<56x128xf32> to vector<8x128xf32>
    %244 = vector.extract_strided_slice %242 {offsets = [8, 0], sizes = [8, 128], strides = [1, 1]} : vector<56x128xf32> to vector<8x128xf32>
    %245 = vector.extract_strided_slice %242 {offsets = [16, 0], sizes = [8, 128], strides = [1, 1]} : vector<56x128xf32> to vector<8x128xf32>
    %246 = vector.extract_strided_slice %242 {offsets = [24, 0], sizes = [8, 128], strides = [1, 1]} : vector<56x128xf32> to vector<8x128xf32>
    %247 = vector.extract_strided_slice %242 {offsets = [32, 0], sizes = [8, 128], strides = [1, 1]} : vector<56x128xf32> to vector<8x128xf32>
    %248 = vector.extract_strided_slice %242 {offsets = [40, 0], sizes = [8, 128], strides = [1, 1]} : vector<56x128xf32> to vector<8x128xf32>
    %249 = vector.extract_strided_slice %242 {offsets = [48, 0], sizes = [8, 128], strides = [1, 1]} : vector<56x128xf32> to vector<8x128xf32>
    %250 = tpu.concatenate %245, %246, %247 in 0 : vector<8x128xf32>, vector<8x128xf32>, vector<8x128xf32> -> vector<24x128xf32>
    %251 = tpu.concatenate %243, %244, %248, %249 in 0 : vector<8x128xf32>, vector<8x128xf32>, vector<8x128xf32>, vector<8x128xf32> -> vector<32x128xf32>
    %252 = tpu.concatenate %234, %226, %229, %232 in 0 : vector<8x128xf32>, vector<8x128xf32>, vector<8x128xf32>, vector<8x128xf32> -> vector<32x128xf32>
    %c0_101 = arith.constant 0 : index
    %c0_102 = arith.constant 0 : index
    %253 = vector.load %arg6[%c0_101, %c0_102] : memref<24x32xf32, #tpu.memory_space<vmem>>, vector<24x32xf32>
    %254 = vector.extract_strided_slice %250 {offsets = [0, 0], sizes = [24, 32], strides = [1, 1]} : vector<24x128xf32> to vector<24x32xf32>
    %255 = vector.extract_strided_slice %251 {offsets = [0, 0], sizes = [32, 32], strides = [1, 1]} : vector<32x128xf32> to vector<32x32xf32>
    %256 = vector.extract_strided_slice %252 {offsets = [0, 0], sizes = [32, 32], strides = [1, 1]} : vector<32x128xf32> to vector<32x32xf32>
    %cst_103 = arith.constant dense<0.000000e+00> : vector<24x32xf32>
    %257 = tpu.matmul %254, %255, %cst_103 {dimension_numbers = #tpu.dot_dimension_numbers<[1], [1], [0], [0], [0, 0, 1, 0], [], []>} : vector<24x32xf32>, vector<32x32xf32>, vector<24x32xf32> -> vector<24x32xf32>
    %cst_104 = arith.constant 0.176776692 : f32
    %258 = vector.broadcast %cst_104 : f32 to vector<24x32xf32>
    %259 = arith.mulf %257, %258 : vector<24x32xf32>
    %260 = arith.addf %259, %253 : vector<24x32xf32>
    %cst_105 = arith.constant dense<0xFF800000> : vector<24xf32>
    %261 = vector.multi_reduction <maximumf>, %260, %cst_105 [1] : vector<24x32xf32> to vector<24xf32>
    %262 = vector.shape_cast %261 : vector<24xf32> to vector<24x1xf32>
    %263 = vector.broadcast %262 : vector<24x1xf32> to vector<24x32xf32>
    %264 = arith.subf %260, %263 : vector<24x32xf32>
    %265 = math.exp %264 : vector<24x32xf32>
    %cst_106 = arith.constant dense<0.000000e+00> : vector<24xf32>
    %266 = vector.multi_reduction <add>, %265, %cst_106 [1] : vector<24x32xf32> to vector<24xf32>
    %267 = vector.shape_cast %266 : vector<24xf32> to vector<24x1xf32>
    %268 = vector.broadcast %267 : vector<24x1xf32> to vector<24x32xf32>
    %269 = arith.divf %265, %268 : vector<24x32xf32>
    %cst_107 = arith.constant dense<0.000000e+00> : vector<24x32xf32>
    %270 = tpu.matmul %269, %256, %cst_107 {dimension_numbers = #tpu.dot_dimension_numbers<[1], [0], [0], [1], [0, 0, 1, 1], [], []>} : vector<24x32xf32>, vector<32x32xf32>, vector<24x32xf32> -> vector<24x32xf32>
    %271 = vector.extract_strided_slice %250 {offsets = [0, 32], sizes = [24, 32], strides = [1, 1]} : vector<24x128xf32> to vector<24x32xf32>
    %272 = vector.extract_strided_slice %251 {offsets = [0, 32], sizes = [32, 32], strides = [1, 1]} : vector<32x128xf32> to vector<32x32xf32>
    %273 = vector.extract_strided_slice %252 {offsets = [0, 32], sizes = [32, 32], strides = [1, 1]} : vector<32x128xf32> to vector<32x32xf32>
    %cst_108 = arith.constant dense<0.000000e+00> : vector<24x32xf32>
    %274 = tpu.matmul %271, %272, %cst_108 {dimension_numbers = #tpu.dot_dimension_numbers<[1], [1], [0], [0], [0, 0, 1, 0], [], []>} : vector<24x32xf32>, vector<32x32xf32>, vector<24x32xf32> -> vector<24x32xf32>
    %cst_109 = arith.constant 0.176776692 : f32
    %275 = vector.broadcast %cst_109 : f32 to vector<24x32xf32>
    %276 = arith.mulf %274, %275 : vector<24x32xf32>
    %277 = arith.addf %276, %253 : vector<24x32xf32>
    %cst_110 = arith.constant dense<0xFF800000> : vector<24xf32>
    %278 = vector.multi_reduction <maximumf>, %277, %cst_110 [1] : vector<24x32xf32> to vector<24xf32>
    %279 = vector.shape_cast %278 : vector<24xf32> to vector<24x1xf32>
    %280 = vector.broadcast %279 : vector<24x1xf32> to vector<24x32xf32>
    %281 = arith.subf %277, %280 : vector<24x32xf32>
    %282 = math.exp %281 : vector<24x32xf32>
    %cst_111 = arith.constant dense<0.000000e+00> : vector<24xf32>
    %283 = vector.multi_reduction <add>, %282, %cst_111 [1] : vector<24x32xf32> to vector<24xf32>
    %284 = vector.shape_cast %283 : vector<24xf32> to vector<24x1xf32>
    %285 = vector.broadcast %284 : vector<24x1xf32> to vector<24x32xf32>
    %286 = arith.divf %282, %285 : vector<24x32xf32>
    %cst_112 = arith.constant dense<0.000000e+00> : vector<24x32xf32>
    %287 = tpu.matmul %286, %273, %cst_112 {dimension_numbers = #tpu.dot_dimension_numbers<[1], [0], [0], [1], [0, 0, 1, 1], [], []>} : vector<24x32xf32>, vector<32x32xf32>, vector<24x32xf32> -> vector<24x32xf32>
    %288 = vector.extract_strided_slice %250 {offsets = [0, 64], sizes = [24, 32], strides = [1, 1]} : vector<24x128xf32> to vector<24x32xf32>
    %289 = vector.extract_strided_slice %251 {offsets = [0, 64], sizes = [32, 32], strides = [1, 1]} : vector<32x128xf32> to vector<32x32xf32>
    %290 = vector.extract_strided_slice %252 {offsets = [0, 64], sizes = [32, 32], strides = [1, 1]} : vector<32x128xf32> to vector<32x32xf32>
    %cst_113 = arith.constant dense<0.000000e+00> : vector<24x32xf32>
    %291 = tpu.matmul %288, %289, %cst_113 {dimension_numbers = #tpu.dot_dimension_numbers<[1], [1], [0], [0], [0, 0, 1, 0], [], []>} : vector<24x32xf32>, vector<32x32xf32>, vector<24x32xf32> -> vector<24x32xf32>
    %cst_114 = arith.constant 0.176776692 : f32
    %292 = vector.broadcast %cst_114 : f32 to vector<24x32xf32>
    %293 = arith.mulf %291, %292 : vector<24x32xf32>
    %294 = arith.addf %293, %253 : vector<24x32xf32>
    %cst_115 = arith.constant dense<0xFF800000> : vector<24xf32>
    %295 = vector.multi_reduction <maximumf>, %294, %cst_115 [1] : vector<24x32xf32> to vector<24xf32>
    %296 = vector.shape_cast %295 : vector<24xf32> to vector<24x1xf32>
    %297 = vector.broadcast %296 : vector<24x1xf32> to vector<24x32xf32>
    %298 = arith.subf %294, %297 : vector<24x32xf32>
    %299 = math.exp %298 : vector<24x32xf32>
    %cst_116 = arith.constant dense<0.000000e+00> : vector<24xf32>
    %300 = vector.multi_reduction <add>, %299, %cst_116 [1] : vector<24x32xf32> to vector<24xf32>
    %301 = vector.shape_cast %300 : vector<24xf32> to vector<24x1xf32>
    %302 = vector.broadcast %301 : vector<24x1xf32> to vector<24x32xf32>
    %303 = arith.divf %299, %302 : vector<24x32xf32>
    %cst_117 = arith.constant dense<0.000000e+00> : vector<24x32xf32>
    %304 = tpu.matmul %303, %290, %cst_117 {dimension_numbers = #tpu.dot_dimension_numbers<[1], [0], [0], [1], [0, 0, 1, 1], [], []>} : vector<24x32xf32>, vector<32x32xf32>, vector<24x32xf32> -> vector<24x32xf32>
    %305 = vector.extract_strided_slice %250 {offsets = [0, 96], sizes = [24, 32], strides = [1, 1]} : vector<24x128xf32> to vector<24x32xf32>
    %306 = vector.extract_strided_slice %251 {offsets = [0, 96], sizes = [32, 32], strides = [1, 1]} : vector<32x128xf32> to vector<32x32xf32>
    %307 = vector.extract_strided_slice %252 {offsets = [0, 96], sizes = [32, 32], strides = [1, 1]} : vector<32x128xf32> to vector<32x32xf32>
    %cst_118 = arith.constant dense<0.000000e+00> : vector<24x32xf32>
    %308 = tpu.matmul %305, %306, %cst_118 {dimension_numbers = #tpu.dot_dimension_numbers<[1], [1], [0], [0], [0, 0, 1, 0], [], []>} : vector<24x32xf32>, vector<32x32xf32>, vector<24x32xf32> -> vector<24x32xf32>
    %cst_119 = arith.constant 0.176776692 : f32
    %309 = vector.broadcast %cst_119 : f32 to vector<24x32xf32>
    %310 = arith.mulf %308, %309 : vector<24x32xf32>
    %311 = arith.addf %310, %253 : vector<24x32xf32>
    %cst_120 = arith.constant dense<0xFF800000> : vector<24xf32>
    %312 = vector.multi_reduction <maximumf>, %311, %cst_120 [1] : vector<24x32xf32> to vector<24xf32>
    %313 = vector.shape_cast %312 : vector<24xf32> to vector<24x1xf32>
    %314 = vector.broadcast %313 : vector<24x1xf32> to vector<24x32xf32>
    %315 = arith.subf %311, %314 : vector<24x32xf32>
    %316 = math.exp %315 : vector<24x32xf32>
    %cst_121 = arith.constant dense<0.000000e+00> : vector<24xf32>
    %317 = vector.multi_reduction <add>, %316, %cst_121 [1] : vector<24x32xf32> to vector<24xf32>
    %318 = vector.shape_cast %317 : vector<24xf32> to vector<24x1xf32>
    %319 = vector.broadcast %318 : vector<24x1xf32> to vector<24x32xf32>
    %320 = arith.divf %316, %319 : vector<24x32xf32>
    %cst_122 = arith.constant dense<0.000000e+00> : vector<24x32xf32>
    %321 = tpu.matmul %320, %307, %cst_122 {dimension_numbers = #tpu.dot_dimension_numbers<[1], [0], [0], [1], [0, 0, 1, 1], [], []>} : vector<24x32xf32>, vector<32x32xf32>, vector<24x32xf32> -> vector<24x32xf32>
    %322 = tpu.concatenate %270, %287, %304, %321 in 1 : vector<24x32xf32>, vector<24x32xf32>, vector<24x32xf32>, vector<24x32xf32> -> vector<24x128xf32>
    %323 = arith.truncf %322 : vector<24x128xf32> to vector<24x128xbf16>
    %c1_123 = arith.constant 1 : index
    %c0_124 = arith.constant 0 : index
    %c1408_125 = arith.constant 1408 : index
    %324 = vector.load %arg7[%c1_123, %c0_124, %c1408_125] : memref<2x128x2048xbf16, #tpu.memory_space<vmem>>, vector<1x128x128xbf16>
    %325 = vector.shape_cast %324 : vector<1x128x128xbf16> to vector<128x128xbf16>
    %cst_126 = arith.constant dense<0.000000e+00> : vector<24x128xf32>
    %326 = tpu.matmul %323, %325, %cst_126 {dimension_numbers = #tpu.dot_dimension_numbers<[1], [0], [0], [1], [0, 0, 1, 1], [], []>} : vector<24x128xbf16>, vector<128x128xbf16>, vector<24x128xf32> -> vector<24x128xf32>
    %327 = arith.addf %179, %326 : vector<24x128xf32>
    %328 = arith.mulf %327, %327 : vector<24x128xf32>
    %cst_127 = arith.constant dense<0.000000e+00> : vector<24xf32>
    %329 = vector.multi_reduction <add>, %328, %cst_127 [1] : vector<24x128xf32> to vector<24xf32>
    %330 = vector.shape_cast %329 : vector<24xf32> to vector<24x1xf32>
    %cst_128 = arith.constant 1.280000e+02 : f32
    %331 = vector.broadcast %cst_128 : f32 to vector<24x1xf32>
    %332 = arith.divf %330, %331 : vector<24x1xf32>
    %cst_129 = arith.constant 9.99999997E-7 : f32
    %333 = vector.broadcast %cst_129 : f32 to vector<24x1xf32>
    %334 = arith.addf %332, %333 : vector<24x1xf32>
    %335 = math.rsqrt %334 : vector<24x1xf32>
    %336 = vector.broadcast %335 : vector<24x1xf32> to vector<24x128xf32>
    %337 = arith.mulf %327, %336 : vector<24x128xf32>
    %338 = arith.truncf %337 : vector<24x128xf32> to vector<24x128xbf16>
    %c1_130 = arith.constant 1 : index
    %c0_131 = arith.constant 0 : index
    %c1536_132 = arith.constant 1536 : index
    %339 = vector.load %arg7[%c1_130, %c0_131, %c1536_132] : memref<2x128x2048xbf16, #tpu.memory_space<vmem>>, vector<1x128x512xbf16>
    %340 = vector.shape_cast %339 : vector<1x128x512xbf16> to vector<128x512xbf16>
    %cst_133 = arith.constant dense<0.000000e+00> : vector<24x512xf32>
    %341 = tpu.matmul %338, %340, %cst_133 {dimension_numbers = #tpu.dot_dimension_numbers<[1], [0], [0], [1], [0, 0, 1, 1], [], []>} : vector<24x128xbf16>, vector<128x512xbf16>, vector<24x512xf32> -> vector<24x512xf32>
    %342 = vector.extract_strided_slice %341 {offsets = [0, 0], sizes = [24, 256], strides = [1, 1]} : vector<24x512xf32> to vector<24x256xf32>
    %343 = vector.extract_strided_slice %341 {offsets = [0, 256], sizes = [24, 256], strides = [1, 1]} : vector<24x512xf32> to vector<24x256xf32>
    %344 = arith.negf %342 : vector<24x256xf32>
    %345 = math.exp %344 : vector<24x256xf32>
    %cst_134 = arith.constant 1.000000e+00 : f32
    %346 = vector.broadcast %cst_134 : f32 to vector<24x256xf32>
    %347 = arith.addf %346, %345 : vector<24x256xf32>
    %348 = arith.divf %346, %347 : vector<24x256xf32>
    %349 = arith.mulf %342, %348 : vector<24x256xf32>
    %350 = arith.mulf %349, %343 : vector<24x256xf32>
    %351 = arith.truncf %350 : vector<24x256xf32> to vector<24x256xbf16>
    %c1_135 = arith.constant 1 : index
    %c0_136 = arith.constant 0 : index
    %c0_137 = arith.constant 0 : index
    %352 = vector.load %arg8[%c1_135, %c0_136, %c0_137] : memref<2x256x128xbf16, #tpu.memory_space<vmem>>, vector<1x256x128xbf16>
    %353 = vector.shape_cast %352 : vector<1x256x128xbf16> to vector<256x128xbf16>
    %cst_138 = arith.constant dense<0.000000e+00> : vector<24x128xf32>
    %354 = tpu.matmul %351, %353, %cst_138 {dimension_numbers = #tpu.dot_dimension_numbers<[1], [0], [0], [1], [0, 0, 1, 1], [], []>} : vector<24x256xbf16>, vector<256x128xbf16>, vector<24x128xf32> -> vector<24x128xf32>
    %355 = arith.addf %327, %354 : vector<24x128xf32>
    %c0_139 = arith.constant 0 : index
    %c0_140 = arith.constant 0 : index
    %356 = vector.load %arg10[%c0_139, %c0_140] : memref<24x128xf32, #tpu.memory_space<vmem>>, vector<24x128xf32>
    tpu.vector_store %arg10[%c0_139, %c0_140], %355 {strides = array<i32>} : memref<24x128xf32, #tpu.memory_space<vmem>>, vector<24x128xf32>,
    return
  }
  func.func @transform_0(%arg0: i32) -> (i32, i32) {
    %c0_i32 = arith.constant 0 : i32
    %c0_i32_0 = arith.constant 0 : i32
    %c0_i32_1 = arith.constant 0 : i32
    return %c0_i32, %c0_i32_0 : i32, i32
  }
  func.func @transform_1(%arg0: i32) -> (i32, i32, i32) {
    %c0_i32 = arith.constant 0 : i32
    %c0_i32_0 = arith.constant 0 : i32
    %c0_i32_1 = arith.constant 0 : i32
    return %arg0, %c0_i32, %c0_i32_0 : i32, i32, i32
  }
  func.func @transform_2(%arg0: i32) -> (i32, i32) {
    %c0_i32 = arith.constant 0 : i32
    %c0_i32_0 = arith.constant 0 : i32
    %c0_i32_1 = arith.constant 0 : i32
    return %c0_i32, %c0_i32_0 : i32, i32
  }
  func.func @transform_3(%arg0: i32) -> (i32, i32) {
    %c0_i32 = arith.constant 0 : i32
    %c0_i32_0 = arith.constant 0 : i32
    %c0_i32_1 = arith.constant 0 : i32
    return %c0_i32, %c0_i32_0 : i32, i32
  }
  func.func @transform_4(%arg0: i32) -> (i32, i32) {
    %c0_i32 = arith.constant 0 : i32
    %c0_i32_0 = arith.constant 0 : i32
    %c0_i32_1 = arith.constant 0 : i32
    return %c0_i32, %c0_i32_0 : i32, i32
  }
  func.func @transform_5(%arg0: i32) -> (i32, i32) {
    %c0_i32 = arith.constant 0 : i32
    %c0_i32_0 = arith.constant 0 : i32
    %c0_i32_1 = arith.constant 0 : i32
    return %c0_i32, %c0_i32_0 : i32, i32
  }
  func.func @transform_6(%arg0: i32) -> (i32, i32, i32) {
    %c0_i32 = arith.constant 0 : i32
    %c0_i32_0 = arith.constant 0 : i32
    %c0_i32_1 = arith.constant 0 : i32
    return %arg0, %c0_i32, %c0_i32_0 : i32, i32, i32
  }
  func.func @transform_7(%arg0: i32) -> (i32, i32, i32) {
    %c0_i32 = arith.constant 0 : i32
    %c0_i32_0 = arith.constant 0 : i32
    %c0_i32_1 = arith.constant 0 : i32
    return %arg0, %c0_i32, %c0_i32_0 : i32, i32, i32
  }
  func.func @transform_8(%arg0: i32) -> (i32, i32, i32) {
    %c0_i32 = arith.constant 0 : i32
    %c0_i32_0 = arith.constant 0 : i32
    %c0_i32_1 = arith.constant 0 : i32
    return %arg0, %c0_i32, %c0_i32_0 : i32, i32, i32
  }
}

</mosaic_0001>

<bundles_post_ra>
// kernel: tile.19
= control target key start
LH: loop header
LB: loop body
LE: loop exit
PB: predicated region body
PF: predicated region fallthrough
CT: control target
= control target key end

     0   :  { %vm122_vm0 = vcmask 1047556   ;;  %vm124_vm1 = vcmask 261120   ;;  %s297_s25 = smov 64   ;;  %s298_s3 = smov 32   ;;  %vm152_vm2 = vcmask 1048320   ;;  %vm184_vm3 = vcmask 785920   ;;  %s432_s0 = inlined_call_operand.vmem [shape: f32[24,4,32], index: 0, kind: input, shape index: {}]   ;;  %s433_s1 = inlined_call_operand.vmem [shape: f32[24,128], index: 1, kind: output, shape index: {}]  }
   0x1   :  { %v278_v0 = vld [vmem:[%s432_s0 + $0x1c] sm:$0xf]  ;;  %v279_v1 = vld [vmem:[%s432_s0 + $0x18] sm:$0xf]  ;;  %v280_v2 = vld [vmem:[%s432_s0 + $0x14] sm:$0xf] }
   0x2   :  { %88 = vst [vmem:[#allocation0 + $0x38] sm:$0xf] %v278_v0  ;;  %93 = vst [vmem:[#allocation0 + $0x30] sm:$0xf] %v279_v1  ;;  %v281_v3 = vld [vmem:[%s432_s0 + $0x10] sm:$0xf] }
   0x3   :  { %98 = vst [vmem:[#allocation0 + $0x28] sm:$0xf] %v280_v2  ;;  %v282_v4 = vld [vmem:[%s432_s0 + $0xc] sm:$0xf]  ;;  %v283_v5 = vld [vmem:[%s432_s0 + $0x8] sm:$0xf] }
   0x4   :  { %103 = vst [vmem:[#allocation0 + $0x20] sm:$0xf] %v281_v3  ;;  %108 = vst [vmem:[#allocation0 + $0x18] sm:$0xf] %v282_v4  ;;  %v284_v6 = vld [vmem:[%s432_s0 + $0x4] sm:$0xf] }
   0x5   :  { %113 = vst [vmem:[#allocation0 + $0x10] sm:$0xf] %v283_v5  ;;  %v118_v7 = vld [vmem:[%s432_s0] sm:$0xf]  ;;  %117 = vst [vmem:[#allocation0 + $0x8] sm:$0xf] %v284_v6 }
   0x6   :  { %119 = vst [vmem:[#allocation0] sm:$0xf] %v118_v7  ;;  %v270_v8 = vld [vmem:[%s432_s0 + $0x3c] sm:$0xf]  ;;  %v271_v9 = vld [vmem:[%s432_s0 + $0x38] sm:$0xf] }
   0x7   :  { %v272_v10 = vld [vmem:[%s432_s0 + $0x34] sm:$0xf]  ;;  %48 = vst [vmem:[#allocation0 + $0x78] sm:$0xf] %v270_v8  ;;  %53 = vst [vmem:[#allocation0 + $0x70] sm:$0xf] %v271_v9 }
   0x8   :  { %58 = vst [vmem:[#allocation0 + $0x68] sm:$0xf] %v272_v10  ;;  %v273_v11 = vld [vmem:[%s432_s0 + $0x30] sm:$0xf]  ;;  %v274_v12 = vld [vmem:[%s432_s0 + $0x2c] sm:$0xf] }
   0x9   :  { %v275_v13 = vld [vmem:[%s432_s0 + $0x28] sm:$0xf]  ;;  %63 = vst [vmem:[#allocation0 + $0x60] sm:$0xf] %v273_v11  ;;  %68 = vst [vmem:[#allocation0 + $0x58] sm:$0xf] %v274_v12 }
   0xa   :  { %73 = vst [vmem:[#allocation0 + $0x50] sm:$0xf] %v275_v13  ;;  %v276_v14 = vld [vmem:[%s432_s0 + $0x24] sm:$0xf]  ;;  %v277_v15 = vld [vmem:[%s432_s0 + $0x20] sm:$0xf] }
   0xb   :  { %v262_v16 = vld [vmem:[%s432_s0 + $0x5c] sm:$0xf]  ;;  %78 = vst [vmem:[#allocation0 + $0x48] sm:$0xf] %v276_v14  ;;  %83 = vst [vmem:[#allocation0 + $0x40] sm:$0xf] %v277_v15 }
   0xc   :  { %8 = vst [vmem:[#allocation0 + $0xb8] sm:$0xf] %v262_v16  ;;  %v263_v17 = vld [vmem:[%s432_s0 + $0x58] sm:$0xf]  ;;  %v264_v18 = vld [vmem:[%s432_s0 + $0x54] sm:$0xf] }
   0xd   :  { %v265_v19 = vld [vmem:[%s432_s0 + $0x50] sm:$0xf]  ;;  %13 = vst [vmem:[#allocation0 + $0xb0] sm:$0xf] %v263_v17  ;;  %18 = vst [vmem:[#allocation0 + $0xa8] sm:$0xf] %v264_v18 }
   0xe   :  { %23 = vst [vmem:[#allocation0 + $0xa0] sm:$0xf] %v265_v19  ;;  %v266_v20 = vld [vmem:[%s432_s0 + $0x4c] sm:$0xf]  ;;  %v267_v21 = vld [vmem:[%s432_s0 + $0x48] sm:$0xf] }
   0xf   :  { %v268_v22 = vld [vmem:[%s432_s0 + $0x44] sm:$0xf]  ;;  %28 = vst [vmem:[#allocation0 + $0x98] sm:$0xf] %v266_v20  ;;  %33 = vst [vmem:[#allocation0 + $0x90] sm:$0xf] %v267_v21 }
  0x10   :  { %38 = vst [vmem:[#allocation0 + $0x88] sm:$0xf] %v268_v22  ;;  %v269_v23 = vld [vmem:[%s432_s0 + $0x40] sm:$0xf]  ;;  %s296_s0 = smov 96   ;;  %vm216_vm4 = vcmask 523520  }
  0x11   :  { %v147_v24 = vld [vmem:[#allocation0 + $0x3] ss:$8 sm:$0xf0]   ;;  %43 = vst [vmem:[#allocation0 + $0x80] sm:$0xf] %v269_v23 }
  0x12   :  { %v145_v25 = vld [vmem:[#allocation0 + $0x3] ss:$8 sm:$0xf]   ;;  %v189_v29 = vld [vmem:[#allocation0 + $0x42] ss:$8 sm:$0xf0]  }
  0x13   :  { %v149_v26 = vsel %vm122_vm0, %v147_v24, %v145_v25  ;;  %v157_v27 = vld [vmem:[#allocation0 + $0x43] ss:$8 sm:$0xf0]   ;;  %v187_v32 = vld [vmem:[#allocation0 + $0x42] ss:$8 sm:$0xf]  }
  0x14   :  { %150 = vrot.lane.b32.xlu0 %v149_v26, %s296_s0  ;;  %v155_v28 = vld [vmem:[#allocation0 + $0x43] ss:$8 sm:$0xf]   ;;  %v179_v33 = vld [vmem:[#allocation0 + $0x2] ss:$8 sm:$0xf0]   ;;  %v191_v37 = vsel %vm122_vm0, %v189_v29, %v187_v32 }
  0x15   :  { %v159_v30 = vsel %vm122_vm0, %v157_v27, %v155_v28  ;;  %v168_v31 = vld [vmem:[#allocation0 + $0x83] ss:$8 sm:$0xf0]   ;;  %v177_v35 = vld [vmem:[#allocation0 + $0x2] ss:$8 sm:$0xf]  }
  0x16   :  { %v209_v38 = vld [vmem:[#allocation0 + $0x1] ss:$8 sm:$0xf]   ;;  %v200_v41 = vld [vmem:[#allocation0 + $0x82] ss:$8 sm:$0xf0]   ;;  %v181_v44 = vsel %vm122_vm0, %v179_v33, %v177_v35 }
  0x17   :  { %v211_v39 = vld [vmem:[#allocation0 + $0x1] ss:$8 sm:$0xf0]   ;;  %v120_v42 = vld [vmem:[#allocation0] ss:$8 sm:$0xf]  }
  0x18   :  { %160 = vrot.lane.b32.xlu0 %v159_v30, %s296_s0  ;;  %v166_v34 = vld [vmem:[#allocation0 + $0x83] ss:$8 sm:$0xf]   ;;  %v198_v40 = vld [vmem:[#allocation0 + $0x82] ss:$8 sm:$0xf]   ;;  %v213_v51 = vsel %vm122_vm0, %v211_v39, %v209_v38 }
  0x19   :  { %v170_v36 = vsel %vm122_vm0, %v168_v31, %v166_v34  ;;  %v121_v43 = vld [vmem:[#allocation0] ss:$8 sm:$0xf0]   ;;  %v230_v53 = vld [vmem:[#allocation0 + $0x81] ss:$8 sm:$0xf]   ;;  %v202_v55 = vsel %vm122_vm0, %v200_v41, %v198_v40 }
  0x1a   :  { %171 = vrot.lane.b32.xlu1 %v170_v36, %s296_s0  ;;  %v123_v45 = vsel %vm122_vm0, %v121_v43, %v120_v42  ;;  %v127_v46 = vld [vmem:[#allocation0 + $0x40] ss:$8 sm:$0xf]   ;;  %v232_v54 = vld [vmem:[#allocation0 + $0x81] ss:$8 sm:$0xf0]  }
  0x1b   :  { %v129_v47 = vld [vmem:[#allocation0 + $0x40] ss:$8 sm:$0xf0]   ;;  %125 = vst.msk [vmem:[%s433_s1] sm:$0xff] %vm124_vm1, %v123_v45   ;;  %v234_v58 = vsel %vm122_vm0, %v232_v54, %v230_v53 }
  0x1c   :  { %192 = vrot.lane.b32.xlu0 %v191_v37, %s297_s25  ;;  %v131_v48 = vsel %vm122_vm0, %v129_v47, %v127_v46  ;;  %v136_v49 = vld [vmem:[#allocation0 + $0x80] ss:$8 sm:$0xf]   ;;  %v219_v56 = vld [vmem:[#allocation0 + $0x41] ss:$8 sm:$0xf]  }
  0x1d   :  { %v138_v50 = vld [vmem:[#allocation0 + $0x80] ss:$8 sm:$0xf0]   ;;  %285 = vst.msk [vmem:[%s433_s1 + $0x8] sm:$0xff] %vm124_vm1, %v131_v48  }
  0x1e   :  { %v140_v52 = vsel %vm122_vm0, %v138_v50, %v136_v49  ;;  %182 = vrot.lane.b32.xlu1 %v181_v44, %s297_s25  ;;  %v221_v57 = vld [vmem:[#allocation0 + $0x41] ss:$8 sm:$0xf0]  }
  0x1f   :  { %286 = vst.msk [vmem:[%s433_s1 + $0x10] sm:$0xff] %vm124_vm1, %v140_v52   ;;  %v223_v59 = vsel %vm122_vm0, %v221_v57, %v219_v56 }
  0x20   :  { %214 = vrot.lane.b32.xlu0 %v213_v51, %s298_s3 }
  0x22   :  { %203 = vrot.lane.b32.xlu1 %v202_v55, %s297_s25 }
  0x24   :  { %235 = vrot.lane.b32.xlu0 %v234_v58, %s298_s3 }
  0x26   :  { %224 = vrot.lane.b32.xlu1 %v223_v59, %s298_s3 }
  0x86   :  { %v151_v60 = vpop.permute.xlu0 %150  }
  0x87   :  { %153 = vst.msk [vmem:[%s433_s1] sm:$0xff] %vm152_vm2, %v151_v60  }
  0x8a   :  { %v161_v61 = vpop.permute.xlu0 %160  }
  0x8b   :  { %287 = vst.msk [vmem:[%s433_s1 + $0x8] sm:$0xff] %vm152_vm2, %v161_v61  }
  0x8c   :  { %v172_v62 = vpop.permute.xlu1 %171  }
  0x8d   :  { %288 = vst.msk [vmem:[%s433_s1 + $0x10] sm:$0xff] %vm152_vm2, %v172_v62  }
  0x8e   :  { %v193_v63 = vpop.permute.xlu0 %192  }
  0x8f   :  { %289 = vst.msk [vmem:[%s433_s1 + $0x8] sm:$0xff] %vm184_vm3, %v193_v63  }
  0x90   :  { %v183_v0 = vpop.permute.xlu1 %182  }
  0x91   :  { %185 = vst.msk [vmem:[%s433_s1] sm:$0xff] %vm184_vm3, %v183_v0  }
  0x92   :  { %v215_v1 = vpop.permute.xlu0 %214  }
  0x93   :  { %217 = vst.msk [vmem:[%s433_s1] sm:$0xff] %vm216_vm4, %v215_v1  }
  0x94   :  { %v204_v2 = vpop.permute.xlu1 %203  }
  0x95   :  { %290 = vst.msk [vmem:[%s433_s1 + $0x10] sm:$0xff] %vm184_vm3, %v204_v2  }
  0x96   :  { %v236_v3 = vpop.permute.xlu0 %235  }
  0x97   :  { %292 = vst.msk [vmem:[%s433_s1 + $0x10] sm:$0xff] %vm216_vm4, %v236_v3  }
  0x98   :  { %v225_v4 = vpop.permute.xlu1 %224  }
  0x99   :  { %291 = vst.msk [vmem:[%s433_s1 + $0x8] sm:$0xff] %vm216_vm4, %v225_v4  }

// kernel: encoder_forward.1
= control target key start
LH: loop header
LB: loop body
LE: loop exit
PB: predicated region body
PF: predicated region fallthrough
CT: control target
= control target key end

     0   :  { %13 = vsyncpa [#allocation4], 0  ;;  %s9628_s0 = inlined_call_operand.vmem [shape: f32[24,128], index: 0, kind: input, shape index: {}]   ;;  %s9629_s1 = inlined_call_operand.vmem [shape: f32[4,8,128], index: 1, kind: input, shape index: {}]   ;;  %s9630_s2 = inlined_call_operand.vmem [shape: f32[56,128], index: 2, kind: input, shape index: {}]   ;;  %s9631_s3 = inlined_call_operand.vmem [shape: f32[56,128], index: 3, kind: input, shape index: {}]   ;;  %s9632_s4 = inlined_call_operand.vmem [shape: f32[128,128], index: 4, kind: input, shape index: {}]   ;;  %s9633_s5 = inlined_call_operand.vmem [shape: f32[24,32], index: 5, kind: input, shape index: {}]   ;;  %s9634_s6 = inlined_call_operand.vmem [shape: bf16[4,128,2048], index: 6, kind: input, shape index: {}]   ;;  %s9635_s7 = inlined_call_operand.vmem [shape: bf16[4,256,128], index: 7, kind: input, shape index: {}]   ;;  %s9636_s8 = inlined_call_operand.hbm [shape: f32[4,8,128], index: 8, kind: output, shape index: {}]  }
   0x1   :  { %15 = vsyncpa [#allocation4 + $0x1], 0  ;;  %s8074_s27 = smov 0   ;;  %s8076_s28 = smov 0  }
   0x2   :  { %s8078_s29 = smov 0   ;;  %s8080_s30 = smov 0  }
   0x3 LB: > { %9641 = sst [smem:[#allocation6_spill]] %s8013_s29  ;;  %s8095_s9 = sadd.s32 4294967295, %s8017_s30   ;;  %s8017_s30 = sphi %s8080_s30, %s9649_s30   ;;  %s8013_s29 = sphi %s8078_s29, %s9651_s29   ;;  %s8009_s28 = sphi %s8076_s28, %s9653_s28   ;;  %s8005_s27 = sphi %s8074_s27, %s9652_s27  }
   0x4   : > { %s5962_s10 = sadd.s32 4294967294, %s8017_s30   ;;  %s8099_s11 = sadd.s32 1, %s8017_s30  }
   0x5   : > { %9642 = sst [smem:[#allocation7_spill]] %s8099_s11  ;;  %s211_s12 = sadd.s32 1, %s8013_s29 }
   0x6   : > { %s208_s13 = ssub.s32 %s8017_s30, %s8099_s11  ;;  %p221_p0 = scmp.ne.s32.totalorder %s8013_s29, %s8009_s28 }
   0x7   : > { %p209_p1 = scmp.eq.s32.totalorder %s208_s13, 0  ;;  %p222_p2 = scmp.eq.s32.totalorder %s8095_s9, 1 }
   0x8   : > { %p227_p3 = scmp.ne.s32.totalorder %s8009_s28, %s8005_s27  ;;  %p228_p4 = scmp.eq.s32.totalorder %s5962_s10, 1 }
   0x9   : > { %s8110_s14 = scalar_select %p209_p1, %s8013_s29, %s211_s12  }
   0xa   : > { %p8112_p5 = por %p222_p2, %p221_p0  ;;  %p8116_p6 = por %p228_p4, %p227_p3 }
   0xb   : > { %9643 = sst [smem:[#allocation8_spill]] %s8110_s14  ;;  %p5965_p7 = scmp.ge.s32.totalorder %s8017_s30, 1 }
   0xc   : > { %p290_p8 = scmp.lt.s32.totalorder %s8017_s30, 3 }
   0xe   : > { %p291_p9 = pnand %p5965_p7, %p290_p8 }
   0xf   : > { %s9638_s17 = sand.u32 (!%p291_p9), 1, %s8009_s28   ;;  %s5967_s18 = sshll.u32 (!%p291_p9), %s8095_s9, 1 }
  0x10   : > { %294 = sbr.rel (%p291_p9) target bundleno = 5330 (0x14d2), region = 52  ;;  %s5966_s19 = sshll.u32 (!%p291_p9), %s9638_s17, 4 }
  0x11   : > { %p337_p10 = scmp.lt.s32.totalorder (!%p291_p9), %s5967_s18, 3  ;;  %s8141_s17 = scalar_lea.vmem (!%p291_p9), [#allocation3], %s5966_s19 }
  0x12   : > { %p5975_p11 = scmp.ne.s32.totalorder (!%p291_p9), %s8095_s9, 0 }
  0x17   : > { %s9655_s18 = smov (!%p337_p10, %s5967_s18), 3  ;;  %361 = sbr.rel (%p5975_p11) target bundleno = 30 (0x1e), region = 56 }
  0x18   : > { %s5968_s20 = sshll.u32 %s9655_s18, 3  ;;  %s6557_s21 = sshll.u32 %s9655_s18, 10  ;;  %v362_v0 = vld [vmem:[%s9628_s0] sm:$0xff] (!%p5975_p11)  ;;  %v363_v1 = vld [vmem:[%s9628_s0 + $0x8] sm:$0xff] (!%p5975_p11)  ;;  %v364_v2 = vld [vmem:[%s9628_s0 + $0x10] sm:$0xff] (!%p5975_p11) }
  0x19   : > { %s8129_s24 = scalar_lea.vmem %s9629_s1, %s5968_s20  ;;  %s8134_s10 = scalar_lea.vmem %s9634_s6, %s6557_s21  ;;  %365 = vst [vmem:[#allocation2] sm:$0xff] (!%p5975_p11), %v362_v0  ;;  %366 = vst [vmem:[#allocation2 + $0x8] sm:$0xff] (!%p5975_p11), %v363_v1 }
  0x1a   : > { %s6558_s12 = sshll.u32 %s9655_s18, 7  ;;  %367 = vst [vmem:[#allocation2 + $0x10] sm:$0xff] (!%p5975_p11), %v364_v2 }
  0x1b   : > { %s8139_s29 = scalar_lea.vmem %s9635_s7, %s6558_s12 }
  0x1e PF: > { %v408_v8 = vld [vmem:[%s8134_s10] sm:$0xff]  ;;  %v8019_v10 = vmov 0.0   ;;  %v409_v11 = vld [vmem:[%s8134_s10 + $0x8] sm:$0xf]  ;;  %v8020_v56 = vmov 0   ;;  %vm8021_vm0 = vmmov 0  }
  0x1f   : > { %v410_v9 = vld [vmem:[%s8134_s10 + $0x40] sm:$0xff]  ;;  %6848 = vmatprep.subr.bf16.mxu1 %v8019_v10  ;;  %v411_v14 = vld [vmem:[%s8134_s10 + $0x48] sm:$0xf]  ;;  %600 = vmatprep.mubr.bf16.mxu0 %v8020_v56  ;;  %v649_v0 = vld [vmem:[%s8134_s10 + $0xc] sm:$0xff]  ;;  %vm1425_vm1 = vcmask 261120   ;;  %s8023_s11 = smov 96  }
  0x20   : > { %v8153_v3 = vld [vmem:[#allocation2] sm:$0xff]  ;;  %v8155_v4 = vld [vmem:[#allocation2 + $0x8] sm:$0xff]  ;;  %v5978_v12 = vcombine.high %v408_v8, %v410_v9  ;;  %v5977_v13 = vcombine.low %v408_v8, %v410_v9  ;;  %v5979_v18 = vcombine.low %v409_v11, %v411_v14  ;;  %6864 = vmatprep.mubr.msk.bf16.mxu1 %vm8021_vm0, %v8019_v10  ;;  %vm8460_vm2 = vmpackc.low %vm1425_vm1, %vm1425_vm1  ;;  %s8024_s12 = smov 64   ;;  %s8025_s25 = smov 32   ;;  %vm2442_vm3 = vcmask 523264  }
  0x21   : > { %v8157_v5 = vld [vmem:[#allocation2 + $0x10] sm:$0xff]  ;;  %v383_v6 = vmul.f32 %v8153_v3, %v8153_v3  ;;  %v412_v15 = vld [vmem:[%s8134_s10 + $0x80] sm:$0xff]  ;;  %v384_v17 = vmul.f32 %v8155_v4, %v8155_v4  ;;  %v413_v20 = vld [vmem:[%s8134_s10 + $0x88] sm:$0xf]  ;;  %vm2446_vm4 = vcmask 785408   ;;  %s9648_s22 = sand.u32 1, %s8009_s28  }
  0x22   : > { %v385_v7 = vmul.f32 %v8157_v5, %v8157_v5  ;;  %v414_v16 = vld [vmem:[%s8134_s10 + $0xc0] sm:$0xff]  ;;  %v415_v21 = vld [vmem:[%s8134_s10 + $0xc8] sm:$0xf]  ;;  %568 = vmatprep.subr.bf16.mxu0 %v5978_v12  ;;  %6849 = vmatpush3.bf16.msra.mxu1 %v5979_v18  ;;  %v651_v1 = vld [vmem:[%s8134_s10 + $0x4c] sm:$0xff]  ;;  %v5976_v11 = vmul.f32 -1.442695, %v8157_v5 }
  0x23   : > { %386 = vadd.xlane.f32.xlu0 %v383_v6  ;;  %v5981_v19 = vcombine.high %v412_v15, %v414_v16  ;;  %v416_v22 = vld [vmem:[%s8134_s10 + $0x100] sm:$0xff]  ;;  %v417_v24 = vld [vmem:[%s8134_s10 + $0x108] sm:$0xf]  ;;  %569 = vmatpush1.bf16.msra.mxu0 %v5977_v13  ;;  %v5980_v26 = vcombine.low %v412_v15, %v414_v16  ;;  %v5982_v27 = vcombine.low %v413_v20, %v415_v21  ;;  %s9584_s20 = scalar_lea.sflag [#allocation4], %s9648_s22 }
  0x24   : > { %390 = vadd.xlane.f32.xlu1 %v385_v7  ;;  %v418_v23 = vld [vmem:[%s8134_s10 + $0x140] sm:$0xff]  ;;  %v419_v25 = vld [vmem:[%s8134_s10 + $0x148] sm:$0xf]  ;;  %6850 = vmatprep.subr.bf16.mxu1 %v8019_v10  ;;  %v6001_v6 = vcombine.low %v649_v0, %v651_v1  ;;  %v6002_v9 = vcombine.high %v649_v0, %v651_v1  ;;  %7776 = vpow2.f32 %v5976_v11  ;;  %v670_v0 = vld [vmem:[%s8134_s10 + $0x294] sm:$0xf] }
  0x25   : > { %570 = vmatprep.subr.bf16.mxu0 %v5981_v19  ;;  %v5984_v28 = vcombine.high %v416_v22, %v418_v23  ;;  %v5983_v29 = vcombine.low %v416_v22, %v418_v23  ;;  %v5985_v30 = vcombine.low %v417_v24, %v419_v25  ;;  %v420_v31 = vld [vmem:[%s8134_s10 + $0x180] sm:$0xff]  ;;  %v421_v34 = vld [vmem:[%s8134_s10 + $0x188] sm:$0xf]  ;;  %v672_v1 = vld [vmem:[%s8134_s10 + $0x2d4] sm:$0xf] }
  0x26   : > { %6851 = vmatpush3.bf16.msra.mxu1 %v5982_v27  ;;  %v422_v32 = vld [vmem:[%s8134_s10 + $0x1c0] sm:$0xff]  ;;  %v423_v35 = vld [vmem:[%s8134_s10 + $0x1c8] sm:$0xf]  ;;  %v650_v27 = vld [vmem:[%s8134_s10 + $0x14] sm:$0xf] }
  0x27   : > { %388 = vadd.xlane.f32.xlu0 %v384_v17  ;;  %571 = vmatpush1.bf16.msra.mxu0 %v5980_v26  ;;  %v5987_v33 = vcombine.high %v420_v31, %v422_v32  ;;  %v5986_v36 = vcombine.low %v420_v31, %v422_v32  ;;  %v5988_v37 = vcombine.low %v421_v34, %v423_v35  ;;  %v424_v38 = vld [vmem:[%s8134_s10 + $0x200] sm:$0xff]  ;;  %v425_v41 = vld [vmem:[%s8134_s10 + $0x208] sm:$0xf]  ;;  %v655_v31 = vld [vmem:[%s8134_s10 + $0xcc] sm:$0xff] }
  0x28   : > { %572 = vmatprep.subr.bf16.mxu0 %v5984_v28  ;;  %6852 = vmatprep.subr.bf16.mxu1 %v8019_v10  ;;  %v426_v39 = vld [vmem:[%s8134_s10 + $0x240] sm:$0xff]  ;;  %v427_v42 = vld [vmem:[%s8134_s10 + $0x248] sm:$0xf]  ;;  %v652_v28 = vld [vmem:[%s8134_s10 + $0x54] sm:$0xf] }
  0x29   : > { %v5990_v40 = vcombine.high %v424_v38, %v426_v39  ;;  %v5989_v43 = vcombine.low %v424_v38, %v426_v39  ;;  %v5991_v44 = vcombine.low %v425_v41, %v427_v42  ;;  %v428_v45 = vld [vmem:[%s8134_s10 + $0x280] sm:$0xff]  ;;  %v429_v49 = vld [vmem:[%s8134_s10 + $0x288] sm:$0xf]  ;;  %v6003_v34 = vcombine.low %v650_v27, %v652_v28  ;;  %v656_v38 = vld [vmem:[%s8134_s10 + $0xd4] sm:$0xf] }
  0x2a   : > { %6853 = vmatpush3.bf16.msra.mxu1 %v5985_v30  ;;  %v430_v46 = vld [vmem:[%s8134_s10 + $0x2c0] sm:$0xff]  ;;  %v431_v50 = vld [vmem:[%s8134_s10 + $0x2c8] sm:$0xf]  ;;  %v653_v30 = vld [vmem:[%s8134_s10 + $0x8c] sm:$0xff] }
  0x2b   : > { %573 = vmatpush1.bf16.msra.mxu0 %v5983_v29  ;;  %6854 = vmatprep.subr.bf16.mxu1 %v8019_v10  ;;  %v5993_v47 = vcombine.high %v428_v45, %v430_v46  ;;  %v5992_v48 = vcombine.low %v428_v45, %v430_v46  ;;  %v432_v51 = vld [vmem:[%s8134_s10 + $0x300] sm:$0xff]  ;;  %v5994_v52 = vcombine.low %v429_v49, %v431_v50  ;;  %v433_v54 = vld [vmem:[%s8134_s10 + $0x308] sm:$0xf]  ;;  %v657_v39 = vld [vmem:[%s8134_s10 + $0x10c] sm:$0xff] }
  0x2c   : > { %574 = vmatprep.subr.bf16.mxu0 %v5987_v33  ;;  %v434_v53 = vld [vmem:[%s8134_s10 + $0x340] sm:$0xff]  ;;  %v435_v55 = vld [vmem:[%s8134_s10 + $0x348] sm:$0xf]  ;;  %v658_v42 = vld [vmem:[%s8134_s10 + $0x114] sm:$0xf] }
  0x2d   : > { %v5996_v57 = vcombine.high %v432_v51, %v434_v53  ;;  %v436_v58 = vld [vmem:[%s8134_s10 + $0x380] sm:$0xff]  ;;  %v437_v60 = vld [vmem:[%s8134_s10 + $0x388] sm:$0xf]  ;;  %v5995_v61 = vcombine.low %v432_v51, %v434_v53  ;;  %v5997_v62 = vcombine.low %v433_v54, %v435_v55  ;;  %v663_v45 = vld [vmem:[%s8134_s10 + $0x1cc] sm:$0xff] }
  0x2e   : > { %6855 = vmatpush3.bf16.msra.mxu1 %v5988_v37  ;;  %v438_v59 = vld [vmem:[%s8134_s10 + $0x3c0] sm:$0xff]  ;;  %v439_v63 = vld [vmem:[%s8134_s10 + $0x3c8] sm:$0xf]  ;;  %v7777_v12 = vpop.eup %7776  ;;  %v654_v37 = vld [vmem:[%s8134_s10 + $0x94] sm:$0xf] }
  0x2f   : > { %575 = vmatpush1.bf16.msra.mxu0 %v5986_v36  ;;  %6856 = vmatprep.subr.bf16.mxu1 %v8019_v10  ;;  %v5999_v2 = vcombine.high %v436_v58, %v438_v59  ;;  %v5998_v7 = vcombine.low %v436_v58, %v438_v59  ;;  %v6000_v8 = vcombine.low %v437_v60, %v439_v63  ;;  %v375_v13 = vadd.f32 1.0, %v7777_v12  ;;  %v8213_v15 = vld [vmem:[%s8129_s24] sm:$0xff]  ;;  %v662_v49 = vld [vmem:[%s8134_s10 + $0x194] sm:$0xf]  ;;  %v665_v51 = vld [vmem:[%s8134_s10 + $0x20c] sm:$0xff] }
  0x30   : > { %576 = vmatprep.subr.bf16.mxu0 %v5990_v40  ;;  %v6005_v36 = vcombine.high %v653_v30, %v655_v31  ;;  %v659_v40 = vld [vmem:[%s8134_s10 + $0x14c] sm:$0xff]  ;;  %v664_v50 = vld [vmem:[%s8134_s10 + $0x1d4] sm:$0xf]  ;;  %v896_v27 = vld [vmem:[%s8134_s10 + $0x60] sm:$0xf] }
  0x31   : > { %7778 = vrcp.f32 %v375_v13  ;;  %v6008_v41 = vcombine.high %v657_v39, %v659_v40  ;;  %v6007_v46 = vcombine.low %v657_v39, %v659_v40  ;;  %v6012_v54 = vcombine.low %v662_v49, %v664_v50  ;;  %v668_v58 = vld [vmem:[%s8134_s10 + $0x254] sm:$0xf]  ;;  %v669_v59 = vld [vmem:[%s8134_s10 + $0x28c] sm:$0xff]  ;;  %v897_v28 = vld [vmem:[%s8134_s10 + $0x98] sm:$0xff] }
  0x32   : > { %6857 = vmatpush3.bf16.msra.mxu1 %v5991_v44  ;;  %v661_v44 = vld [vmem:[%s8134_s10 + $0x18c] sm:$0xff]  ;;  %v674_v11 = vld [vmem:[%s8134_s10 + $0x314] sm:$0xf]  ;;  %v908_v49 = vld [vmem:[%s8134_s10 + $0x1e0] sm:$0xf] }
  0x33   : > { %577 = vmatpush1.bf16.msra.mxu0 %v5989_v43  ;;  %6858 = vmatprep.subr.bf16.mxu1 %v8019_v10  ;;  %v660_v43 = vld [vmem:[%s8134_s10 + $0x154] sm:$0xf]  ;;  %v6010_v53 = vcombine.low %v661_v44, %v663_v45  ;;  %v671_v60 = vld [vmem:[%s8134_s10 + $0x2cc] sm:$0xff] }
  0x34   : > { %578 = vmatprep.subr.bf16.mxu0 %v5993_v47  ;;  %v6009_v47 = vcombine.low %v658_v42, %v660_v43  ;;  %v6017_v63 = vcombine.high %v669_v59, %v671_v60  ;;  %v676_v12 = vld [vmem:[%s8134_s10 + $0x354] sm:$0xf]  ;;  %v677_v13 = vld [vmem:[%s8134_s10 + $0x38c] sm:$0xff]  ;;  %v905_v43 = vld [vmem:[%s8134_s10 + $0x198] sm:$0xff] }
  0x36   : > { %6859 = vmatpush3.bf16.msra.mxu1 %v5994_v52  ;;  %v667_v52 = vld [vmem:[%s8134_s10 + $0x24c] sm:$0xff] }
  0x37   : > { %579 = vmatpush1.bf16.msra.mxu0 %v5992_v48  ;;  %6860 = vmatprep.subr.bf16.mxu1 %v8019_v10  ;;  %v6011_v48 = vcombine.high %v661_v44, %v663_v45  ;;  %v6014_v55 = vcombine.high %v665_v51, %v667_v52  ;;  %v907_v44 = vld [vmem:[%s8134_s10 + $0x1d8] sm:$0xff] }
  0x38   : > { %580 = vmatprep.subr.bf16.mxu0 %v5996_v57  ;;  %v666_v57 = vld [vmem:[%s8134_s10 + $0x214] sm:$0xf] }
  0x3a   : > { %6861 = vmatpush3.bf16.msra.mxu1 %v5997_v62  ;;  %v6015_v62 = vcombine.low %v666_v57, %v668_v58  ;;  %v910_v57 = vld [vmem:[%s8134_s10 + $0x220] sm:$0xf] }
  0x3b   : > { %581 = vmatpush1.bf16.msra.mxu0 %v5995_v61  ;;  %6862 = vmatprep.subr.bf16.mxu1 %v8019_v10  ;;  %v7779_v14 = vpop.eup %7778  ;;  %v6013_v61 = vcombine.low %v665_v51, %v667_v52  ;;  %v909_v51 = vld [vmem:[%s8134_s10 + $0x218] sm:$0xff]  ;;  %v912_v58 = vld [vmem:[%s8134_s10 + $0x260] sm:$0xf] }
  0x3c   : > { %582 = vmatprep.subr.bf16.mxu0 %v5999_v2  ;;  %v379_v16 = vsub.f32 1.0, %v7779_v14  ;;  %v378_v17 = vmul.f32 %v7779_v14, %v8213_v15  ;;  %v673_v2 = vld [vmem:[%s8134_s10 + $0x30c] sm:$0xff]  ;;  %v911_v52 = vld [vmem:[%s8134_s10 + $0x258] sm:$0xff] }
  0x3d   : > { %v679_v14 = vld [vmem:[%s8134_s10 + $0x3cc] sm:$0xff] }
  0x3e   : > { %6863 = vmatpush3.bf16.msra.mxu1 %v6000_v8  ;;  %v380_v18 = vmul.f32 %v379_v16, %v8155_v4  ;;  %v6018_v8 = vcombine.low %v670_v0, %v672_v1  ;;  %v914_v0 = vld [vmem:[%s8134_s10 + $0x2a0] sm:$0xf] }
  0x3f   : > { %583 = vmatpush1.bf16.msra.mxu0 %v5998_v7  ;;  %6868 = vmatprep.subr.bf16.mxu1 %v8019_v10  ;;  %v6016_v7 = vcombine.low %v669_v59, %v671_v60  ;;  %v913_v59 = vld [vmem:[%s8134_s10 + $0x298] sm:$0xff]  ;;  %v916_v1 = vld [vmem:[%s8134_s10 + $0x2e0] sm:$0xf] }
  0x40   : > { %812 = vmatprep.subr.bf16.mxu0 %v6002_v9  ;;  %v381_v19 = vadd.f32 %v380_v18, %v378_v17  ;;  %v6021_v17 = vcombine.low %v674_v11, %v676_v12  ;;  %v6023_v18 = vcombine.high %v677_v13, %v679_v14  ;;  %v915_v60 = vld [vmem:[%s8134_s10 + $0x2d8] sm:$0xff]  ;;  %v918_v11 = vld [vmem:[%s8134_s10 + $0x320] sm:$0xf] }
  0x41   : > { %v920_v12 = vld [vmem:[%s8134_s10 + $0x360] sm:$0xf] }
  0x42   : > { %382 = vst [vmem:[%s8141_s17] sm:$0xff] %v381_v19  ;;  %v678_v19 = vld [vmem:[%s8134_s10 + $0x394] sm:$0xf] }
  0xb0   : > { %v387_v20 = vpop.xlane.xlu0 %386 }
  0xb1   : > { %v393_v21 = vmul.f32 0.0078125, %v387_v20  ;;  %v680_v20 = vld [vmem:[%s8134_s10 + $0x3d4] sm:$0xf]  ;;  %v391_v39 = vpop.xlane.xlu1 %390 }
  0xb2   : > { %v395_v42 = vmul.f32 0.0078125, %v391_v39 }
  0xb3   : > { %v396_v22 = vadd.f32 1e-06, %v393_v21  ;;  %v893_v21 = vld [vmem:[%s8134_s10 + $0x18] sm:$0xff] }
  0xb4   : > { %v389_v23 = vpop.xlane.xlu0 %388  ;;  %v398_v50 = vadd.f32 1e-06, %v395_v42  ;;  %v1144_v42 = vld [vmem:[%s8134_s10 + $0x2a4] sm:$0xff] }
  0xb5   : > { %v394_v24 = vmul.f32 0.0078125, %v389_v23  ;;  %7780 = vrsqrt.f32 %v396_v22  ;;  %v895_v22 = vld [vmem:[%s8134_s10 + $0x58] sm:$0xff]  ;;  %v6022_v23 = vcombine.low %v677_v13, %v679_v14 }
  0xb6   : > { %v921_v13 = vld [vmem:[%s8134_s10 + $0x398] sm:$0xff] }
  0xb7   : > { %v397_v25 = vadd.f32 1e-06, %v394_v24  ;;  %v6024_v24 = vcombine.low %v678_v19, %v680_v20  ;;  %v923_v14 = vld [vmem:[%s8134_s10 + $0x3d8] sm:$0xff]  ;;  %v922_v20 = vld [vmem:[%s8134_s10 + $0x3a0] sm:$0xf] }
  0xb8   : > { %v6047_v19 = vcombine.high %v921_v13, %v923_v14 }
  0xb9   : > { %7782 = vrsqrt.f32 %v397_v25  ;;  %v6026_v25 = vcombine.high %v893_v21, %v895_v22 }
  0xba   : > { %7784 = vrsqrt.f32 %v398_v50  ;;  %v1148_v50 = vld [vmem:[%s8134_s10 + $0x3a4] sm:$0xff] }
  0xbf   : > { %v7781_v26 = vpop.eup %7780 }
  0xc0   : > { %v402_v32 = vmul.f32 %v7781_v26, %v8153_v3  ;;  %v6004_v3 = vcombine.low %v653_v30, %v655_v31  ;;  %v894_v26 = vld [vmem:[%s8134_s10 + $0x20] sm:$0xf]  ;;  %v6025_v30 = vcombine.low %v893_v21, %v895_v22  ;;  %v1134_v22 = vld [vmem:[%s8134_s10 + $0x24] sm:$0xff] }
  0xc1   : > { %v6027_v31 = vcombine.low %v894_v26, %v896_v27  ;;  %v924_v21 = vld [vmem:[%s8134_s10 + $0x3e0] sm:$0xf] }
  0xc2   : > { %v6048_v26 = vcombine.low %v922_v20, %v924_v21  ;;  %v1286_v20 = vld [vmem:[%s9632_s4 + $0x78] sm:$0xff] }
  0xc3   : > { %v7783_v29 = vpop.eup %7782 }
  0xc4   : > { %v403_v33 = vmul.f32 %v7783_v29, %v8155_v4  ;;  %v6006_v4 = vcombine.low %v654_v37, %v656_v38  ;;  %v899_v29 = vld [vmem:[%s8134_s10 + $0xd8] sm:$0xff] }
  0xc5   : > { %v901_v37 = vld [vmem:[%s8134_s10 + $0x118] sm:$0xff]  ;;  %v6028_v40 = vcombine.low %v897_v28, %v899_v29 }
  0xc6   : > { %v8224_v35 = vpack.c.bf16 %v403_v33, %v402_v32  ;;  %v6029_v33 = vcombine.high %v897_v28, %v899_v29  ;;  %v903_v38 = vld [vmem:[%s8134_s10 + $0x158] sm:$0xff]  ;;  %v1136_v28 = vld [vmem:[%s8134_s10 + $0xa4] sm:$0xff] }
  0xc7   : > { %v6031_v45 = vcombine.low %v901_v37, %v903_v38  ;;  %v1137_v29 = vld [vmem:[%s8134_s10 + $0xe4] sm:$0xff] }
  0xc8   : > { %601 = vmatmul.mubr.bf16.vlgmr.msra.gmra.mrb[0].mxu0 %v8224_v35  ;;  %6865 = vmatmul.mubr.bf16.vlgmr.msra.gmra.mrb[0].mxu1 %v8224_v35  ;;  %v682_v32 = vrot.slane %v8224_v35, 4  ;;  %v6032_v35 = vcombine.high %v901_v37, %v903_v38  ;;  %v1140_v37 = vld [vmem:[%s8134_s10 + $0x1a4] sm:$0xff] }
  0xc9   : > { %813 = vmatpush1.bf16.msra.mxu0 %v6001_v6  ;;  %6869 = vmatpush3.bf16.msra.mxu1 %v6003_v34  ;;  %v675_v6 = vld [vmem:[%s8134_s10 + $0x34c] sm:$0xff]  ;;  %v898_v34 = vld [vmem:[%s8134_s10 + $0xa0] sm:$0xf]  ;;  %v1141_v38 = vld [vmem:[%s8134_s10 + $0x1e4] sm:$0xff] }
  0xca   : > { %814 = vmatprep.subr.bf16.mxu0 %v6005_v36  ;;  %6870 = vmatprep.subr.bf16.mxu1 %v8019_v10  ;;  %v6020_v9 = vcombine.high %v673_v2, %v675_v6  ;;  %v6019_v16 = vcombine.low %v673_v2, %v675_v6  ;;  %v900_v36 = vld [vmem:[%s8134_s10 + $0xe0] sm:$0xf]  ;;  %v917_v2 = vld [vmem:[%s8134_s10 + $0x318] sm:$0xff] }
  0xcb   : > { %844 = vmatprep.mubr.bf16.mxu0 %v8020_v56  ;;  %6884 = vmatprep.mubr.msk.bf16.mxu1 %vm8021_vm0, %v8019_v10  ;;  %v919_v6 = vld [vmem:[%s8134_s10 + $0x358] sm:$0xff] }
  0xcd   : > { %815 = vmatpush1.bf16.msra.mxu0 %v6004_v3  ;;  %6871 = vmatpush3.bf16.msra.mxu1 %v6006_v4  ;;  %v6030_v3 = vcombine.low %v898_v34, %v900_v36  ;;  %v902_v4 = vld [vmem:[%s8134_s10 + $0x120] sm:$0xf]  ;;  %v6051_v34 = vcombine.low %v1136_v28, %v1137_v29 }
  0xce   : > { %816 = vmatprep.subr.bf16.mxu0 %v6008_v41  ;;  %6872 = vmatprep.subr.bf16.mxu1 %v8019_v10  ;;  %v904_v41 = vld [vmem:[%s8134_s10 + $0x160] sm:$0xf] }
  0xd1   : > { %817 = vmatpush1.bf16.msra.mxu0 %v6007_v46  ;;  %6873 = vmatpush3.bf16.msra.mxu1 %v6009_v47  ;;  %v6033_v46 = vcombine.low %v902_v4, %v904_v41  ;;  %v6035_v47 = vcombine.high %v905_v43, %v907_v44  ;;  %v6055_v4 = vcombine.low %v1140_v37, %v1141_v38 }
  0xd2   : > { %818 = vmatprep.subr.bf16.mxu0 %v6011_v48  ;;  %6874 = vmatprep.subr.bf16.mxu1 %v8019_v10  ;;  %v906_v48 = vld [vmem:[%s8134_s10 + $0x1a0] sm:$0xf] }
  0xd5   : > { %819 = vmatpush1.bf16.msra.mxu0 %v6010_v53  ;;  %6875 = vmatpush3.bf16.msra.mxu1 %v6012_v54  ;;  %v6034_v53 = vcombine.low %v905_v43, %v907_v44  ;;  %v6036_v54 = vcombine.low %v906_v48, %v908_v49  ;;  %v1145_v43 = vld [vmem:[%s8134_s10 + $0x2e4] sm:$0xff] }
  0xd6   : > { %820 = vmatprep.subr.bf16.mxu0 %v6014_v55  ;;  %6876 = vmatprep.subr.bf16.mxu1 %v8019_v10  ;;  %v6038_v55 = vcombine.high %v909_v51, %v911_v52  ;;  %v6059_v48 = vcombine.low %v1144_v42, %v1145_v43 }
  0xd9   : > { %821 = vmatpush1.bf16.msra.mxu0 %v6013_v61  ;;  %6877 = vmatpush3.bf16.msra.mxu1 %v6015_v62  ;;  %v6037_v61 = vcombine.low %v909_v51, %v911_v52  ;;  %v6039_v62 = vcombine.low %v910_v57, %v912_v58  ;;  %v1149_v51 = vld [vmem:[%s8134_s10 + $0x3e4] sm:$0xff] }
  0xda   : > { %822 = vmatprep.subr.bf16.mxu0 %v6017_v63  ;;  %6878 = vmatprep.subr.bf16.mxu1 %v8019_v10  ;;  %v6041_v63 = vcombine.high %v913_v59, %v915_v60  ;;  %v1271_v57 = vld [vmem:[%s9632_s4] sm:$0xff]  ;;  %v1272_v58 = vld [vmem:[%s9632_s4 + $0x8] sm:$0xff] }
  0xdd   : > { %823 = vmatpush1.bf16.msra.mxu0 %v6016_v7  ;;  %6879 = vmatpush3.bf16.msra.mxu1 %v6018_v8  ;;  %v6040_v7 = vcombine.low %v913_v59, %v915_v60  ;;  %v6042_v8 = vcombine.low %v914_v0, %v916_v1  ;;  %v7387_v59 = vpack.c.bf16 %v1272_v58, %v1271_v57  ;;  %v8022_v60 = vmov 0.0|0.0   ;;  %v1276_v0 = vld [vmem:[%s9632_s4 + $0x28] sm:$0xff] }
  0xde   : > { %824 = vmatprep.subr.bf16.mxu0 %v6020_v9  ;;  %6880 = vmatprep.subr.bf16.mxu1 %v8019_v10  ;;  %v6044_v9 = vcombine.high %v917_v2, %v919_v6  ;;  %v1388_v58 = vld [vmem:[%s9630_s2 + $0x8] sm:$0xff] }
  0xe1   : > { %825 = vmatpush1.bf16.msra.mxu0 %v6019_v16  ;;  %6881 = vmatpush3.bf16.msra.mxu1 %v6021_v17  ;;  %v7785_v16 = vpop.eup %7784  ;;  %v6043_v17 = vcombine.low %v917_v2, %v919_v6  ;;  %v1277_v2 = vld [vmem:[%s9632_s4 + $0x30] sm:$0xff]  ;;  %v1278_v6 = vld [vmem:[%s9632_s4 + $0x38] sm:$0xff] }
  0xe2   : > { %826 = vmatprep.subr.bf16.mxu0 %v6023_v18  ;;  %6882 = vmatprep.subr.bf16.mxu1 %v8019_v10  ;;  %v6045_v18 = vcombine.low %v918_v11, %v920_v12  ;;  %v1281_v12 = vld [vmem:[%s9632_s4 + $0x50] sm:$0xff] }
  0xe5   : > { %827 = vmatpush1.bf16.msra.mxu0 %v6022_v23  ;;  %6883 = vmatpush3.bf16.msra.mxu1 %v6024_v24  ;;  %v1135_v23 = vld [vmem:[%s8134_s10 + $0x64] sm:$0xff]  ;;  %v404_v24 = vmul.f32 %v7785_v16, %v8157_v5  ;;  %v6052_v5 = vcombine.high %v1136_v28, %v1137_v29 }
  0xe6   : > { %1053 = vmatprep.subr.bf16.mxu0 %v6026_v25  ;;  %6888 = vmatprep.subr.bf16.mxu1 %v8019_v10  ;;  %v6046_v25 = vcombine.low %v921_v13, %v923_v14  ;;  %v6050_v27 = vcombine.high %v1134_v22, %v1135_v23  ;;  %v1282_v13 = vld [vmem:[%s9632_s4 + $0x58] sm:$0xff]  ;;  %v1283_v16 = vld [vmem:[%s9632_s4 + $0x60] sm:$0xff] }
  0xe7   : > { %v7402_v14 = vpack.c.bf16 %v1282_v13, %v1281_v12 }
  0xe8   : > { %845 = vmatmul.mubr.bf16.vlgmr.msra.gmra.mrb[4].mxu0 %v682_v32  ;;  %6885 = vmatmul.mubr.bf16.vlgmr.msra.gmra.mrb[4].mxu1 %v682_v32  ;;  %v1138_v32 = vld [vmem:[%s8134_s10 + $0x124] sm:$0xff] }
  0xe9   : > { %1054 = vmatpush1.bf16.msra.mxu0 %v6025_v30  ;;  %6889 = vmatpush3.bf16.msra.mxu1 %v6027_v31  ;;  %v406_v30 = vpack.c.bf16 %v404_v24, %v404_v24  ;;  %v6049_v31 = vcombine.low %v1134_v22, %v1135_v23 }
  0xea   : > { %1055 = vmatprep.subr.bf16.mxu0 %v6029_v33  ;;  %6890 = vmatprep.subr.bf16.mxu1 %v8019_v10  ;;  %v1139_v33 = vld [vmem:[%s8134_s10 + $0x164] sm:$0xff] }
  0xeb   : > { %1085 = vmatprep.mubr.bf16.mxu0 %v8020_v56  ;;  %6904 = vmatprep.mubr.msk.bf16.mxu1 %vm8021_vm0, %v8019_v10  ;;  %v6054_v36 = vcombine.high %v1138_v32, %v1139_v33  ;;  %v6053_v39 = vcombine.low %v1138_v32, %v1139_v33 }
  0xed   : > { %1056 = vmatpush1.bf16.msra.mxu0 %v6028_v40  ;;  %6891 = vmatpush3.bf16.msra.mxu1 %v6030_v3  ;;  %v6056_v40 = vcombine.high %v1140_v37, %v1141_v38  ;;  %v1142_v3 = vld [vmem:[%s8134_s10 + $0x224] sm:$0xff] }
  0xee   : > { %1057 = vmatprep.subr.bf16.mxu0 %v6032_v35  ;;  %6892 = vmatprep.subr.bf16.mxu1 %v8019_v10  ;;  %v1143_v35 = vld [vmem:[%s8134_s10 + $0x264] sm:$0xff] }
  0xef   : > { %v6058_v41 = vcombine.high %v1142_v3, %v1143_v35  ;;  %v6057_v44 = vcombine.low %v1142_v3, %v1143_v35 }
  0xf1   : > { %1058 = vmatpush1.bf16.msra.mxu0 %v6031_v45  ;;  %6893 = vmatpush3.bf16.msra.mxu1 %v6033_v46  ;;  %v6060_v45 = vcombine.high %v1144_v42, %v1145_v43  ;;  %v1146_v46 = vld [vmem:[%s8134_s10 + $0x324] sm:$0xff] }
  0xf2   : > { %1059 = vmatprep.subr.bf16.mxu0 %v6035_v47  ;;  %6894 = vmatprep.subr.bf16.mxu1 %v8019_v10  ;;  %v1147_v47 = vld [vmem:[%s8134_s10 + $0x364] sm:$0xff] }
  0xf3   : > { %v6062_v49 = vcombine.high %v1146_v46, %v1147_v47  ;;  %v6061_v52 = vcombine.low %v1146_v46, %v1147_v47 }
  0xf5   : > { %1060 = vmatpush1.bf16.msra.mxu0 %v6034_v53  ;;  %6895 = vmatpush3.bf16.msra.mxu1 %v6036_v54  ;;  %v6064_v53 = vcombine.high %v1148_v50, %v1149_v51  ;;  %v6063_v54 = vcombine.low %v1148_v50, %v1149_v51  ;;  %v1387_v51 = vld [vmem:[%s9630_s2] sm:$0xff] }
  0xf6   : > { %1061 = vmatprep.subr.bf16.mxu0 %v6038_v55  ;;  %6896 = vmatprep.subr.bf16.mxu1 %v8019_v10  ;;  %v407_v55 = vpack.c.bf16 %v8213_v15, %v8213_v15  ;;  %v1273_v15 = vld [vmem:[%s9632_s4 + $0x10] sm:$0xff] }
  0xf9   : > { %1062 = vmatpush1.bf16.msra.mxu0 %v6037_v61  ;;  %6897 = vmatpush3.bf16.msra.mxu1 %v6039_v62  ;;  %v1274_v61 = vld [vmem:[%s9632_s4 + $0x18] sm:$0xff]  ;;  %v1275_v62 = vld [vmem:[%s9632_s4 + $0x20] sm:$0xff] }
  0xfa   : > { %1063 = vmatprep.subr.bf16.mxu0 %v6041_v63  ;;  %6898 = vmatprep.subr.bf16.mxu1 %v8019_v10  ;;  %v7390_v63 = vpack.c.bf16 %v1274_v61, %v1273_v15  ;;  %v7393_v1 = vpack.c.bf16 %v1276_v0, %v1275_v62  ;;  %v1389_v62 = vld [vmem:[%s9630_s2 + $0x10] sm:$0xff] }
  0xfd   : > { %1064 = vmatpush1.bf16.msra.mxu0 %v6040_v7  ;;  %6899 = vmatpush3.bf16.msra.mxu1 %v6042_v8  ;;  %v7396_v7 = vpack.c.bf16 %v1278_v6, %v1277_v2  ;;  %v1279_v8 = vld [vmem:[%s9632_s4 + $0x40] sm:$0xff]  ;;  %v1403_v2 = vld [vmem:[%s9631_s3 + $0x10] sm:$0xff] }
  0xfe   : > { %1065 = vmatprep.subr.bf16.mxu0 %v6044_v9  ;;  %6900 = vmatprep.subr.bf16.mxu1 %v8019_v10  ;;  %v1280_v9 = vld [vmem:[%s9632_s4 + $0x48] sm:$0xff] }
  0xff   : > { %v7399_v11 = vpack.c.bf16 %v1280_v9, %v1279_v8 }
 0x101   : > { %1066 = vmatpush1.bf16.msra.mxu0 %v6043_v17  ;;  %6901 = vmatpush3.bf16.msra.mxu1 %v6045_v18  ;;  %v1284_v17 = vld [vmem:[%s9632_s4 + $0x68] sm:$0xff] }
 0x102   : > { %1067 = vmatprep.subr.bf16.mxu0 %v6047_v19  ;;  %6902 = vmatprep.subr.bf16.mxu1 %v8019_v10  ;;  %v7405_v18 = vpack.c.bf16 %v1284_v17, %v1283_v16  ;;  %v1285_v19 = vld [vmem:[%s9632_s4 + $0x70] sm:$0xff]  ;;  %v1390_v16 = vld [vmem:[%s9630_s2 + $0x18] sm:$0xff] }
 0x103   : > { %v7408_v21 = vpack.c.bf16 %v1286_v20, %v1285_v19  ;;  %v1404_v17 = vld [vmem:[%s9631_s3 + $0x18] sm:$0xff] }
 0x105   : > { %1068 = vmatpush1.bf16.msra.mxu0 %v6046_v25  ;;  %6903 = vmatpush3.bf16.msra.mxu1 %v6048_v26 }
 0x106   : > { %1230 = vmatprep.subr.bf16.mxu0 %v6050_v27  ;;  %7386 = vmatprep.subr.bf16.mxu1 %v8022_v60 }
 0x108   : > { %1086 = vmatmul.mubr.bf16.vlgmr.msra.gmra.mrb[8].mxu0 %v406_v30  ;;  %6905 = vmatmul.mubr.bf16.vlgmr.msra.gmra.mrb[8].mxu1 %v406_v30 }
 0x109   : > { %1231 = vmatpush1.bf16.msra.mxu0 %v6049_v31  ;;  %1262 = vmatprep.mubr.bf16.mxu0 %v8020_v56 }
 0x10a   : > { %1232 = vmatprep.subr.bf16.mxu0 %v6052_v5  ;;  %6940 = vmatprep.mubr.msk.f32.mxu1 %vm8021_vm0, %v8019_v10 }
 0x10b   : > { %7388 = vmatpush3.bf16.msra.mxu1 %v7387_v59  ;;  %v1402_v59 = vld [vmem:[%s9631_s3 + $0x8] sm:$0xff] }
 0x10c   : > { %7389 = vmatprep.subr.bf16.mxu1 %v8022_v60 }
 0x10d   : > { %1233 = vmatpush1.bf16.msra.mxu0 %v6051_v34 }
 0x10e   : > { %1234 = vmatprep.subr.bf16.mxu0 %v6054_v36 }
 0x10f   : > { %7391 = vmatpush3.bf16.msra.mxu1 %v7390_v63 }
 0x110   : > { %7392 = vmatprep.subr.bf16.mxu1 %v8022_v60 }
 0x111   : > { %1235 = vmatpush1.bf16.msra.mxu0 %v6053_v39 }
 0x112   : > { %1236 = vmatprep.subr.bf16.mxu0 %v6056_v40 }
 0x113   : > { %7394 = vmatpush3.bf16.msra.mxu1 %v7393_v1 }
 0x114   : > { %7395 = vmatprep.subr.bf16.mxu1 %v8022_v60 }
 0x115   : > { %1237 = vmatpush1.bf16.msra.mxu0 %v6055_v4 }
 0x116   : > { %1238 = vmatprep.subr.bf16.mxu0 %v6058_v41 }
 0x117   : > { %7397 = vmatpush3.bf16.msra.mxu1 %v7396_v7 }
 0x118   : > { %7398 = vmatprep.subr.bf16.mxu1 %v8022_v60 }
 0x119   : > { %1239 = vmatpush1.bf16.msra.mxu0 %v6057_v44 }
 0x11a   : > { %1240 = vmatprep.subr.bf16.mxu0 %v6060_v45 }
 0x11b   : > { %7400 = vmatpush3.bf16.msra.mxu1 %v7399_v11 }
 0x11c   : > { %7401 = vmatprep.subr.bf16.mxu1 %v8022_v60 }
 0x11d   : > { %1241 = vmatpush1.bf16.msra.mxu0 %v6059_v48 }
 0x11e   : > { %1242 = vmatprep.subr.bf16.mxu0 %v6062_v49 }
 0x11f   : > { %7403 = vmatpush3.bf16.msra.mxu1 %v7402_v14 }
 0x120   : > { %7404 = vmatprep.subr.bf16.mxu1 %v8022_v60 }
 0x121   : > { %1243 = vmatpush1.bf16.msra.mxu0 %v6061_v52  ;;  %v1401_v52 = vld [vmem:[%s9631_s3] sm:$0xff] }
 0x122   : > { %1244 = vmatprep.subr.bf16.mxu0 %v6064_v53 }
 0x123   : > { %7406 = vmatpush3.bf16.msra.mxu1 %v7405_v18 }
 0x124   : > { %7407 = vmatprep.subr.bf16.mxu1 %v8022_v60 }
 0x125   : > { %1245 = vmatpush1.bf16.msra.mxu0 %v6063_v54 }
 0x126   : > { %7410 = vmatprep.subr.bf16.mxu0 %v8022_v60 }
 0x127   : > { %7409 = vmatpush3.bf16.msra.mxu1 %v7408_v21 }
 0x128   : > { %1263 = vmatmul.mubr.bf16.vlgmr.msra.gmra.mrb[12].mxu0 %v407_v55  ;;  %7424 = vmatprep.subr.bf16.mxu1 %v8022_v60 }
 0x129   : > { %6969 = vmatprep.mubr.msk.f32.mxu0 %vm8021_vm0, %v8019_v10 }
 0x19b   : > { %v8390_v22 = vpop.f32.mrb[0].mxu0  ;;  %v8392_v23 = vpop.f32.mrb[0].mxu1 }
 0x19c   : > { %v604_v24 = vpop.f32.mrb[1].mxu0  ;;  %v6866_v25 = vpop.f32.mrb[1].mxu1  ;;  %v1396_v7 = vmul.f32 %v1389_v62, %v8390_v22 }
 0x19d   : > { %v606_v26 = vpop.f32.mrb[2].mxu0  ;;  %v646_v27 = vpop.f32.mrb[2].mxu1  ;;  %v1395_v63 = vmul.f32 %v1388_v58, %v604_v24  ;;  %v1405_v25 = vld [vmem:[%s9631_s3 + $0x20] sm:$0xff] }
 0x19e   : > { %v607_v28 = vpop.f32.mrb[3].mxu0  ;;  %v6867_v29 = vpop.f32.mrb[3].mxu1 }
 0x1bb   : > { %v8394_v30 = vpop.f32.mrb[4].mxu0  ;;  %v8396_v31 = vpop.f32.mrb[4].mxu1 }
 0x1bc   : > { %v8398_v5 = vpop.f32.mrb[5].mxu0  ;;  %v6886_v32 = vpop.f32.mrb[5].mxu1  ;;  %v1397_v20 = vmul.f32 %v1390_v16, %v8394_v30 }
 0x1bd   : > { %v850_v33 = vpop.f32.mrb[6].mxu0  ;;  %v890_v34 = vpop.f32.mrb[6].mxu1 }
 0x1be   : > { %v851_v36 = vpop.f32.mrb[7].mxu0  ;;  %v6887_v37 = vpop.f32.mrb[7].mxu1  ;;  %v1406_v33 = vld [vmem:[%s9631_s3 + $0x28] sm:$0xff] }
 0x1db   : > { %v8400_v38 = vpop.f32.mrb[8].mxu0  ;;  %v8402_v39 = vpop.f32.mrb[8].mxu1 }
 0x1dc   : > { %v7422_v40 = vpack.c.bf16 %v8402_v39, %v8396_v31  ;;  %v8406_v3 = vpop.f32.mrb[9].mxu0  ;;  %v6906_v35 = vpop.f32.mrb[9].mxu1  ;;  %v8410_v4 = vpack.i.bf16 %v8402_v39, %v8396_v31 }
 0x1dd   : > { %v1091_v41 = vpop.f32.mrb[10].mxu0  ;;  %v1131_v42 = vpop.f32.mrb[10].mxu1 }
 0x1de   : > { %v1092_v43 = vpop.f32.mrb[11].mxu0  ;;  %v6907_v44 = vpop.f32.mrb[11].mxu1  ;;  %v1407_v42 = vld [vmem:[%s9631_s3 + $0x30] sm:$0xff] }
 0x1fb   : > { %v1264_v45 = vpop.f32.mrb[12].mxu0 }
 0x1fc   : > { %v8412_v46 = vpop.f32.mrb[13].mxu0  ;;  %6941 = vmatmul.mubr.f32.vlgmr.msra.gmra.mrb[12].mxu1 %v1264_v45  ;;  %v1394_v54 = vmul.f32 %v1387_v51, %v1264_v45 }
 0x1fd   : > { %v7419_v47 = vpack.c.bf16 %v8392_v23, %v8412_v46  ;;  %v1268_v48 = vpop.f32.mrb[14].mxu0  ;;  %6943 = vmatprep.mubr.msk.f32.mxu1 %vm8021_vm0, %v8019_v10  ;;  %v8420_v49 = vpack.i.bf16 %v8392_v23, %v8412_v46 }
 0x1fe   : > { %v1269_v50 = vpop.f32.mrb[15].mxu0 }
 0x200   : > { %6944 = vmatmul.mubr.f32.gmra.mrb[14].mxu1 %v604_v24  ;;  %v1391_v24 = vld [vmem:[%s9630_s2 + $0x20] sm:$0xff] }
 0x201   : > { %6946 = vmatprep.mubr.msk.f32.mxu1 %vm8021_vm0, %v8019_v10  ;;  %v1398_v28 = vmul.f32 %v1391_v24, %v8400_v38  ;;  %v1422_v24 = vld [vmem:[%s9633_s5] sm:$0xff] }
 0x204   : > { %6947 = vmatmul.mubr.f32.gmra.mrb[16].mxu1 %v8390_v22 }
 0x205   : > { %6949 = vmatprep.mubr.msk.f32.mxu1 %vm8021_vm0, %v8019_v10 }
 0x208   : > { %6950 = vmatmul.mubr.f32.gmra.mrb[18].mxu1 %v8394_v30  ;;  %v1392_v30 = vld [vmem:[%s9630_s2 + $0x28] sm:$0xff] }
 0x209   : > { %6952 = vmatprep.mubr.msk.f32.mxu1 %vm8021_vm0, %v8019_v10  ;;  %v1399_v37 = vmul.f32 %v1392_v30, %v8398_v5 }
 0x20c   : > { %6953 = vmatmul.mubr.f32.gmra.mrb[20].mxu1 %v8400_v38  ;;  %v1393_v38 = vld [vmem:[%s9630_s2 + $0x30] sm:$0xff] }
 0x20d   : > { %6955 = vmatprep.mubr.msk.f32.mxu1 %vm8021_vm0, %v8019_v10  ;;  %v1400_v45 = vmul.f32 %v1393_v38, %v8406_v3 }
 0x210   : > { %6956 = vmatmul.mubr.f32.gmra.mrb[22].mxu1 %v8398_v5 }
 0x211   : > { %6958 = vmatprep.mubr.msk.f32.mxu1 %vm8021_vm0, %v8019_v10 }
 0x214   : > { %6959 = vmatmul.mubr.f32.gmra.mrb[24].mxu1 %v8406_v3 }
 0x215   : > { %7003 = vmatprep.mubr.msk.f32.mxu1 %vm8021_vm0, %v8019_v10 }
 0x2cf   : > { %v1353_v53 = vpop.f32.mrb[12].mxu1 }
 0x2d0   : > { %v1408_v55 = vmul.f32 %v1401_v52, %v1353_v53  ;;  %v6942_v57 = vpop.f32.mrb[13].mxu1 }
 0x2d2   : > { %v1415_v15 = vadd.f32 %v1408_v55, %v1394_v54 }
 0x2d3   : > { %v1358_v61 = vpop.f32.mrb[14].mxu1 }
 0x2d4   : > { %v1409_v0 = vmul.f32 %v1402_v59, %v1358_v61  ;;  %v6945_v1 = vpop.f32.mrb[15].mxu1 }
 0x2d6   : > { %v1416_v6 = vadd.f32 %v1409_v0, %v1395_v63 }
 0x2d7   : > { %v1363_v8 = vpop.f32.mrb[16].mxu1 }
 0x2d8   : > { %v7411_v11 = vpack.c.bf16 %v1416_v6, %v1415_v15  ;;  %v1410_v12 = vmul.f32 %v1403_v2, %v1363_v8  ;;  %v6948_v13 = vpop.f32.mrb[17].mxu1  ;;  %v7594_v14 = vpack.i.bf16 %v1416_v6, %v1415_v15 }
 0x2da   : > { %v1417_v18 = vadd.f32 %v1410_v12, %v1396_v7  ;;  %7595 = vrot.lane.b32.xlu1 %v7594_v14, %s8023_s11  ;;  %7413 = vmatpush3.bf16.xpose.msk.msra.mxu0 %vm8460_vm2, %v7411_v11 }
 0x2db   : > { %v1368_v19 = vpop.f32.mrb[18].mxu1  ;;  %7414 = vmatprep.subr.bf16.mxu0 %v8022_v60 }
 0x2dc   : > { %v1411_v21 = vmul.f32 %v1404_v17, %v1368_v19  ;;  %v6951_v22 = vpop.f32.mrb[19].mxu1 }
 0x2de   : > { %v1418_v26 = vadd.f32 %v1411_v21, %v1397_v20  ;;  %7605 = vrot.lane.b32.xlu1 %v7594_v14, %s8024_s12 }
 0x2df   : > { %v1373_v27 = vpop.f32.mrb[20].mxu1 }
 0x2e0   : > { %v1412_v29 = vmul.f32 %v1405_v25, %v1373_v27  ;;  %v6954_v32 = vpop.f32.mrb[21].mxu1 }
 0x2e2   : > { %v1419_v34 = vadd.f32 %v1412_v29, %v1398_v28  ;;  %1655 = vrot.lane.b32.xlu1 %v1417_v18, %s8023_s11  ;;  %v1423_v29 = vld [vmem:[%s9633_s5 + $0x8] sm:$0xff] }
 0x2e3   : > { %v1378_v36 = vpop.f32.mrb[22].mxu1 }
 0x2e4   : > { %v1413_v35 = vmul.f32 %v1406_v33, %v1378_v36  ;;  %v6957_v41 = vpop.f32.mrb[23].mxu1 }
 0x2e6   : > { %v1420_v43 = vadd.f32 %v1413_v35, %v1399_v37  ;;  %v8587_v37 = vld [vmem:[%s9633_s5 + $0x10] sm:$0xff] }
 0x2e7   : > { %v1383_v44 = vpop.f32.mrb[24].mxu1 }
 0x2e8   : > { %v1414_v48 = vmul.f32 %v1407_v42, %v1383_v44  ;;  %v6960_v50 = vpop.f32.mrb[25].mxu1 }
 0x2ea   : > { %v1421_v51 = vadd.f32 %v1414_v48, %v1400_v45 }
 0x2ec   : > { %v7415_v52 = vpack.c.bf16 %v1421_v51, %v1420_v43  ;;  %v7609_v53 = vpack.i.bf16 %v1421_v51, %v1420_v43 }
 0x2ee   : > { %7610 = vrot.lane.b32.xlu1 %v7609_v53, %s8024_s12  ;;  %7600 = vrot.lane.b32.xlu0 %v7609_v53, %s8023_s11 }
 0x2ef   : > { %7417 = vmatpush3.bf16.xpose.msk.msra.mxu0 %vm8460_vm2, %v7415_v52 }
 0x2f0   : > { %7418 = vmatprep.subr.bf16.mxu0 %v8022_v60 }
 0x2f2   : > { %1659 = vrot.lane.b32.xlu1 %v1419_v34, %s8023_s11  ;;  %1657 = vrot.lane.b32.xlu0 %v1418_v26, %s8023_s11 }
 0x2f6   : > { %6970 = vmatmul.mubr.msk.f32.vlgmr.msra.gmra.mrb[16].mxu0 %vm1425_vm1, %v1417_v18  ;;  %1907 = vrot.lane.b32.xlu1 %v1417_v18, %s8024_s12 }
 0x2f7   : > { %7615 = vrot.lane.b32.xlu0 %v7594_v14, %s8025_s25  ;;  %7420 = vmatpush3.bf16.msra.mxu0 %v7419_v47 }
 0x2f8   : > { %6972 = vmatprep.mubr.msk.f32.mxu0 %vm8021_vm0, %v8019_v10  ;;  %7421 = vmatprep.subr.bf16.mxu0 %v8022_v60 }
 0x2fa   : > { %6973 = vmatmul.mubr.msk.f32.gmra.mrb[18].mxu0 %vm1425_vm1, %v1418_v26  ;;  %1909 = vrot.lane.b32.xlu1 %v1418_v26, %s8024_s12 }
 0x2fb   : > { %7620 = vrot.lane.b32.xlu0 %v7609_v53, %s8025_s25  ;;  %7423 = vmatpush3.bf16.msra.mxu0 %v7422_v40 }
 0x2fc   : > { %6975 = vmatprep.mubr.msk.f32.mxu0 %vm8021_vm0, %v8019_v10  ;;  %7432 = vmatprep.subr.bf16.mxu0 %v8022_v60 }
 0x2fe   : > { %6976 = vmatmul.mubr.msk.f32.gmra.mrb[20].mxu0 %vm1425_vm1, %v1419_v34  ;;  %2155 = vrot.lane.b32.xlu1 %v1417_v18, %s8025_s25 }
 0x2ff   : > { %1911 = vrot.lane.b32.xlu0 %v1419_v34, %s8024_s12  ;;  %6986 = vmatprep.mubr.msk.f32.mxu0 %vm8021_vm0, %v8019_v10 }
 0x302   : > { %2159 = vrot.lane.b32.xlu1 %v1419_v34, %s8025_s25 }
 0x303   : > { %2157 = vrot.lane.b32.xlu0 %v1418_v26, %s8025_s25 }
 0x34c   : > { %v7596_v23 = vpop.permute.xlu1 %7595 }
 0x34d   : > { %v7598_v31 = vunpack.i.h.bf16 %v7596_v23  ;;  %v7597_v5 = vunpack.i.l.bf16 %v7596_v23 }
 0x34f   : > { %v7425_v39 = vpack.c.bf16 %v7598_v31, %v7597_v5 }
 0x350   : > { %v7606_v47 = vpop.permute.xlu1 %7605 }
 0x351   : > { %7427 = vmatpush3.bf16.xpose.msk.msra.mxu1 %vm8460_vm2, %v7425_v39  ;;  %v7608_v55 = vunpack.i.h.bf16 %v7606_v47  ;;  %v7607_v57 = vunpack.i.l.bf16 %v7606_v47 }
 0x352   : > { %7428 = vmatprep.subr.bf16.mxu1 %v8022_v60 }
 0x353   : > { %v7439_v59 = vpack.c.bf16 %v7608_v55, %v7607_v57 }
 0x354   : > { %v1656_v58 = vpop.permute.xlu1 %1655 }
 0x360   : > { %v7601_v40 = vpop.permute.xlu0 %7600  ;;  %v7611_v15 = vpop.permute.xlu1 %7610 }
 0x361   : > { %v7603_v3 = vunpack.i.h.bf16 %v7601_v40  ;;  %v7602_v46 = vunpack.i.l.bf16 %v7601_v40  ;;  %v7613_v62 = vunpack.i.h.bf16 %v7611_v15  ;;  %v7612_v63 = vunpack.i.l.bf16 %v7611_v15 }
 0x363   : > { %v7429_v54 = vpack.c.bf16 %v7603_v3, %v7602_v46  ;;  %v7443_v0 = vpack.c.bf16 %v7613_v62, %v7612_v63 }
 0x364   : > { %v1658_v61 = vpop.permute.xlu0 %1657  ;;  %v1660_v1 = vpop.permute.xlu1 %1659 }
 0x365   : > { %7431 = vmatpush3.bf16.xpose.msk.msra.mxu1 %vm8460_vm2, %v7429_v54 }
 0x366   : > { %7438 = vmatprep.subr.bf16.mxu1 %v8022_v60 }
 0x368   : > { %v1908_v8 = vpop.permute.xlu1 %1907 }
 0x369   : > { %v7616_v2 = vpop.permute.xlu0 %7615 }
 0x36a   : > { %v7618_v6 = vunpack.i.h.bf16 %v7616_v2  ;;  %v7617_v7 = vunpack.i.l.bf16 %v7616_v2 }
 0x36c   : > { %7004 = vmatmul.mubr.msk.f32.vlgmr.msra.gmra.mrb[26].mxu1 %vm1425_vm1, %v1656_v58  ;;  %v7453_v11 = vpack.c.bf16 %v7618_v6, %v7617_v7  ;;  %v1910_v13 = vpop.permute.xlu1 %1909 }
 0x36d   : > { %7441 = vmatpush3.bf16.xpose.msk.msra.mxu1 %vm8460_vm2, %v7439_v59  ;;  %7006 = vmatprep.mubr.msk.f32.mxu1 %vm8021_vm0, %v8019_v10  ;;  %v7621_v12 = vpop.permute.xlu0 %7620 }
 0x36e   : > { %7442 = vmatprep.subr.bf16.mxu1 %v8022_v60  ;;  %v7623_v14 = vunpack.i.h.bf16 %v7621_v12  ;;  %v7622_v16 = vunpack.i.l.bf16 %v7621_v12 }
 0x370   : > { %7007 = vmatmul.mubr.msk.f32.gmra.mrb[28].mxu1 %vm1425_vm1, %v1658_v61  ;;  %v7457_v17 = vpack.c.bf16 %v7623_v14, %v7622_v16  ;;  %v2156_v19 = vpop.permute.xlu1 %2155 }
 0x371   : > { %7009 = vmatprep.mubr.msk.f32.mxu1 %vm8021_vm0, %v8019_v10  ;;  %v1912_v18 = vpop.permute.xlu0 %1911 }
 0x374   : > { %7010 = vmatmul.mubr.msk.f32.gmra.mrb[30].mxu1 %vm1425_vm1, %v1660_v1  ;;  %v2160_v21 = vpop.permute.xlu1 %2159 }
 0x375   : > { %7445 = vmatpush3.bf16.xpose.msk.msra.mxu1 %vm8460_vm2, %v7443_v0  ;;  %7037 = vmatprep.mubr.msk.f32.mxu1 %vm8021_vm0, %v8019_v10  ;;  %v2158_v20 = vpop.permute.xlu0 %2157 }
 0x376   : > { %7452 = vmatprep.subr.bf16.mxu1 %v8022_v60 }
 0x37c   : > { %7038 = vmatmul.mubr.msk.f32.vlgmr.msra.gmra.mrb[32].mxu1 %vm1425_vm1, %v1908_v8 }
 0x37d   : > { %7455 = vmatpush3.bf16.xpose.msk.msra.mxu1 %vm8460_vm2, %v7453_v11  ;;  %7040 = vmatprep.mubr.msk.f32.mxu1 %vm8021_vm0, %v8019_v10 }
 0x37e   : > { %7456 = vmatprep.subr.bf16.mxu1 %v8022_v60 }
 0x380   : > { %7041 = vmatmul.mubr.msk.f32.gmra.mrb[34].mxu1 %vm1425_vm1, %v1910_v13 }
 0x381   : > { %7043 = vmatprep.mubr.msk.f32.mxu1 %vm8021_vm0, %v8019_v10 }
 0x384   : > { %7044 = vmatmul.mubr.msk.f32.gmra.mrb[36].mxu1 %vm1425_vm1, %v1912_v18 }
 0x385   : > { %7459 = vmatpush3.bf16.xpose.msk.msra.mxu1 %vm8460_vm2, %v7457_v17  ;;  %7071 = vmatprep.mubr.msk.f32.mxu1 %vm8021_vm0, %v8019_v10 }
 0x38c   : > { %7072 = vmatmul.mubr.msk.f32.vlgmr.msra.gmra.mrb[38].mxu1 %vm1425_vm1, %v2156_v19 }
 0x38d   : > { %7074 = vmatprep.mubr.msk.f32.mxu1 %vm8021_vm0, %v8019_v10 }
 0x390   : > { %7075 = vmatmul.mubr.msk.f32.gmra.mrb[40].mxu1 %vm1425_vm1, %v2158_v20 }
 0x391   : > { %7077 = vmatprep.mubr.msk.f32.mxu1 %vm8021_vm0, %v8019_v10 }
 0x394   : > { %7078 = vmatmul.mubr.msk.f32.gmra.mrb[42].mxu1 %vm1425_vm1, %v2160_v21 }
 0x3c9   : > { %v1513_v22 = vpop.f32.mrb[16].mxu0 }
 0x3ca   : > { %v1527_v25 = vmul.f32 0.17677669, %v1513_v22  ;;  %v6971_v26 = vpop.f32.mrb[17].mxu0 }
 0x3cc   : > { %v8575_v27 = vadd.f32 %v1527_v25, %v1422_v24 }
 0x3cd   : > { %v1518_v28 = vpop.f32.mrb[18].mxu0 }
 0x3ce   : > { %v1528_v32 = vmul.f32 0.17677669, %v1518_v28  ;;  %v6974_v30 = vpop.f32.mrb[19].mxu0  ;;  %v1533_v33 = vsel %vm1425_vm1, %v8575_v27, -inf }
 0x3cf   : > { %1534 = vmax.xlane.f32.xlu0 %v1533_v33 }
 0x3d0   : > { %v8582_v34 = vadd.f32 %v1528_v32, %v1423_v29 }
 0x3d1   : > { %v1523_v36 = vpop.f32.mrb[20].mxu0 }
 0x3d2   : > { %v1529_v35 = vmul.f32 0.17677669, %v1523_v36  ;;  %v6977_v41 = vpop.f32.mrb[21].mxu0  ;;  %v1536_v38 = vsel %vm1425_vm1, %v8582_v34, -inf }
 0x3d3   : > { %1537 = vmax.xlane.f32.xlu1 %v1536_v38 }
 0x3d4   : > { %v8592_v42 = vadd.f32 %v1529_v35, %v8587_v37 }
 0x3d6   : > { %v1539_v43 = vsel %vm1425_vm1, %v8592_v42, -inf }
 0x3d7   : > { %1540 = vmax.xlane.f32.xlu0 %v1539_v43 }
 0x43f   : > { %v1749_v44 = vpop.f32.mrb[26].mxu1 }
 0x440   : > { %v1763_v45 = vmul.f32 0.17677669, %v1749_v44  ;;  %v7005_v48 = vpop.f32.mrb[27].mxu1 }
 0x442   : > { %v8596_v50 = vadd.f32 %v1763_v45, %v1422_v24 }
 0x443   : > { %v1754_v51 = vpop.f32.mrb[28].mxu1 }
 0x444   : > { %v1764_v52 = vmul.f32 0.17677669, %v1754_v51  ;;  %v7008_v53 = vpop.f32.mrb[29].mxu1  ;;  %v1769_v23 = vsel %vm1425_vm1, %v8596_v50, -inf }
 0x445   : > { %1770 = vmax.xlane.f32.xlu0 %v1769_v23 }
 0x446   : > { %v8600_v31 = vadd.f32 %v1764_v52, %v1423_v29 }
 0x447   : > { %v1759_v5 = vpop.f32.mrb[30].mxu1 }
 0x448   : > { %v1765_v39 = vmul.f32 0.17677669, %v1759_v5  ;;  %v7011_v40 = vpop.f32.mrb[31].mxu1  ;;  %v1772_v3 = vsel %vm1425_vm1, %v8600_v31, -inf }
 0x449   : > { %1773 = vmax.xlane.f32.xlu0 %v1772_v3 }
 0x44a   : > { %v8605_v46 = vadd.f32 %v1765_v39, %v8587_v37 }
 0x44c   : > { %v1775_v47 = vsel %vm1425_vm1, %v8605_v46, -inf }
 0x44d   : > { %1776 = vmax.xlane.f32.xlu1 %v1775_v47 }
 0x44f   : > { %v2001_v54 = vpop.f32.mrb[32].mxu1 }
 0x450   : > { %v2015_v55 = vmul.f32 0.17677669, %v2001_v54  ;;  %v7039_v57 = vpop.f32.mrb[33].mxu1 }
 0x452   : > { %v8609_v58 = vadd.f32 %v2015_v55, %v1422_v24 }
 0x453   : > { %v2006_v59 = vpop.f32.mrb[34].mxu1 }
 0x454   : > { %v2016_v15 = vmul.f32 0.17677669, %v2006_v59  ;;  %v7042_v61 = vpop.f32.mrb[35].mxu1  ;;  %v2021_v62 = vsel %vm1425_vm1, %v8609_v58, -inf }
 0x455   : > { %2022 = vmax.xlane.f32.xlu0 %v2021_v62 }
 0x456   : > { %v8613_v63 = vadd.f32 %v2016_v15, %v1423_v29 }
 0x457   : > { %v2011_v0 = vpop.f32.mrb[36].mxu1 }
 0x458   : > { %v2017_v1 = vmul.f32 0.17677669, %v2011_v0  ;;  %v7045_v2 = vpop.f32.mrb[37].mxu1  ;;  %v2024_v6 = vsel %vm1425_vm1, %v8613_v63, -inf }
 0x459   : > { %2025 = vmax.xlane.f32.xlu1 %v2024_v6 }
 0x45a   : > { %v8618_v7 = vadd.f32 %v2017_v1, %v8587_v37 }
 0x45c   : > { %v2027_v8 = vsel %vm1425_vm1, %v8618_v7, -inf }
 0x45d   : > { %2028 = vmax.xlane.f32.xlu0 %v2027_v8 }
 0x45f   : > { %v2249_v11 = vpop.f32.mrb[38].mxu1 }
 0x460   : > { %v2263_v12 = vmul.f32 0.17677669, %v2249_v11  ;;  %v7073_v13 = vpop.f32.mrb[39].mxu1  ;;  %v1538_v26 = vpop.xlane.xlu1 %1537 }
 0x461   : > { %v1543_v32 = vsub.f32 %v8582_v34, %v1538_v26 }
 0x462   : > { %v8622_v14 = vadd.f32 %v2263_v12, %v1422_v24  ;;  %v1535_v24 = vpop.xlane.xlu0 %1534 }
 0x463   : > { %v2254_v16 = vpop.f32.mrb[40].mxu1  ;;  %v1542_v28 = vsub.f32 %v8575_v27, %v1535_v24  ;;  %v1547_v33 = vmul.f32 1.442695, %v1543_v32 }
 0x464   : > { %v2264_v17 = vmul.f32 0.17677669, %v2254_v16  ;;  %v7076_v18 = vpop.f32.mrb[41].mxu1  ;;  %v2269_v19 = vsel %vm1425_vm1, %v8622_v14, -inf }
 0x465   : > { %2270 = vmax.xlane.f32.xlu1 %v2269_v19  ;;  %v1545_v30 = vmul.f32 1.442695, %v1542_v28 }
 0x466   : > { %v8626_v20 = vadd.f32 %v2264_v17, %v1423_v29  ;;  %v1541_v29 = vpop.xlane.xlu0 %1540 }
 0x467   : > { %v2259_v21 = vpop.f32.mrb[42].mxu1  ;;  %v1544_v36 = vsub.f32 %v8592_v42, %v1541_v29  ;;  %7786 = vpow2.f32 %v1545_v30 }
 0x468   : > { %v7079_v22 = vpop.f32.mrb[43].mxu1  ;;  %v2272_v25 = vsel %vm1425_vm1, %v8626_v20, -inf  ;;  %7788 = vpow2.f32 %v1547_v33  ;;  %v2265_v41 = vmul.f32 0.17677669, %v2259_v21 }
 0x469   : > { %2273 = vmax.xlane.f32.xlu0 %v2272_v25  ;;  %v1549_v35 = vmul.f32 1.442695, %v1544_v36 }
 0x46a   : > { %v8638_v38 = vadd.f32 %v2265_v41, %v8587_v37 }
 0x46b   : > { %7790 = vpow2.f32 %v1549_v35 }
 0x46c   : > { %v2275_v27 = vsel %vm1425_vm1, %v8638_v38, -inf }
 0x471   : > { %v8640_v43 = vpop.eup %7786 }
 0x472   : > { %v8644_v44 = vpop.eup %7788  ;;  %v1551_v42 = vsel %vm1425_vm1, %v8640_v43, 0.0 }
 0x473   : > { %v1554_v34 = vsel %vm1425_vm1, %v8644_v44, 0.0 }
 0x475   : > { %v8650_v45 = vpop.eup %7790 }
 0x476   : > { %7630 = vrot.lane.b32.xlu1 %v8410_v4, %s8023_s11  ;;  %v1557_v37 = vsel %vm1425_vm1, %v8650_v45, 0.0 }
 0x47f   : > { %7625 = vrot.lane.b32.xlu0 %v8420_v49, %s8023_s11 }
 0x49a   : > { %2276 = vmax.xlane.f32.xlu1 %v2275_v27 }
 0x49e   : > { %1555 = vadd.xlane.f32.xlu1 %v1554_v34  ;;  %1552 = vadd.xlane.f32.xlu0 %v1551_v42 }
 0x4a2   : > { %1558 = vadd.xlane.f32.xlu0 %v1557_v37 }
 0x4af   : > { %7640 = vrot.lane.b32.xlu1 %v8410_v4, %s8024_s12 }
 0x4b8   : > { %7635 = vrot.lane.b32.xlu0 %v8420_v49, %s8024_s12 }
 0x4d2   : > { %v1771_v48 = vpop.xlane.xlu0 %1770 }
 0x4d3   : > { %v1778_v51 = vsub.f32 %v8596_v50, %v1771_v48 }
 0x4d5   : > { %v1781_v52 = vmul.f32 1.442695, %v1778_v51 }
 0x4d6   : > { %v1774_v53 = vpop.xlane.xlu0 %1773 }
 0x4d7   : > { %7792 = vpow2.f32 %v1781_v52  ;;  %v1779_v23 = vsub.f32 %v8600_v31, %v1774_v53 }
 0x4d9   : > { %v1783_v5 = vmul.f32 1.442695, %v1779_v23 }
 0x4da   : > { %v1777_v39 = vpop.xlane.xlu1 %1776 }
 0x4db   : > { %7794 = vpow2.f32 %v1783_v5  ;;  %v1780_v40 = vsub.f32 %v8605_v46, %v1777_v39 }
 0x4dd   : > { %v1785_v3 = vmul.f32 1.442695, %v1780_v40 }
 0x4df   : > { %7796 = vpow2.f32 %v1785_v3 }
 0x4e1   : > { %v8661_v47 = vpop.eup %7792 }
 0x4e2   : > { %v2023_v54 = vpop.xlane.xlu0 %2022  ;;  %v1787_v55 = vsel %vm1425_vm1, %v8661_v47, 0.0 }
 0x4e3   : > { %v2030_v50 = vsub.f32 %v8609_v58, %v2023_v54  ;;  %1788 = vadd.xlane.f32.xlu1 %v1787_v55 }
 0x4e5   : > { %v8666_v57 = vpop.eup %7794  ;;  %v2033_v59 = vmul.f32 1.442695, %v2030_v50 }
 0x4e6   : > { %v2026_v31 = vpop.xlane.xlu1 %2025  ;;  %v1790_v15 = vsel %vm1425_vm1, %v8666_v57, 0.0 }
 0x4e7   : > { %7798 = vpow2.f32 %v2033_v59  ;;  %v2031_v46 = vsub.f32 %v8613_v63, %v2026_v31  ;;  %1791 = vadd.xlane.f32.xlu0 %v1790_v15 }
 0x4e9   : > { %v8671_v61 = vpop.eup %7796  ;;  %v2035_v62 = vmul.f32 1.442695, %v2031_v46 }
 0x4ea   : > { %v2029_v0 = vpop.xlane.xlu0 %2028  ;;  %v1793_v1 = vsel %vm1425_vm1, %v8671_v61, 0.0 }
 0x4eb   : > { %7800 = vpow2.f32 %v2035_v62  ;;  %v2032_v58 = vsub.f32 %v8618_v7, %v2029_v0  ;;  %1794 = vadd.xlane.f32.xlu1 %v1793_v1 }
 0x4ed   : > { %v2037_v2 = vmul.f32 1.442695, %v2032_v58 }
 0x4ef   : > { %7802 = vpow2.f32 %v2037_v2 }
 0x4f1   : > { %v8676_v6 = vpop.eup %7798 }
 0x4f2   : > { %v2271_v8 = vpop.xlane.xlu1 %2270  ;;  %v2039_v63 = vsel %vm1425_vm1, %v8676_v6, 0.0 }
 0x4f3   : > { %v2278_v11 = vsub.f32 %v8622_v14, %v2271_v8  ;;  %2040 = vadd.xlane.f32.xlu0 %v2039_v63 }
 0x4f5   : > { %v8681_v12 = vpop.eup %7800  ;;  %v2281_v13 = vmul.f32 1.442695, %v2278_v11 }
 0x4f6   : > { %v2274_v16 = vpop.xlane.xlu0 %2273  ;;  %v2042_v17 = vsel %vm1425_vm1, %v8681_v12, 0.0  ;;  %v7631_v24 = vpop.permute.xlu1 %7630 }
 0x4f7   : > { %7804 = vpow2.f32 %v2281_v13  ;;  %v2279_v7 = vsub.f32 %v8626_v20, %v2274_v16  ;;  %2043 = vadd.xlane.f32.xlu1 %v2042_v17  ;;  %v7633_v37 = vunpack.i.h.bf16 %v7631_v24  ;;  %v7632_v48 = vunpack.i.l.bf16 %v7631_v24 }
 0x4f9   : > { %v8686_v18 = vpop.eup %7802  ;;  %v2283_v19 = vmul.f32 1.442695, %v2279_v7  ;;  %v7436_v23 = vpack.c.bf16 %v7633_v37, %v7632_v48 }
 0x4fa   : > { %v2045_v21 = vsel %vm1425_vm1, %v8686_v18, 0.0  ;;  %v7626_v26 = vpop.permute.xlu0 %7625 }
 0x4fb   : > { %7806 = vpow2.f32 %v2283_v19  ;;  %2046 = vadd.xlane.f32.xlu1 %v2045_v21  ;;  %v7628_v41 = vunpack.i.h.bf16 %v7626_v26  ;;  %v7627_v27 = vunpack.i.l.bf16 %v7626_v26 }
 0x4fd   : > { %v7433_v51 = vpack.c.bf16 %v7628_v41, %v7627_v27 }
 0x501   : > { %v8690_v14 = vpop.eup %7804 }
 0x502   : > { %v2287_v22 = vsel %vm1425_vm1, %v8690_v14, 0.0 }
 0x503   : > { %2288 = vadd.xlane.f32.xlu1 %v2287_v22 }
 0x505   : > { %v8694_v25 = vpop.eup %7806 }
 0x506   : > { %v2290_v20 = vsel %vm1425_vm1, %v8694_v25, 0.0 }
 0x507   : > { %2291 = vadd.xlane.f32.xlu0 %v2290_v20 }
 0x51d   : > { %7645 = vrot.lane.b32.xlu0 %v8420_v49, %s8025_s25 }
 0x527   : > { %v2277_v28 = vpop.xlane.xlu1 %2276 }
 0x528   : > { %v2280_v32 = vsub.f32 %v8638_v38, %v2277_v28 }
 0x52a   : > { %v2285_v29 = vmul.f32 1.442695, %v2280_v32 }
 0x52b   : > { %v1553_v30 = vpop.xlane.xlu0 %1552  ;;  %v1556_v33 = vpop.xlane.xlu1 %1555 }
 0x52c   : > { %7808 = vpow2.f32 %v2285_v29 }
 0x52d   : > { %7810 = vrcp.f32 %v1553_v30 }
 0x52e   : > { %7812 = vrcp.f32 %v1556_v33 }
 0x52f   : > { %v1559_v36 = vpop.xlane.xlu0 %1558 }
 0x530   : > { %7814 = vrcp.f32 %v1559_v36 }
 0x533   : > { %v7636_v5 = vpop.permute.xlu0 %7635 }
 0x534   : > { %v7638_v54 = vunpack.i.h.bf16 %v7636_v5  ;;  %v7637_v55 = vunpack.i.l.bf16 %v7636_v5 }
 0x536   : > { %v8701_v35 = vpop.eup %7808  ;;  %v7447_v15 = vpack.c.bf16 %v7638_v54, %v7637_v55 }
 0x537   : > { %v2293_v49 = vsel %vm1425_vm1, %v8701_v35, 0.0  ;;  %v7811_v34 = vpop.eup %7810 }
 0x538   : > { %2294 = vadd.xlane.f32.xlu1 %v2293_v49  ;;  %v1561_v42 = vmul.f32 %v7811_v34, %v8640_v43  ;;  %v7813_v38 = vpop.eup %7812 }
 0x539   : > { %v1563_v52 = vmul.f32 %v7813_v38, %v8644_v44  ;;  %v7641_v44 = vpop.permute.xlu1 %7640 }
 0x53a   : > { %6987 = vmatmul.mubr.msk.f32.vlgmr.msra.gmra.mrb[22].mxu0 %vm1425_vm1, %v1561_v42  ;;  %v7815_v53 = vpop.eup %7814  ;;  %v7643_v59 = vunpack.i.h.bf16 %v7641_v44  ;;  %v7642_v31 = vunpack.i.l.bf16 %v7641_v44  ;;  %v2455_v44 = vld [vmem:[%s8134_s10 + $0xec] sm:$0xf] }
 0x53b   : > { %7434 = vmatpush3.bf16.msra.mxu0 %v7433_v51  ;;  %6989 = vmatprep.mubr.msk.f32.mxu0 %vm8021_vm0, %v8019_v10  ;;  %v1565_v43 = vmul.f32 %v7815_v53, %v8650_v45  ;;  %v2453_v53 = vld [vmem:[%s8134_s10 + $0x6c] sm:$0xf] }
 0x53c   : > { %7435 = vmatprep.subr.bf16.mxu0 %v8022_v60  ;;  %v7450_v0 = vpack.c.bf16 %v7643_v59, %v7642_v31 }
 0x53e   : > { %6990 = vmatmul.mubr.msk.f32.gmra.mrb[24].mxu0 %vm1425_vm1, %v1563_v52  ;;  %v2452_v52 = vld [vmem:[%s8134_s10 + $0x2c] sm:$0xf] }
 0x53f   : > { %7437 = vmatpush3.bf16.msra.mxu0 %v7436_v23  ;;  %6992 = vmatprep.mubr.msk.f32.mxu0 %vm8021_vm0, %v8019_v10  ;;  %v2454_v23 = vld [vmem:[%s8134_s10 + $0xac] sm:$0xf] }
 0x540   : > { %7446 = vmatprep.subr.bf16.mxu0 %v8022_v60  ;;  %v6106_v5 = vcombine.low %v2454_v23, %v2455_v44  ;;  %v2592_v23 = vld [vmem:[%s8134_s10 + $0x70] sm:$0xff] }
 0x542   : > { %6993 = vmatmul.mubr.msk.f32.gmra.mrb[26].mxu0 %vm1425_vm1, %v1565_v43  ;;  %v6105_v43 = vcombine.low %v2452_v52, %v2453_v53  ;;  %v2590_v53 = vld [vmem:[%s8134_s10 + $0x30] sm:$0xff] }
 0x543   : > { %7020 = vmatprep.mubr.msk.f32.mxu0 %vm8021_vm0, %v8019_v10  ;;  %v6113_v44 = vcombine.low %v2590_v53, %v2592_v23 }
 0x544   : > { %7097 = vmatprep.subr.bf16.mxu1 %v6105_v43 }
 0x545   : > { %7098 = vmatpush3.bf16.msra.mxu1 %v6105_v43  ;;  %v2591_v43 = vld [vmem:[%s8134_s10 + $0x38] sm:$0xff] }
 0x546   : > { %7099 = vmatprep.subr.bf16.mxu1 %v6106_v5 }
 0x549   : > { %7650 = vrot.lane.b32.xlu1 %v8410_v4, %s8025_s25  ;;  %7100 = vmatpush3.bf16.msra.mxu1 %v6106_v5  ;;  %v6114_v5 = vcombine.high %v2590_v53, %v2592_v23  ;;  %v2614_v23 = vld [vmem:[%s8134_s10 + $0x330] sm:$0xff] }
 0x570   : > { %v1789_v39 = vpop.xlane.xlu1 %1788 }
 0x571   : > { %7816 = vrcp.f32 %v1789_v39  ;;  %v2456_v39 = vld [vmem:[%s8134_s10 + $0x12c] sm:$0xf] }
 0x574   : > { %v1792_v40 = vpop.xlane.xlu0 %1791 }
 0x575   : > { %7818 = vrcp.f32 %v1792_v40  ;;  %v2457_v40 = vld [vmem:[%s8134_s10 + $0x16c] sm:$0xf] }
 0x576   : > { %v6107_v55 = vcombine.low %v2456_v39, %v2457_v40  ;;  %v2593_v39 = vld [vmem:[%s8134_s10 + $0x78] sm:$0xff]  ;;  %v2594_v40 = vld [vmem:[%s8134_s10 + $0xb0] sm:$0xff] }
 0x578   : > { %v1795_v3 = vpop.xlane.xlu1 %1794  ;;  %7101 = vmatprep.subr.bf16.mxu1 %v6107_v55 }
 0x579   : > { %7820 = vrcp.f32 %v1795_v3  ;;  %7102 = vmatpush3.bf16.msra.mxu1 %v6107_v55  ;;  %v6116_v55 = vcombine.high %v2591_v43, %v2593_v39 }
 0x57b   : > { %v7817_v45 = vpop.eup %7816 }
 0x57c   : > { %v1797_v50 = vmul.f32 %v7817_v45, %v8661_v47  ;;  %v2458_v45 = vld [vmem:[%s8134_s10 + $0x1ac] sm:$0xf] }
 0x57e   : > { %7021 = vmatmul.mubr.msk.f32.vlgmr.msra.gmra.mrb[28].mxu0 %vm1425_vm1, %v1797_v50  ;;  %v2459_v50 = vld [vmem:[%s8134_s10 + $0x1ec] sm:$0xf] }
 0x57f   : > { %v7819_v46 = vpop.eup %7818  ;;  %7448 = vmatpush3.bf16.msra.mxu0 %v7447_v15  ;;  %7023 = vmatprep.mubr.msk.f32.mxu0 %vm8021_vm0, %v8019_v10 }
 0x580   : > { %v2041_v4 = vpop.xlane.xlu0 %2040  ;;  %7449 = vmatprep.subr.bf16.mxu0 %v8022_v60  ;;  %v1799_v62 = vmul.f32 %v7819_v46, %v8666_v57  ;;  %v6108_v46 = vcombine.low %v2458_v45, %v2459_v50  ;;  %v2595_v50 = vld [vmem:[%s8134_s10 + $0xb8] sm:$0xff] }
 0x581   : > { %7822 = vrcp.f32 %v2041_v4  ;;  %v2460_v4 = vld [vmem:[%s8134_s10 + $0x22c] sm:$0xf] }
 0x582   : > { %7024 = vmatmul.mubr.msk.f32.gmra.mrb[30].mxu0 %vm1425_vm1, %v1799_v62  ;;  %v2461_v62 = vld [vmem:[%s8134_s10 + $0x26c] sm:$0xf]  ;;  %7103 = vmatprep.subr.bf16.mxu1 %v6108_v46 }
 0x583   : > { %v7821_v47 = vpop.eup %7820  ;;  %7451 = vmatpush3.bf16.msra.mxu0 %v7450_v0  ;;  %7026 = vmatprep.mubr.msk.f32.mxu0 %vm8021_vm0, %v8019_v10 }
 0x584   : > { %v2044_v1 = vpop.xlane.xlu1 %2043  ;;  %v1801_v58 = vmul.f32 %v7821_v47, %v8671_v61  ;;  %7460 = vmatprep.subr.bf16.mxu0 %v8022_v60  ;;  %7104 = vmatpush3.bf16.msra.mxu1 %v6108_v46  ;;  %v2600_v46 = vld [vmem:[%s8134_s10 + $0x170] sm:$0xff] }
 0x585   : > { %7824 = vrcp.f32 %v2044_v1  ;;  %v6109_v1 = vcombine.low %v2460_v4, %v2461_v62  ;;  %v2599_v4 = vld [vmem:[%s8134_s10 + $0x138] sm:$0xff] }
 0x586   : > { %7027 = vmatmul.mubr.msk.f32.gmra.mrb[32].mxu0 %vm1425_vm1, %v1801_v58  ;;  %v2462_v58 = vld [vmem:[%s8134_s10 + $0x2ac] sm:$0xf]  ;;  %v2601_v62 = vld [vmem:[%s8134_s10 + $0x178] sm:$0xff] }
 0x587   : > { %7054 = vmatprep.mubr.msk.f32.mxu0 %vm8021_vm0, %v8019_v10  ;;  %7105 = vmatprep.subr.bf16.mxu1 %v6109_v1 }
 0x588   : > { %v2047_v57 = vpop.xlane.xlu1 %2046  ;;  %7106 = vmatpush3.bf16.msra.mxu1 %v6109_v1 }
 0x589   : > { %7826 = vrcp.f32 %v2047_v57  ;;  %v2463_v57 = vld [vmem:[%s8134_s10 + $0x2ec] sm:$0xf] }
 0x58b   : > { %v7823_v2 = vpop.eup %7822 }
 0x58c   : > { %v2049_v8 = vmul.f32 %v7823_v2, %v8676_v6  ;;  %v6110_v2 = vcombine.low %v2462_v58, %v2463_v57  ;;  %v6124_v58 = vcombine.high %v2599_v4, %v2601_v62 }
 0x58e   : > { %7055 = vmatmul.mubr.msk.f32.vlgmr.msra.gmra.mrb[34].mxu0 %vm1425_vm1, %v2049_v8  ;;  %v2464_v8 = vld [vmem:[%s8134_s10 + $0x32c] sm:$0xf]  ;;  %7107 = vmatprep.subr.bf16.mxu1 %v6110_v2 }
 0x58f   : > { %v7825_v63 = vpop.eup %7824  ;;  %7057 = vmatprep.mubr.msk.f32.mxu0 %vm8021_vm0, %v8019_v10  ;;  %7108 = vmatpush3.bf16.msra.mxu1 %v6110_v2  ;;  %v6123_v2 = vcombine.low %v2599_v4, %v2601_v62 }
 0x590   : > { %v2051_v61 = vmul.f32 %v7825_v63, %v8681_v12  ;;  %v2289_v12 = vpop.xlane.xlu1 %2288  ;;  %v2465_v63 = vld [vmem:[%s8134_s10 + $0x36c] sm:$0xf] }
 0x591   : > { %7828 = vrcp.f32 %v2289_v12 }
 0x592   : > { %7058 = vmatmul.mubr.msk.f32.gmra.mrb[36].mxu0 %vm1425_vm1, %v2051_v61  ;;  %v6111_v61 = vcombine.low %v2464_v8, %v2465_v63 }
 0x593   : > { %v7827_v11 = vpop.eup %7826  ;;  %7060 = vmatprep.mubr.msk.f32.mxu0 %vm8021_vm0, %v8019_v10 }
 0x594   : > { %v2292_v13 = vpop.xlane.xlu0 %2291  ;;  %v2053_v16 = vmul.f32 %v7827_v11, %v8686_v18  ;;  %7109 = vmatprep.subr.bf16.mxu1 %v6111_v61  ;;  %v2466_v11 = vld [vmem:[%s8134_s10 + $0x3ac] sm:$0xf] }
 0x595   : > { %7830 = vrcp.f32 %v2292_v13  ;;  %7110 = vmatpush3.bf16.msra.mxu1 %v6111_v61  ;;  %v2467_v13 = vld [vmem:[%s8134_s10 + $0x3ec] sm:$0xf]  ;;  %v7952_v61 = vld [vmem:[#allocation2] sm:$0xff] }
 0x596   : > { %7061 = vmatmul.mubr.msk.f32.gmra.mrb[38].mxu0 %vm1425_vm1, %v2053_v16  ;;  %v6112_v16 = vcombine.low %v2466_v11, %v2467_v13 }
 0x597   : > { %7088 = vmatprep.mubr.msk.f32.mxu0 %vm8021_vm0, %v8019_v10 }
 0x598   : > { %v7646_v6 = vpop.permute.xlu0 %7645  ;;  %7111 = vmatprep.subr.bf16.mxu1 %v6112_v16 }
 0x599   : > { %v7648_v17 = vunpack.i.h.bf16 %v7646_v6  ;;  %v7647_v7 = vunpack.i.l.bf16 %v7646_v6  ;;  %7112 = vmatpush3.bf16.msra.mxu1 %v6112_v16 }
 0x59a   : > { %2833 = vmatprep.subr.bf16.mxu1 %v6116_v55  ;;  %v2618_v55 = vld [vmem:[%s8134_s10 + $0x3b0] sm:$0xff] }
 0x59b   : > { %v7461_v19 = vpack.c.bf16 %v7648_v17, %v7647_v7  ;;  %v7829_v24 = vpop.eup %7828 }
 0x59c   : > { %v2297_v28 = vmul.f32 %v7829_v24, %v8690_v14 }
 0x59d   : > { %7462 = vmatpush3.bf16.msra.mxu0 %v7461_v19 }
 0x59e   : > { %7463 = vmatprep.subr.bf16.mxu0 %v8022_v60 }
 0x59f   : > { %v7831_v32 = vpop.eup %7830 }
 0x5a0   : > { %v2299_v29 = vmul.f32 %v7831_v32, %v8694_v25 }
 0x5c5   : > { %v2295_v21 = vpop.xlane.xlu1 %2294 }
 0x5c6   : > { %7832 = vrcp.f32 %v2295_v21 }
 0x5c9   : > { %v7651_v22 = vpop.permute.xlu1 %7650 }
 0x5ca   : > { %v7653_v20 = vunpack.i.h.bf16 %v7651_v22  ;;  %v7652_v18 = vunpack.i.l.bf16 %v7651_v22 }
 0x5cc   : > { %v7464_v26 = vpack.c.bf16 %v7653_v20, %v7652_v18 }
 0x5ce   : > { %7465 = vmatpush3.bf16.msra.mxu0 %v7464_v26 }
 0x5cf   : > { %2782 = vmatprep.subr.bf16.mxu0 %v6114_v5 }
 0x5d0   : > { %v7833_v30 = vpop.eup %7832 }
 0x5d1   : > { %7089 = vmatmul.mubr.msk.f32.vlgmr.msra.gmra.mrb[40].mxu0 %vm1425_vm1, %v2297_v28  ;;  %v2301_v33 = vmul.f32 %v7833_v30, %v8701_v35 }
 0x5d2   : > { %7091 = vmatprep.mubr.msk.f32.mxu0 %vm8021_vm0, %v8019_v10  ;;  %2783 = vmatpush1.bf16.msra.mxu0 %v6113_v44  ;;  %v2615_v44 = vld [vmem:[%s8134_s10 + $0x338] sm:$0xff] }
 0x5d5   : > { %7092 = vmatmul.mubr.msk.f32.gmra.mrb[42].mxu0 %vm1425_vm1, %v2299_v29 }
 0x5d6   : > { %7094 = vmatprep.mubr.msk.f32.mxu0 %vm8021_vm0, %v8019_v10 }
 0x5d9   : > { %7095 = vmatmul.mubr.msk.f32.gmra.mrb[44].mxu0 %vm1425_vm1, %v2301_v33 }
 0x5da   : > { %2814 = vmatprep.mubr.bf16.mxu0 %v8020_v56 }
 0x60d   : > { %v8759_v14 = vpop.f32.mrb[22].mxu0 }
 0x60e   : > { %v6988_v36 = vpop.f32.mrb[23].mxu0 }
 0x611   : > { %v8761_v41 = vpop.f32.mrb[24].mxu0 }
 0x612   : > { %v6991_v25 = vpop.f32.mrb[25].mxu0 }
 0x615   : > { %v8763_v27 = vpop.f32.mrb[26].mxu0 }
 0x616   : > { %v6994_v49 = vpop.f32.mrb[27].mxu0 }
 0x651   : > { %v1893_v34 = vpop.f32.mrb[28].mxu0 }
 0x652   : > { %v7022_v35 = vpop.f32.mrb[29].mxu0 }
 0x655   : > { %v1898_v42 = vpop.f32.mrb[30].mxu0 }
 0x656   : > { %v7654_v38 = vpack.i.bf16 %v1898_v42, %v1893_v34  ;;  %v7025_v37 = vpop.f32.mrb[31].mxu0 }
 0x658   : > { %7655 = vrot.lane.b32.xlu0 %v7654_v38, %s8025_s25 }
 0x659   : > { %v1903_v48 = vpop.f32.mrb[32].mxu0 }
 0x65a   : > { %2410 = vrot.lane.b32.xlu1 %v1903_v48, %s8025_s25  ;;  %v7028_v51 = vpop.f32.mrb[33].mxu0 }
 0x661   : > { %v2141_v3 = vpop.f32.mrb[34].mxu0 }
 0x662   : > { %v7056_v54 = vpop.f32.mrb[35].mxu0 }
 0x663   : > { %v6115_v54 = vcombine.low %v2591_v43, %v2593_v39  ;;  %v2616_v43 = vld [vmem:[%s8134_s10 + $0x370] sm:$0xff]  ;;  %v2617_v39 = vld [vmem:[%s8134_s10 + $0x378] sm:$0xff] }
 0x664   : > { %v6138_v5 = vcombine.high %v2614_v23, %v2616_v43 }
 0x665   : > { %v2146_v59 = vpop.f32.mrb[36].mxu0 }
 0x666   : > { %v7659_v31 = vpack.i.bf16 %v2146_v59, %v2141_v3  ;;  %v7059_v15 = vpop.f32.mrb[37].mxu0  ;;  %v2596_v3 = vld [vmem:[%s8134_s10 + $0xf0] sm:$0xff]  ;;  %v2597_v59 = vld [vmem:[%s8134_s10 + $0xf8] sm:$0xff] }
 0x667   : > { %v6118_v45 = vcombine.high %v2594_v40, %v2596_v3  ;;  %v6120_v15 = vcombine.high %v2595_v50, %v2597_v59 }
 0x668   : > { %7660 = vrot.lane.b32.xlu0 %v7659_v31, %s8024_s12  ;;  %v2598_v31 = vld [vmem:[%s8134_s10 + $0x130] sm:$0xff] }
 0x669   : > { %v2151_v0 = vpop.f32.mrb[38].mxu0  ;;  %2784 = vmatprep.subr.bf16.mxu0 %v6118_v45  ;;  %v6122_v1 = vcombine.high %v2598_v31, %v2600_v46  ;;  %v6121_v57 = vcombine.low %v2598_v31, %v2600_v46  ;;  %v2620_v45 = vld [vmem:[%s8134_s10 + $0x3f0] sm:$0xff] }
 0x66a   : > { %2422 = vrot.lane.b32.xlu1 %v2151_v0, %s8024_s12  ;;  %v7062_v47 = vpop.f32.mrb[39].mxu0  ;;  %v6117_v0 = vcombine.low %v2594_v40, %v2596_v3  ;;  %v6137_v40 = vcombine.low %v2614_v23, %v2616_v43  ;;  %v6139_v3 = vcombine.low %v2615_v44, %v2617_v39  ;;  %v6142_v31 = vcombine.high %v2618_v55, %v2620_v45 }
 0x66b   : > { %v6119_v47 = vcombine.low %v2595_v50, %v2597_v59  ;;  %v2619_v50 = vld [vmem:[%s8134_s10 + $0x3b8] sm:$0xff]  ;;  %v6141_v59 = vcombine.low %v2618_v55, %v2620_v45 }
 0x66c   : > { %2785 = vmatpush1.bf16.msra.mxu0 %v6117_v0 }
 0x66d   : > { %2786 = vmatprep.subr.bf16.mxu0 %v6122_v1 }
 0x670   : > { %2787 = vmatpush1.bf16.msra.mxu0 %v6121_v57 }
 0x6a4   : > { %v2389_v6 = vpop.f32.mrb[40].mxu0 }
 0x6a5   : > { %v7090_v17 = vpop.f32.mrb[41].mxu0 }
 0x6a8   : > { %v2394_v7 = vpop.f32.mrb[42].mxu0 }
 0x6a9   : > { %v7664_v19 = vpack.i.bf16 %v2394_v7, %v2389_v6  ;;  %v7093_v12 = vpop.f32.mrb[43].mxu0  ;;  %v7953_v6 = vld [vmem:[#allocation2 + $0x10] sm:$0xff]  ;;  %v7954_v7 = vld [vmem:[#allocation2 + $0x8] sm:$0xff] }
 0x6ab   : > { %7665 = vrot.lane.b32.xlu0 %v7664_v19, %s8023_s11 }
 0x6ac   : > { %v2399_v21 = vpop.f32.mrb[44].mxu0 }
 0x6ad   : > { %2434 = vrot.lane.b32.xlu1 %v2399_v21, %s8023_s11  ;;  %v7096_v22 = vpop.f32.mrb[45].mxu0 }
 0x6ca   : > { %v7656_v20 = vpop.permute.xlu0 %7655 }
 0x6cb   : > { %v7658_v26 = vunpack.i.h.bf16 %v7656_v20  ;;  %v7657_v28 = vunpack.i.l.bf16 %v7656_v20  ;;  %v2602_v20 = vld [vmem:[%s8134_s10 + $0x1b0] sm:$0xff] }
 0x6cc   : > { %v2411_v18 = vpop.permute.xlu1 %2410 }
 0x6cd   : > { %v2440_v33 = vsel %vm1425_vm1, %v8761_v41, %v7658_v26  ;;  %v2439_v25 = vsel %vm1425_vm1, %v8759_v14, %v7657_v28  ;;  %v2441_v49 = vsel %vm1425_vm1, %v8763_v27, %v2411_v18  ;;  %v2604_v18 = vld [vmem:[%s8134_s10 + $0x1f0] sm:$0xff]  ;;  %v2605_v28 = vld [vmem:[%s8134_s10 + $0x1f8] sm:$0xff] }
 0x6ce   : > { %v6126_v26 = vcombine.high %v2602_v20, %v2604_v18 }
 0x6d0   : > { %2788 = vmatprep.subr.bf16.mxu0 %v6126_v26  ;;  %v7747_v26 = vld [vmem:[%s8139_s29 + $0x8] sm:$0xff]  }
 0x6da   : > { %v7661_v24 = vpop.permute.xlu0 %7660 }
 0x6db   : > { %v7663_v32 = vunpack.i.h.bf16 %v7661_v24  ;;  %v7662_v29 = vunpack.i.l.bf16 %v7661_v24  ;;  %v2603_v24 = vld [vmem:[%s8134_s10 + $0x1b8] sm:$0xff] }
 0x6dc   : > { %v2423_v30 = vpop.permute.xlu1 %2422 }
 0x6dd   : > { %v2444_v42 = vsel %vm2442_vm3, %v2440_v33, %v7663_v32  ;;  %v2443_v38 = vsel %vm2442_vm3, %v2439_v25, %v7662_v29  ;;  %v2445_v41 = vsel %vm2442_vm3, %v2441_v49, %v2423_v30  ;;  %v6125_v32 = vcombine.low %v2602_v20, %v2604_v18  ;;  %v2606_v33 = vld [vmem:[%s8134_s10 + $0x230] sm:$0xff]  ;;  %v2607_v25 = vld [vmem:[%s8134_s10 + $0x238] sm:$0xff]  ;;  %v7744_v20 = vld [vmem:[%s8139_s29 + $0x40] sm:$0xff]  }
 0x6de   : > { %v6127_v29 = vcombine.low %v2603_v24, %v2605_v28  ;;  %v6128_v30 = vcombine.high %v2603_v24, %v2605_v28  ;;  %v7745_v18 = vld [vmem:[%s8139_s29] sm:$0xff]   ;;  %v7746_v24 = vld [vmem:[%s8139_s29 + $0x48] sm:$0xff]   ;;  %v7748_v28 = vld [vmem:[%s8139_s29 + $0x50] sm:$0xff]  }
 0x6df   : > { %2789 = vmatpush1.bf16.msra.mxu0 %v6125_v32  ;;  %v7749_v32 = vld [vmem:[%s8139_s29 + $0x10] sm:$0xff]  }
 0x71d   : > { %v7666_v36 = vpop.permute.xlu0 %7665 }
 0x71e   : > { %v7668_v34 = vunpack.i.h.bf16 %v7666_v36  ;;  %v7667_v35 = vunpack.i.l.bf16 %v7666_v36  ;;  %v2608_v36 = vld [vmem:[%s8134_s10 + $0x270] sm:$0xff] }
 0x71f   : > { %v2435_v37 = vpop.permute.xlu1 %2434  ;;  %v6130_v49 = vcombine.high %v2606_v33, %v2608_v36 }
 0x720   : > { %v2449_v14 = vsel %vm2446_vm4, %v2445_v41, %v2435_v37  ;;  %v2447_v48 = vsel %vm2446_vm4, %v2443_v38, %v7667_v35  ;;  %v2448_v27 = vsel %vm2446_vm4, %v2444_v42, %v7668_v34  ;;  %v2609_v34 = vld [vmem:[%s8134_s10 + $0x278] sm:$0xff]  ;;  %v6129_v35 = vcombine.low %v2606_v33, %v2608_v36  ;;  %v2610_v41 = vld [vmem:[%s8134_s10 + $0x2b0] sm:$0xff]  ;;  %v7752_v33 = vld [vmem:[%s8139_s29 + $0x60] sm:$0xff]  }
 0x721   : > { %v2451_v51 = vpack.c.bf16 %v2449_v14, %v2449_v14  ;;  %v2450_v52 = vpack.c.bf16 %v2448_v27, %v2447_v48  ;;  %v6131_v42 = vcombine.low %v2607_v25, %v2609_v34  ;;  %v6132_v38 = vcombine.high %v2607_v25, %v2609_v34  ;;  %2790 = vmatprep.subr.bf16.mxu0 %v6130_v49  ;;  %v2612_v37 = vld [vmem:[%s8134_s10 + $0x2f0] sm:$0xff]  ;;  %v2611_v14 = vld [vmem:[%s8134_s10 + $0x2b8] sm:$0xff]  ;;  %v7753_v36 = vld [vmem:[%s8139_s29 + $0x20] sm:$0xff]  }
 0x722   : > { %2791 = vmatpush1.bf16.msra.mxu0 %v6129_v35  ;;  %v6134_v48 = vcombine.high %v2610_v41, %v2612_v37  ;;  %v2613_v27 = vld [vmem:[%s8134_s10 + $0x2f8] sm:$0xff]  ;;  %v7754_v25 = vld [vmem:[%s8139_s29 + $0x68] sm:$0xff]   ;;  %v7756_v34 = vld [vmem:[%s8139_s29 + $0x70] sm:$0xff]  }
 0x723   : > { %7113 = vmatprep.mubr.bf16.mxu1 %v2450_v52  ;;  %v6135_v52 = vcombine.low %v2611_v14, %v2613_v27  ;;  %v6136_v53 = vcombine.high %v2611_v14, %v2613_v27  ;;  %v7755_v49 = vld [vmem:[%s8139_s29 + $0x28] sm:$0xff]   ;;  %v7757_v35 = vld [vmem:[%s8139_s29 + $0x30] sm:$0xff]  }
 0x724   : > { %7114 = vmatmul.mubr.bf16.vlgmr.msra.gmra.mrb[44].mxu1 %v2451_v51  ;;  %v6133_v51 = vcombine.low %v2610_v41, %v2612_v37  ;;  %2792 = vmatprep.subr.bf16.mxu0 %v6134_v48 }
 0x725   : > { %2865 = vmatprep.mubr.bf16.mxu1 %v8020_v56  ;;  %2834 = vmatpush1.bf16.msra.mxu1 %v6115_v54  ;;  %v6140_v54 = vcombine.high %v2615_v44, %v2617_v39 }
 0x726   : > { %2835 = vmatprep.subr.bf16.mxu1 %v6120_v15  ;;  %2793 = vmatpush1.bf16.msra.mxu0 %v6133_v51  ;;  %v2621_v15 = vld [vmem:[%s8134_s10 + $0x3f8] sm:$0xff] }
 0x727   : > { %2794 = vmatprep.subr.bf16.mxu0 %v6138_v5  ;;  %v6143_v46 = vcombine.low %v2619_v50, %v2621_v15  ;;  %v6144_v4 = vcombine.high %v2619_v50, %v2621_v15 }
 0x729   : > { %2836 = vmatpush1.bf16.msra.mxu1 %v6119_v47 }
 0x72a   : > { %2837 = vmatprep.subr.bf16.mxu1 %v6124_v58  ;;  %2795 = vmatpush1.bf16.msra.mxu0 %v6137_v40 }
 0x72b   : > { %2796 = vmatprep.subr.bf16.mxu0 %v6142_v31 }
 0x72d   : > { %2838 = vmatpush1.bf16.msra.mxu1 %v6123_v2 }
 0x72e   : > { %2839 = vmatprep.subr.bf16.mxu1 %v6128_v30  ;;  %2797 = vmatpush1.bf16.msra.mxu0 %v6141_v59  ;;  %v7751_v30 = vld [vmem:[%s8139_s29 + $0x18] sm:$0xff]  }
 0x72f   : > { %6676 = vmatprep.subr.bf16.mxu0 %v7744_v20 }
 0x731   : > { %2840 = vmatpush1.bf16.msra.mxu1 %v6127_v29  ;;  %v7750_v29 = vld [vmem:[%s8139_s29 + $0x58] sm:$0xff]  }
 0x732   : > { %2841 = vmatprep.subr.bf16.mxu1 %v6132_v38  ;;  %v7759_v38 = vld [vmem:[%s8139_s29 + $0x38] sm:$0xff]  }
 0x735   : > { %2842 = vmatpush1.bf16.msra.mxu1 %v6131_v42  ;;  %v7758_v42 = vld [vmem:[%s8139_s29 + $0x78] sm:$0xff]  }
 0x736   : > { %2843 = vmatprep.subr.bf16.mxu1 %v6136_v53 }
 0x739   : > { %2844 = vmatpush1.bf16.msra.mxu1 %v6135_v52 }
 0x73a   : > { %2845 = vmatprep.subr.bf16.mxu1 %v6140_v54 }
 0x73d   : > { %2846 = vmatpush1.bf16.msra.mxu1 %v6139_v3 }
 0x73e   : > { %2847 = vmatprep.subr.bf16.mxu1 %v6144_v4 }
 0x741   : > { %2848 = vmatpush1.bf16.msra.mxu1 %v6143_v46 }
 0x7f7   : > { %v7115_v8 = vpop.f32.mrb[44].mxu1 }
 0x7f8   : > { %v2550_v63 = vpop.f32.mrb[45].mxu1  ;;  %v8814_v17 = vadd.f32 %v7953_v6, %v7115_v8 }
 0x7f9   : > { %v8812_v11 = vadd.f32 %v7952_v61, %v2550_v63  ;;  %v7116_v13 = vpop.f32.mrb[46].mxu1 }
 0x7fa   : > { %v2553_v16 = vpop.f32.mrb[47].mxu1  ;;  %v2569_v22 = vmul.f32 %v8814_v17, %v8814_v17 }
 0x7fb   : > { %v8816_v19 = vadd.f32 %v7954_v7, %v2553_v16  ;;  %v2567_v12 = vmul.f32 %v8812_v11, %v8812_v11 }
 0x7fd   : > { %2570 = vadd.xlane.f32.xlu0 %v2567_v12  ;;  %v2568_v21 = vmul.f32 %v8816_v19, %v8816_v19 }
 0x7ff   : > { %2572 = vadd.xlane.f32.xlu1 %v2568_v21 }
 0x801   : > { %2574 = vadd.xlane.f32.xlu0 %v2569_v22 }
 0x88a   : > { %v2571_v62 = vpop.xlane.xlu0 %2570 }
 0x88b   : > { %v2576_v0 = vmul.f32 0.0078125, %v2571_v62 }
 0x88c   : > { %v2573_v47 = vpop.xlane.xlu1 %2572 }
 0x88d   : > { %v2579_v1 = vadd.f32 1e-06, %v2576_v0  ;;  %v2577_v58 = vmul.f32 0.0078125, %v2573_v47 }
 0x88e   : > { %v2575_v57 = vpop.xlane.xlu0 %2574 }
 0x88f   : > { %7834 = vrsqrt.f32 %v2579_v1  ;;  %v2580_v2 = vadd.f32 1e-06, %v2577_v58  ;;  %v2578_v8 = vmul.f32 0.0078125, %v2575_v57 }
 0x891   : > { %7836 = vrsqrt.f32 %v2580_v2  ;;  %v2581_v63 = vadd.f32 1e-06, %v2578_v8 }
 0x893   : > { %7838 = vrsqrt.f32 %v2581_v63 }
 0x899   : > { %v7835_v61 = vpop.eup %7834 }
 0x89a   : > { %v2585_v16 = vmul.f32 %v7835_v61, %v8812_v11 }
 0x89b   : > { %v7837_v13 = vpop.eup %7836 }
 0x89c   : > { %v2586_v6 = vmul.f32 %v7837_v13, %v8816_v19 }
 0x89d   : > { %v7839_v12 = vpop.eup %7838 }
 0x89e   : > { %v2588_v7 = vpack.c.bf16 %v2586_v6, %v2585_v16  ;;  %v2587_v21 = vmul.f32 %v7839_v12, %v8814_v17 }
 0x8a0   : > { %2815 = vmatmul.mubr.bf16.vlgmr.msra.gmra.mrb[48].mxu0 %v2588_v7  ;;  %2866 = vmatmul.mubr.bf16.vlgmr.msra.gmra.mrb[48].mxu1 %v2588_v7  ;;  %v2589_v22 = vpack.c.bf16 %v2587_v21, %v2587_v21 }
 0x8a1   : > { %2824 = vmatprep.mubr.bf16.mxu0 %v8020_v56  ;;  %2875 = vmatprep.mubr.bf16.mxu1 %v8020_v56 }
 0x8a2   : > { %6677 = vmatpush3.bf16.msra.mxu0 %v7745_v18 }
 0x8a3   : > { %6678 = vmatprep.subr.bf16.mxu0 %v7746_v24 }
 0x8a6   : > { %6679 = vmatpush3.bf16.msra.mxu0 %v7747_v26 }
 0x8a7   : > { %6680 = vmatprep.subr.bf16.mxu0 %v7748_v28 }
 0x8a8   : > { %2825 = vmatmul.mubr.bf16.gmra.mrb[52].mxu0 %v2589_v22  ;;  %2876 = vmatmul.mubr.bf16.gmra.mrb[52].mxu1 %v2589_v22 }
 0x8a9   : > { %3346 = vmatprep.mubr.bf16.mxu1 %v8020_v56 }
 0x8aa   : > { %6681 = vmatpush3.bf16.msra.mxu0 %v7749_v32 }
 0x8ab   : > { %6682 = vmatprep.subr.bf16.mxu0 %v7750_v29 }
 0x8ae   : > { %6683 = vmatpush3.bf16.msra.mxu0 %v7751_v30 }
 0x8af   : > { %6684 = vmatprep.subr.bf16.mxu0 %v7752_v33 }
 0x8b2   : > { %6685 = vmatpush3.bf16.msra.mxu0 %v7753_v36 }
 0x8b3   : > { %6686 = vmatprep.subr.bf16.mxu0 %v7754_v25 }
 0x8b6   : > { %6687 = vmatpush3.bf16.msra.mxu0 %v7755_v49 }
 0x8b7   : > { %6688 = vmatprep.subr.bf16.mxu0 %v7756_v34 }
 0x8ba   : > { %6689 = vmatpush3.bf16.msra.mxu0 %v7757_v35 }
 0x8bb   : > { %6690 = vmatprep.subr.bf16.mxu0 %v7758_v42 }
 0x8be   : > { %6691 = vmatpush3.bf16.msra.mxu0 %v7759_v38  ;;  %v6170_v38 = vld [vmem:[%s8134_s10 + $0x400] sm:$0xff] }
 0x8bf   : > { %7117 = vmatprep.subr.bf16.mxu0 %v8019_v10 }
 0x973   : > { %v2816_v41 = vpop.f32.mrb[48].mxu0  ;;  %v2867_v37 = vpop.f32.mrb[48].mxu1 }
 0x974   : > { %v6145_v14 = vmul.f32 -1.442695, %v2816_v41  ;;  %v2818_v48 = vpop.f32.mrb[49].mxu0  ;;  %v2869_v27 = vpop.f32.mrb[49].mxu1 }
 0x975   : > { %v6146_v51 = vmul.f32 -1.442695, %v2818_v48  ;;  %v2820_v52 = vpop.f32.mrb[50].mxu0  ;;  %v2871_v53 = vpop.f32.mrb[50].mxu1 }
 0x976   : > { %7840 = vpow2.f32 %v6145_v14  ;;  %v6147_v23 = vmul.f32 -1.442695, %v2820_v52  ;;  %v2822_v43 = vpop.f32.mrb[51].mxu0  ;;  %v2873_v44 = vpop.f32.mrb[51].mxu1 }
 0x977   : > { %7842 = vpow2.f32 %v6146_v51  ;;  %v6148_v5 = vmul.f32 -1.442695, %v2822_v43  ;;  %v6174_v51 = vld [vmem:[%s8134_s10 + $0x480] sm:$0xff] }
 0x978   : > { %7844 = vpow2.f32 %v6147_v23 }
 0x979   : > { %7846 = vpow2.f32 %v6148_v5  ;;  %v6178_v5 = vld [vmem:[%s8134_s10 + $0x500] sm:$0xff] }
 0x97b   : > { %v2826_v39 = vpop.f32.mrb[52].mxu0  ;;  %v2877_v40 = vpop.f32.mrb[52].mxu1 }
 0x97c   : > { %v6149_v3 = vmul.f32 -1.442695, %v2826_v39  ;;  %v2828_v54 = vpop.f32.mrb[53].mxu0  ;;  %v2879_v55 = vpop.f32.mrb[53].mxu1 }
 0x97d   : > { %v6150_v45 = vmul.f32 -1.442695, %v2828_v54  ;;  %v2830_v50 = vpop.f32.mrb[54].mxu0  ;;  %v2881_v59 = vpop.f32.mrb[54].mxu1 }
 0x97e   : > { %7848 = vpow2.f32 %v6149_v3  ;;  %v2831_v31 = vpop.f32.mrb[55].mxu0  ;;  %v2882_v15 = vpop.f32.mrb[55].mxu1 }
 0x97f   : > { %7850 = vpow2.f32 %v6150_v45  ;;  %v6181_v45 = vld [vmem:[%s8134_s10 + $0x548] sm:$0xf] }
 0x980   : > { %v7841_v46 = vpop.eup %7840 }
 0x981   : > { %v7843_v4 = vpop.eup %7842  ;;  %v2902_v62 = vadd.f32 1.0, %v7841_v46 }
 0x982   : > { %v7845_v0 = vpop.eup %7844  ;;  %v2903_v47 = vadd.f32 1.0, %v7843_v4 }
 0x983   : > { %v7847_v1 = vpop.eup %7846  ;;  %7852 = vrcp.f32 %v2902_v62  ;;  %v2904_v58 = vadd.f32 1.0, %v7845_v0 }
 0x984   : > { %7854 = vrcp.f32 %v2903_v47  ;;  %v2905_v57 = vadd.f32 1.0, %v7847_v1 }
 0x985   : > { %7856 = vrcp.f32 %v2904_v58 }
 0x986   : > { %7858 = vrcp.f32 %v2905_v57 }
 0x988   : > { %v7849_v2 = vpop.eup %7848 }
 0x989   : > { %v7851_v8 = vpop.eup %7850  ;;  %v2906_v63 = vadd.f32 1.0, %v7849_v2 }
 0x98a   : > { %v2907_v61 = vadd.f32 1.0, %v7851_v8 }
 0x98b   : > { %7860 = vrcp.f32 %v2906_v63 }
 0x98c   : > { %7862 = vrcp.f32 %v2907_v61 }
 0x98d   : > { %v7853_v13 = vpop.eup %7852 }
 0x98e   : > { %v7855_v16 = vpop.eup %7854  ;;  %v2920_v6 = vmul.f32 %v7853_v13, %v2816_v41  ;;  %v6172_v41 = vld [vmem:[%s8134_s10 + $0x440] sm:$0xff] }
 0x98f   : > { %v7857_v7 = vpop.eup %7856  ;;  %v2921_v12 = vmul.f32 %v7855_v16, %v2818_v48  ;;  %v6202_v14 = vcombine.low %v6170_v38, %v6172_v41  ;;  %v6203_v48 = vcombine.high %v6170_v38, %v6172_v41 }
 0x990   : > { %v7859_v21 = vpop.eup %7858  ;;  %v2926_v22 = vmul.f32 %v2920_v6, %v2867_v37  ;;  %v2922_v20 = vmul.f32 %v7857_v7, %v2820_v52  ;;  %v6171_v37 = vld [vmem:[%s8134_s10 + $0x408] sm:$0xf]  ;;  %v6176_v52 = vld [vmem:[%s8134_s10 + $0x4c0] sm:$0xff] }
 0x991   : > { %v2927_v18 = vmul.f32 %v2921_v12, %v2869_v27  ;;  %v2923_v24 = vmul.f32 %v7859_v21, %v2822_v43  ;;  %v6173_v27 = vld [vmem:[%s8134_s10 + $0x448] sm:$0xf]  ;;  %v6206_v23 = vcombine.high %v6174_v51, %v6176_v52  ;;  %3314 = vmatprep.subr.bf16.mxu1 %v6203_v48  ;;  %v6182_v6 = vld [vmem:[%s8134_s10 + $0x580] sm:$0xff] }
 0x992   : > { %v2928_v26 = vmul.f32 %v2922_v20, %v2871_v53  ;;  %v6204_v53 = vcombine.low %v6171_v37, %v6173_v27  ;;  %v6175_v43 = vld [vmem:[%s8134_s10 + $0x488] sm:$0xf]  ;;  %3315 = vmatpush1.bf16.msra.mxu1 %v6202_v14  ;;  %v6184_v7 = vld [vmem:[%s8134_s10 + $0x5c0] sm:$0xff] }
 0x993   : > { %v2929_v28 = vmul.f32 %v2923_v24, %v2873_v44  ;;  %v6177_v44 = vld [vmem:[%s8134_s10 + $0x4c8] sm:$0xf]  ;;  %3316 = vmatprep.subr.bf16.mxu1 %v6206_v23  ;;  %v6212_v12 = vcombine.high %v6182_v6, %v6184_v7  ;;  %v6194_v37 = vld [vmem:[%s8134_s10 + $0x700] sm:$0xff] }
 0x994   : > { %v2932_v32 = vpack.c.bf16 %v2928_v26, %v2926_v22  ;;  %v6207_v3 = vcombine.low %v6175_v43, %v6177_v44  ;;  %v6183_v21 = vld [vmem:[%s8134_s10 + $0x588] sm:$0xf]  ;;  %v6186_v26 = vld [vmem:[%s8134_s10 + $0x600] sm:$0xff] }
 0x995   : > { %v7861_v29 = vpop.eup %7860  ;;  %v2933_v30 = vpack.c.bf16 %v2929_v28, %v2927_v18  ;;  %v6185_v22 = vld [vmem:[%s8134_s10 + $0x5c8] sm:$0xf]  ;;  %v6188_v28 = vld [vmem:[%s8134_s10 + $0x640] sm:$0xff] }
 0x996   : > { %v7863_v33 = vpop.eup %7862  ;;  %v2924_v36 = vmul.f32 %v7861_v29, %v2826_v39  ;;  %v6180_v39 = vld [vmem:[%s8134_s10 + $0x540] sm:$0xff]  ;;  %v6213_v18 = vcombine.low %v6183_v21, %v6185_v22  ;;  %v6187_v29 = vld [vmem:[%s8134_s10 + $0x608] sm:$0xf] }
 0x997   : > { %v2925_v25 = vmul.f32 %v7863_v33, %v2828_v54  ;;  %3096 = vmatprep.mubr.bf16.mxu0 %v2933_v30  ;;  %v6209_v54 = vcombine.high %v6178_v5, %v6180_v39  ;;  %v6208_v50 = vcombine.low %v6178_v5, %v6180_v39  ;;  %v6189_v30 = vld [vmem:[%s8134_s10 + $0x648] sm:$0xf]  ;;  %v6214_v33 = vcombine.low %v6186_v26, %v6188_v28  ;;  %v6196_v14 = vld [vmem:[%s8134_s10 + $0x740] sm:$0xff] }
 0x998   : > { %v2930_v49 = vmul.f32 %v2924_v36, %v2877_v40  ;;  %3097 = vmatmul.mubr.bf16.vlgmr.msra.gmra.mrb[56].mxu0 %v2932_v32  ;;  %v6205_v40 = vcombine.low %v6174_v51, %v6176_v52  ;;  %v6215_v32 = vcombine.high %v6186_v26, %v6188_v28  ;;  %v6216_v36 = vcombine.low %v6187_v29, %v6189_v30  ;;  %v6195_v27 = vld [vmem:[%s8134_s10 + $0x708] sm:$0xf]  ;;  %v6198_v44 = vld [vmem:[%s8134_s10 + $0x780] sm:$0xff]  ;;  %v6234_v26 = vld [vmem:[%s8134_s10 + $0x50c] sm:$0xff] }
 0x999   : > { %v2931_v34 = vmul.f32 %v2925_v25, %v2879_v55  ;;  %7118 = vmatpush3.bf16.msra.mxu0 %v6204_v53  ;;  %v6179_v55 = vld [vmem:[%s8134_s10 + $0x508] sm:$0xf]  ;;  %v6190_v25 = vld [vmem:[%s8134_s10 + $0x680] sm:$0xff]  ;;  %v6221_v48 = vcombine.high %v6194_v37, %v6196_v14  ;;  %v6220_v52 = vcombine.low %v6194_v37, %v6196_v14  ;;  %v6236_v28 = vld [vmem:[%s8134_s10 + $0x54c] sm:$0xff] }
 0x99a   : > { %v2934_v42 = vpack.c.bf16 %v2930_v49, %v2930_v49  ;;  %7119 = vmatprep.subr.bf16.mxu0 %v8019_v10  ;;  %3317 = vmatpush1.bf16.msra.mxu1 %v6205_v40  ;;  %v6210_v59 = vcombine.low %v6179_v55, %v6181_v45  ;;  %v6192_v49 = vld [vmem:[%s8134_s10 + $0x6c0] sm:$0xff]  ;;  %v6197_v51 = vld [vmem:[%s8134_s10 + $0x748] sm:$0xf]  ;;  %v6226_v45 = vld [vmem:[%s8134_s10 + $0x40c] sm:$0xff]  ;;  %v6265_v30 = vcombine.high %v6234_v26, %v6236_v28 }
 0x99b   : > { %v2935_v35 = vpack.c.bf16 %v2931_v34, %v2931_v34  ;;  %3318 = vmatprep.subr.bf16.mxu1 %v6209_v54  ;;  %v6218_v34 = vcombine.high %v6190_v25, %v6192_v49  ;;  %v6217_v38 = vcombine.low %v6190_v25, %v6192_v49  ;;  %v6222_v53 = vcombine.low %v6195_v27, %v6197_v51  ;;  %v8920_v43 = vld [vmem:[%s8129_s24 + $0x8] sm:$0xff]  ;;  %v6200_v5 = vld [vmem:[%s8134_s10 + $0x7c0] sm:$0xff] }
 0x99c   : > { %v6223_v40 = vcombine.low %v6198_v44, %v6200_v5  ;;  %v6199_v54 = vld [vmem:[%s8134_s10 + $0x788] sm:$0xf]  ;;  %v6238_v25 = vld [vmem:[%s8134_s10 + $0x58c] sm:$0xff] }
 0x99d   : > { %3104 = vmatprep.mubr.bf16.mxu0 %v2935_v35  ;;  %7120 = vmatpush3.bf16.msra.mxu0 %v6207_v3  ;;  %v6191_v35 = vld [vmem:[%s8134_s10 + $0x688] sm:$0xf]  ;;  %v6224_v3 = vcombine.high %v6198_v44, %v6200_v5  ;;  %v6240_v49 = vld [vmem:[%s8134_s10 + $0x5cc] sm:$0xff] }
 0x99e   : > { %7121 = vmatprep.subr.bf16.mxu0 %v8019_v10  ;;  %3319 = vmatpush1.bf16.msra.mxu1 %v6208_v50  ;;  %v6201_v55 = vld [vmem:[%s8134_s10 + $0x7c8] sm:$0xf]  ;;  %v6242_v37 = vld [vmem:[%s8134_s10 + $0x60c] sm:$0xff] }
 0x99f   : > { %3320 = vmatprep.subr.bf16.mxu1 %v6212_v12  ;;  %v6225_v50 = vcombine.low %v6199_v54, %v6201_v55  ;;  %v6244_v14 = vld [vmem:[%s8134_s10 + $0x64c] sm:$0xff]  ;;  %v6249_v54 = vld [vmem:[%s8134_s10 + $0x6d4] sm:$0xf] }
 0x9a0   : > { %3105 = vmatmul.mubr.bf16.gmra.mrb[60].mxu0 %v2934_v42  ;;  %v6193_v42 = vld [vmem:[%s8134_s10 + $0x6c8] sm:$0xf]  ;;  %v6271_v51 = vcombine.high %v6242_v37, %v6244_v14  ;;  %v6248_v44 = vld [vmem:[%s8134_s10 + $0x6cc] sm:$0xff]  ;;  %v6270_v5 = vcombine.low %v6242_v37, %v6244_v14  ;;  %v6295_v14 = vld [vmem:[%s8134_s10 + $0x5a0] sm:$0xf] }
 0x9a1   : > { %7133 = vmatprep.mubr.msk.bf16.mxu0 %vm8021_vm0, %v8019_v10  ;;  %7122 = vmatpush3.bf16.msra.mxu0 %v6210_v59  ;;  %v6219_v41 = vcombine.low %v6191_v35, %v6193_v42  ;;  %v6228_v59 = vld [vmem:[%s8134_s10 + $0x44c] sm:$0xff]  ;;  %v6268_v42 = vcombine.high %v6238_v25, %v6240_v49 }
 0x9a2   : > { %7123 = vmatprep.subr.bf16.mxu0 %v8019_v10  ;;  %v6250_v55 = vld [vmem:[%s8134_s10 + $0x70c] sm:$0xff] }
 0x9a5   : > { %7124 = vmatpush3.bf16.msra.mxu0 %v6213_v18  ;;  %v6231_v18 = vld [vmem:[%s8134_s10 + $0x494] sm:$0xf] }
 0x9a6   : > { %7125 = vmatprep.subr.bf16.mxu0 %v8019_v10 }
 0x9a9   : > { %7126 = vmatpush3.bf16.msra.mxu0 %v6216_v36  ;;  %v6237_v36 = vld [vmem:[%s8134_s10 + $0x554] sm:$0xf] }
 0x9aa   : > { %7127 = vmatprep.subr.bf16.mxu0 %v8019_v10 }
 0x9ad   : > { %7128 = vmatpush3.bf16.msra.mxu0 %v6219_v41  ;;  %v6241_v41 = vld [vmem:[%s8134_s10 + $0x5d4] sm:$0xf] }
 0x9ae   : > { %7129 = vmatprep.subr.bf16.mxu0 %v8019_v10 }
 0x9b1   : > { %7130 = vmatpush3.bf16.msra.mxu0 %v6222_v53  ;;  %v6245_v53 = vld [vmem:[%s8134_s10 + $0x654] sm:$0xf] }
 0x9b2   : > { %7131 = vmatprep.subr.bf16.mxu0 %v8019_v10 }
 0x9b5   : > { %7132 = vmatpush3.bf16.msra.mxu0 %v6225_v50 }
 0x9b6   : > { %7137 = vmatprep.subr.bf16.mxu0 %v8019_v10 }
 0xa6b   : > { %v6692_v31 = vpop.f32.mrb[56].mxu0 }
 0xa6c   : > { %v6693_v15 = vpop.f32.mrb[57].mxu0 }
 0xa6d   : > { %v6694_v46 = vadd.f32 %v6693_v15, %v6692_v31  ;;  %v6695_v4 = vpop.f32.mrb[58].mxu0 }
 0xa6e   : > { %v6696_v62 = vpop.f32.mrb[59].mxu0 }
 0xa6f   : > { %v8885_v0 = vadd.f32 %v6694_v46, %v8812_v11  ;;  %v6697_v47 = vadd.f32 %v6696_v62, %v6695_v4  ;;  %v6258_v46 = vcombine.low %v6226_v45, %v6228_v59  ;;  %v6259_v4 = vcombine.high %v6226_v45, %v6228_v59  ;;  %v6252_v45 = vld [vmem:[%s8134_s10 + $0x74c] sm:$0xff] }
 0xa71   : > { %v8888_v1 = vadd.f32 %v6697_v47, %v8816_v19  ;;  %v3129_v58 = vmul.f32 %v8885_v0, %v8885_v0 }
 0xa73   : > { %v6698_v57 = vpop.f32.mrb[60].mxu0  ;;  %3132 = vadd.xlane.f32.xlu0 %v3129_v58  ;;  %v3130_v11 = vmul.f32 %v8888_v1, %v8888_v1 }
 0xa74   : > { %v6699_v2 = vpop.f32.mrb[61].mxu0 }
 0xa75   : > { %v6700_v8 = vadd.f32 %v6699_v2, %v6698_v57  ;;  %v6701_v63 = vpop.f32.mrb[62].mxu0 }
 0xa76   : > { %v6702_v61 = vpop.f32.mrb[63].mxu0 }
 0xa77   : > { %v8895_v13 = vadd.f32 %v6700_v8, %v8814_v17  ;;  %3134 = vadd.xlane.f32.xlu0 %v3130_v11  ;;  %v6211_v17 = vcombine.low %v6182_v6, %v6184_v7  ;;  %v6227_v61 = vld [vmem:[%s8134_s10 + $0x414] sm:$0xf]  ;;  %v6230_v6 = vld [vmem:[%s8134_s10 + $0x48c] sm:$0xff] }
 0xa78   : > { %v6232_v7 = vld [vmem:[%s8134_s10 + $0x4cc] sm:$0xff] }
 0xa79   : > { %v6168_v19 = vmul.f32 -1.442695, %v8895_v13  ;;  %v3131_v16 = vmul.f32 %v8895_v13, %v8895_v13  ;;  %3321 = vmatpush1.bf16.msra.mxu1 %v6211_v17  ;;  %v6262_v17 = vcombine.high %v6230_v6, %v6232_v7 }
 0xa7a   : > { %3322 = vmatprep.subr.bf16.mxu1 %v6215_v32  ;;  %v6261_v32 = vcombine.low %v6230_v6, %v6232_v7  ;;  %v6283_v6 = vld [vmem:[%s8134_s10 + $0x420] sm:$0xf] }
 0xa7b   : > { %7864 = vpow2.f32 %v6168_v19  ;;  %3136 = vadd.xlane.f32.xlu1 %v3131_v16  ;;  %v6229_v19 = vld [vmem:[%s8134_s10 + $0x454] sm:$0xf]  ;;  %v6285_v7 = vld [vmem:[%s8134_s10 + $0x460] sm:$0xf] }
 0xa7c   : > { %v6260_v22 = vcombine.low %v6227_v61, %v6229_v19 }
 0xa7d   : > { %3323 = vmatpush1.bf16.msra.mxu1 %v6214_v33  ;;  %v6235_v33 = vld [vmem:[%s8134_s10 + $0x514] sm:$0xf] }
 0xa7e   : > { %3324 = vmatprep.subr.bf16.mxu1 %v6218_v34  ;;  %v6264_v34 = vcombine.low %v6234_v26, %v6236_v28  ;;  %v6266_v35 = vcombine.low %v6235_v33, %v6237_v36  ;;  %v6287_v26 = vld [vmem:[%s8134_s10 + $0x4a0] sm:$0xf] }
 0xa7f   : > { %v6289_v28 = vld [vmem:[%s8134_s10 + $0x4e0] sm:$0xf] }
 0xa80   : > { %v6319_v33 = vcombine.low %v6287_v26, %v6289_v28 }
 0xa81   : > { %3325 = vmatpush1.bf16.msra.mxu1 %v6217_v38  ;;  %v6239_v38 = vld [vmem:[%s8134_s10 + $0x594] sm:$0xf] }
 0xa82   : > { %3326 = vmatprep.subr.bf16.mxu1 %v6221_v48  ;;  %v6267_v48 = vcombine.low %v6238_v25, %v6240_v49  ;;  %v6269_v27 = vcombine.low %v6239_v38, %v6241_v41  ;;  %v6291_v25 = vld [vmem:[%s8134_s10 + $0x520] sm:$0xf] }
 0xa83   : > { %v6293_v49 = vld [vmem:[%s8134_s10 + $0x560] sm:$0xf] }
 0xa84   : > { %v6322_v41 = vcombine.low %v6291_v25, %v6293_v49  ;;  %v6345_v25 = vld [vmem:[%s8134_s10 + $0x5e4] sm:$0xff] }
 0xa85   : > { %v7865_v20 = vpop.eup %7864  ;;  %3327 = vmatpush1.bf16.msra.mxu1 %v6220_v52  ;;  %v6243_v52 = vld [vmem:[%s8134_s10 + $0x614] sm:$0xf] }
 0xa86   : > { %v3120_v24 = vadd.f32 1.0, %v7865_v20  ;;  %3328 = vmatprep.subr.bf16.mxu1 %v6224_v3  ;;  %v6247_v3 = vld [vmem:[%s8134_s10 + $0x694] sm:$0xf] }
 0xa87   : > { %v6275_v59 = vcombine.low %v6247_v3, %v6249_v54  ;;  %v6304_v3 = vld [vmem:[%s8134_s10 + $0x6d8] sm:$0xff] }
 0xa88   : > { %7866 = vrcp.f32 %v3120_v24  ;;  %v6233_v24 = vld [vmem:[%s8134_s10 + $0x4d4] sm:$0xf] }
 0xa89   : > { %3329 = vmatpush1.bf16.msra.mxu1 %v6223_v40  ;;  %v6263_v29 = vcombine.low %v6231_v18, %v6233_v24 }
 0xa8a   : > { %3558 = vmatprep.subr.bf16.mxu1 %v6259_v4  ;;  %v6254_v4 = vld [vmem:[%s8134_s10 + $0x78c] sm:$0xff] }
 0xa92   : > { %v7867_v23 = vpop.eup %7866 }
 0xa93   : > { %v3124_v39 = vsub.f32 1.0, %v7867_v23  ;;  %v3123_v31 = vmul.f32 %v7867_v23, %v8920_v43  ;;  %v6246_v23 = vld [vmem:[%s8134_s10 + $0x68c] sm:$0xff] }
 0xa94   : > { %v6274_v40 = vcombine.high %v6246_v23, %v6248_v44  ;;  %v6273_v50 = vcombine.low %v6246_v23, %v6248_v44 }
 0xa95   : > { %v3125_v15 = vmul.f32 %v3124_v39, %v8888_v1  ;;  %v6272_v39 = vcombine.low %v6243_v52, %v6245_v53 }
 0xa97   : > { %v3126_v62 = vadd.f32 %v3125_v15, %v3123_v31  ;;  %v6277_v31 = vcombine.high %v6250_v55, %v6252_v45  ;;  %v6251_v15 = vld [vmem:[%s8134_s10 + $0x714] sm:$0xf] }
 0xa99   : > { %6169 = vst [vmem:[%s8141_s17 + $0x8] sm:$0xff] %v3126_v62  ;;  %v6256_v62 = vld [vmem:[%s8134_s10 + $0x7cc] sm:$0xff] }
 0xa9a   : > { %v6279_v61 = vcombine.low %v6254_v4, %v6256_v62 }
 0xb00   : > { %v3133_v47 = vpop.xlane.xlu0 %3132 }
 0xb01   : > { %v3138_v58 = vmul.f32 0.0078125, %v3133_v47  ;;  %v6276_v47 = vcombine.low %v6250_v55, %v6252_v45 }
 0xb03   : > { %v3141_v57 = vadd.f32 1e-06, %v3138_v58 }
 0xb04   : > { %v3135_v2 = vpop.xlane.xlu0 %3134 }
 0xb05   : > { %v3139_v8 = vmul.f32 0.0078125, %v3135_v2  ;;  %7868 = vrsqrt.f32 %v3141_v57  ;;  %v6280_v57 = vcombine.high %v6254_v4, %v6256_v62  ;;  %v6255_v2 = vld [vmem:[%s8134_s10 + $0x794] sm:$0xf] }
 0xb07   : > { %v3142_v63 = vadd.f32 1e-06, %v3139_v8  ;;  %v6257_v8 = vld [vmem:[%s8134_s10 + $0x7d4] sm:$0xf] }
 0xb08   : > { %v6281_v19 = vcombine.low %v6255_v2, %v6257_v8  ;;  %v3137_v36 = vpop.xlane.xlu1 %3136  ;;  %v6312_v2 = vld [vmem:[%s8134_s10 + $0x7d8] sm:$0xff] }
 0xb09   : > { %7870 = vrsqrt.f32 %v3142_v63  ;;  %v6282_v63 = vld [vmem:[%s8134_s10 + $0x418] sm:$0xff] }
 0xb0f   : > { %v7869_v11 = vpop.eup %7868 }
 0xb10   : > { %v3147_v12 = vmul.f32 %v7869_v11, %v8885_v0  ;;  %v6284_v11 = vld [vmem:[%s8134_s10 + $0x458] sm:$0xff] }
 0xb13   : > { %v7871_v16 = vpop.eup %7870 }
 0xb14   : > { %v3148_v21 = vmul.f32 %v7871_v16, %v8888_v1  ;;  %v6315_v16 = vcombine.high %v6282_v63, %v6284_v11 }
 0xb16   : > { %v8939_v20 = vpack.c.bf16 %v3148_v21, %v3147_v12  ;;  %v6286_v12 = vld [vmem:[%s8134_s10 + $0x498] sm:$0xff] }
 0xb17   : > { %v6288_v21 = vld [vmem:[%s8134_s10 + $0x4d8] sm:$0xff] }
 0xb18   : > { %3347 = vmatmul.mubr.bf16.vlgmr.msra.gmra.mrb[56].mxu1 %v8939_v20  ;;  %7134 = vmatmul.mubr.bf16.vlgmr.msra.gmra.mrb[64].mxu0 %v8939_v20  ;;  %v3428_v18 = vrot.slane %v8939_v20, 4  ;;  %v6318_v24 = vcombine.high %v6286_v12, %v6288_v21 }
 0xb19   : > { %3559 = vmatpush1.bf16.msra.mxu1 %v6258_v46  ;;  %7138 = vmatpush3.bf16.msra.mxu0 %v6260_v22  ;;  %v6253_v46 = vld [vmem:[%s8134_s10 + $0x754] sm:$0xf]  ;;  %v6314_v22 = vcombine.low %v6282_v63, %v6284_v11 }
 0xb1a   : > { %3560 = vmatprep.subr.bf16.mxu1 %v6262_v17  ;;  %7139 = vmatprep.subr.bf16.mxu0 %v8019_v10  ;;  %v6278_v58 = vcombine.low %v6251_v15, %v6253_v46  ;;  %v6316_v17 = vcombine.low %v6283_v6, %v6285_v7  ;;  %v6308_v15 = vld [vmem:[%s8134_s10 + $0x758] sm:$0xff]  ;;  %v6338_v6 = vld [vmem:[%s8134_s10 + $0x424] sm:$0xff] }
 0xb1b   : > { %3590 = vmatprep.mubr.bf16.mxu1 %v8020_v56  ;;  %7153 = vmatprep.mubr.msk.bf16.mxu0 %vm8021_vm0, %v8019_v10  ;;  %v6339_v7 = vld [vmem:[%s8134_s10 + $0x464] sm:$0xff] }
 0xb1c   : > { %v6354_v26 = vcombine.low %v6338_v6, %v6339_v7 }
 0xb1d   : > { %3561 = vmatpush1.bf16.msra.mxu1 %v6261_v32  ;;  %7140 = vmatpush3.bf16.msra.mxu0 %v6263_v29  ;;  %v6290_v32 = vld [vmem:[%s8134_s10 + $0x518] sm:$0xff] }
 0xb1e   : > { %3562 = vmatprep.subr.bf16.mxu1 %v6265_v30  ;;  %7141 = vmatprep.subr.bf16.mxu0 %v8019_v10  ;;  %v6292_v29 = vld [vmem:[%s8134_s10 + $0x558] sm:$0xff]  ;;  %v6317_v30 = vcombine.low %v6286_v12, %v6288_v21 }
 0xb1f   : > { %v6321_v20 = vcombine.high %v6290_v32, %v6292_v29  ;;  %v6320_v38 = vcombine.low %v6290_v32, %v6292_v29  ;;  %v6342_v29 = vld [vmem:[%s8134_s10 + $0x524] sm:$0xff] }
 0xb21   : > { %3563 = vmatpush1.bf16.msra.mxu1 %v6264_v34  ;;  %7142 = vmatpush3.bf16.msra.mxu0 %v6266_v35  ;;  %v6294_v34 = vld [vmem:[%s8134_s10 + $0x598] sm:$0xff] }
 0xb22   : > { %3564 = vmatprep.subr.bf16.mxu1 %v6268_v42  ;;  %7143 = vmatprep.subr.bf16.mxu0 %v8019_v10  ;;  %v6296_v35 = vld [vmem:[%s8134_s10 + $0x5d8] sm:$0xff]  ;;  %v3140_v42 = vmul.f32 0.0078125, %v3137_v36 }
 0xb23   : > { %v6324_v37 = vcombine.high %v6294_v34, %v6296_v35  ;;  %v6323_v53 = vcombine.low %v6294_v34, %v6296_v35  ;;  %v6346_v35 = vld [vmem:[%s8134_s10 + $0x624] sm:$0xff] }
 0xb24   : > { %v3143_v52 = vadd.f32 1e-06, %v3140_v42  ;;  %v6347_v42 = vld [vmem:[%s8134_s10 + $0x664] sm:$0xff] }
 0xb25   : > { %3565 = vmatpush1.bf16.msra.mxu1 %v6267_v48  ;;  %7144 = vmatpush3.bf16.msra.mxu0 %v6269_v27  ;;  %v6297_v48 = vld [vmem:[%s8134_s10 + $0x5e0] sm:$0xf]  ;;  %v6298_v27 = vld [vmem:[%s8134_s10 + $0x618] sm:$0xff] }
 0xb26   : > { %3566 = vmatprep.subr.bf16.mxu1 %v6271_v51  ;;  %7145 = vmatprep.subr.bf16.mxu0 %v8019_v10  ;;  %v6300_v51 = vld [vmem:[%s8134_s10 + $0x658] sm:$0xff]  ;;  %v6325_v23 = vcombine.low %v6295_v14, %v6297_v48  ;;  %7872 = vrsqrt.f32 %v3143_v52  ;;  %v6349_v14 = vld [vmem:[%s8134_s10 + $0x6e4] sm:$0xff]  ;;  %v6362_v48 = vcombine.low %v6346_v35, %v6347_v42 }
 0xb27   : > { %v6327_v44 = vcombine.high %v6298_v27, %v6300_v51  ;;  %v6326_v54 = vcombine.low %v6298_v27, %v6300_v51  ;;  %v6350_v51 = vld [vmem:[%s8134_s10 + $0x724] sm:$0xff] }
 0xb28   : > { %v6351_v52 = vld [vmem:[%s8134_s10 + $0x764] sm:$0xff] }
 0xb29   : > { %3567 = vmatpush1.bf16.msra.mxu1 %v6270_v5  ;;  %7146 = vmatpush3.bf16.msra.mxu0 %v6272_v39  ;;  %v6299_v5 = vld [vmem:[%s8134_s10 + $0x620] sm:$0xf] }
 0xb2a   : > { %3568 = vmatprep.subr.bf16.mxu1 %v6274_v40  ;;  %7147 = vmatprep.subr.bf16.mxu0 %v8019_v10  ;;  %v6301_v39 = vld [vmem:[%s8134_s10 + $0x660] sm:$0xf]  ;;  %v6302_v40 = vld [vmem:[%s8134_s10 + $0x698] sm:$0xff] }
 0xb2b   : > { %v6328_v55 = vcombine.low %v6299_v5, %v6301_v39  ;;  %v6330_v45 = vcombine.high %v6302_v40, %v6304_v3  ;;  %v6329_v46 = vcombine.low %v6302_v40, %v6304_v3  ;;  %v6353_v5 = vld [vmem:[%s8134_s10 + $0x7e4] sm:$0xff]  ;;  %v6366_v39 = vcombine.low %v6350_v51, %v6351_v52 }
 0xb2d   : > { %3569 = vmatpush1.bf16.msra.mxu1 %v6273_v50  ;;  %7148 = vmatpush3.bf16.msra.mxu0 %v6275_v59  ;;  %v6303_v50 = vld [vmem:[%s8134_s10 + $0x6a0] sm:$0xf] }
 0xb2e   : > { %3570 = vmatprep.subr.bf16.mxu1 %v6277_v31  ;;  %7149 = vmatprep.subr.bf16.mxu0 %v8019_v10  ;;  %v6305_v59 = vld [vmem:[%s8134_s10 + $0x6e0] sm:$0xf]  ;;  %v6306_v31 = vld [vmem:[%s8134_s10 + $0x718] sm:$0xff] }
 0xb2f   : > { %v6331_v4 = vcombine.low %v6303_v50, %v6305_v59  ;;  %v6333_v62 = vcombine.high %v6306_v31, %v6308_v15  ;;  %v6332_v8 = vcombine.low %v6306_v31, %v6308_v15  ;;  %v4020_v59 = vld [vmem:[%s9632_s4 + $0x18] sm:$0xff]  ;;  %v4021_v15 = vld [vmem:[%s9632_s4 + $0x20] sm:$0xff] }
 0xb31   : > { %3571 = vmatpush1.bf16.msra.mxu1 %v6276_v47  ;;  %7150 = vmatpush3.bf16.msra.mxu0 %v6278_v58  ;;  %v6307_v47 = vld [vmem:[%s8134_s10 + $0x720] sm:$0xf] }
 0xb32   : > { %3572 = vmatprep.subr.bf16.mxu1 %v6280_v57  ;;  %7151 = vmatprep.subr.bf16.mxu0 %v8019_v10  ;;  %v6309_v58 = vld [vmem:[%s8134_s10 + $0x760] sm:$0xf]  ;;  %v6310_v57 = vld [vmem:[%s8134_s10 + $0x798] sm:$0xff] }
 0xb33   : > { %v6334_v63 = vcombine.low %v6307_v47, %v6309_v58  ;;  %v6336_v11 = vcombine.high %v6310_v57, %v6312_v2  ;;  %v6335_v12 = vcombine.low %v6310_v57, %v6312_v2  ;;  %v4024_v47 = vld [vmem:[%s9632_s4 + $0x38] sm:$0xff]  ;;  %v4025_v57 = vld [vmem:[%s9632_s4 + $0x40] sm:$0xff]  ;;  %v4026_v2 = vld [vmem:[%s9632_s4 + $0x48] sm:$0xff] }
 0xb35   : > { %3573 = vmatpush1.bf16.msra.mxu1 %v6279_v61  ;;  %7152 = vmatpush3.bf16.msra.mxu0 %v6281_v19  ;;  %v6311_v61 = vld [vmem:[%s8134_s10 + $0x7a0] sm:$0xf] }
 0xb36   : > { %3799 = vmatprep.subr.bf16.mxu1 %v6315_v16  ;;  %7157 = vmatprep.subr.bf16.mxu0 %v8019_v10  ;;  %v6313_v19 = vld [vmem:[%s8134_s10 + $0x7e0] sm:$0xf]  ;;  %v7873_v16 = vpop.eup %7872 }
 0xb37   : > { %v6337_v21 = vcombine.low %v6311_v61, %v6313_v19  ;;  %v4029_v19 = vld [vmem:[%s9632_s4 + $0x60] sm:$0xff] }
 0xb38   : > { %3591 = vmatmul.mubr.bf16.vlgmr.msra.gmra.mrb[60].mxu1 %v3428_v18  ;;  %7154 = vmatmul.mubr.bf16.vlgmr.msra.gmra.mrb[68].mxu0 %v3428_v18  ;;  %v6340_v18 = vld [vmem:[%s8134_s10 + $0x4a4] sm:$0xff] }
 0xb39   : > { %3800 = vmatpush1.bf16.msra.mxu1 %v6314_v22  ;;  %7158 = vmatpush3.bf16.msra.mxu0 %v6316_v17  ;;  %v3149_v22 = vmul.f32 %v7873_v16, %v8895_v13  ;;  %v6355_v17 = vcombine.high %v6338_v6, %v6339_v7  ;;  %v4030_v16 = vld [vmem:[%s9632_s4 + $0x68] sm:$0xff]  ;;  %v4031_v7 = vld [vmem:[%s9632_s4 + $0x70] sm:$0xff] }
 0xb3a   : > { %3801 = vmatprep.subr.bf16.mxu1 %v6318_v24  ;;  %7159 = vmatprep.subr.bf16.mxu0 %v8019_v10  ;;  %v6341_v24 = vld [vmem:[%s8134_s10 + $0x4e4] sm:$0xff]  ;;  %v7485_v6 = vpack.c.bf16 %v4030_v16, %v4029_v19 }
 0xb3b   : > { %3831 = vmatprep.mubr.bf16.mxu1 %v8020_v56  ;;  %7173 = vmatprep.mubr.msk.bf16.mxu0 %vm8021_vm0, %v8019_v10  ;;  %v3151_v28 = vpack.c.bf16 %v3149_v22, %v3149_v22  ;;  %v6357_v32 = vcombine.high %v6340_v18, %v6341_v24 }
 0xb3d   : > { %3802 = vmatpush1.bf16.msra.mxu1 %v6317_v30  ;;  %7160 = vmatpush3.bf16.msra.mxu0 %v6319_v33  ;;  %v6343_v30 = vld [vmem:[%s8134_s10 + $0x564] sm:$0xff]  ;;  %v6356_v33 = vcombine.low %v6340_v18, %v6341_v24 }
 0xb3e   : > { %3803 = vmatprep.subr.bf16.mxu1 %v6321_v20  ;;  %7161 = vmatprep.subr.bf16.mxu0 %v8019_v10  ;;  %v6359_v36 = vcombine.high %v6342_v29, %v6343_v30  ;;  %v6344_v20 = vld [vmem:[%s8134_s10 + $0x5a4] sm:$0xff]  ;;  %v6358_v49 = vcombine.low %v6342_v29, %v6343_v30 }
 0xb3f   : > { %v6361_v34 = vcombine.high %v6344_v20, %v6345_v25 }
 0xb41   : > { %3804 = vmatpush1.bf16.msra.mxu1 %v6320_v38  ;;  %7162 = vmatpush3.bf16.msra.mxu0 %v6322_v41  ;;  %v6360_v38 = vcombine.low %v6344_v20, %v6345_v25  ;;  %v6363_v41 = vcombine.high %v6346_v35, %v6347_v42 }
 0xb42   : > { %3805 = vmatprep.subr.bf16.mxu1 %v6324_v37  ;;  %7163 = vmatprep.subr.bf16.mxu0 %v8019_v10  ;;  %v6348_v37 = vld [vmem:[%s8134_s10 + $0x6a4] sm:$0xff] }
 0xb43   : > { %v6365_v27 = vcombine.high %v6348_v37, %v6349_v14 }
 0xb45   : > { %3806 = vmatpush1.bf16.msra.mxu1 %v6323_v53  ;;  %7164 = vmatpush3.bf16.msra.mxu0 %v6325_v23  ;;  %v6364_v53 = vcombine.low %v6348_v37, %v6349_v14  ;;  %v6367_v23 = vcombine.high %v6350_v51, %v6351_v52 }
 0xb46   : > { %3807 = vmatprep.subr.bf16.mxu1 %v6327_v44  ;;  %7165 = vmatprep.subr.bf16.mxu0 %v8019_v10  ;;  %v6352_v44 = vld [vmem:[%s8134_s10 + $0x7a4] sm:$0xff] }
 0xb47   : > { %v6369_v40 = vcombine.high %v6352_v44, %v6353_v5  ;;  %v6368_v3 = vcombine.low %v6352_v44, %v6353_v5 }
 0xb49   : > { %3808 = vmatpush1.bf16.msra.mxu1 %v6326_v54  ;;  %7166 = vmatpush3.bf16.msra.mxu0 %v6328_v55  ;;  %v3152_v54 = vpack.c.bf16 %v8920_v43, %v8920_v43  ;;  %v4017_v55 = vld [vmem:[%s9632_s4] sm:$0xff]  ;;  %v4019_v43 = vld [vmem:[%s9632_s4 + $0x10] sm:$0xff] }
 0xb4a   : > { %3809 = vmatprep.subr.bf16.mxu1 %v6330_v45  ;;  %7167 = vmatprep.subr.bf16.mxu0 %v8019_v10  ;;  %v4018_v45 = vld [vmem:[%s9632_s4 + $0x8] sm:$0xff]  ;;  %v7470_v31 = vpack.c.bf16 %v4020_v59, %v4019_v43 }
 0xb4b   : > { %v7467_v50 = vpack.c.bf16 %v4018_v45, %v4017_v55  ;;  %v4147_v55 = vld [vmem:[%s9631_s3] sm:$0xff] }
 0xb4d   : > { %3810 = vmatpush1.bf16.msra.mxu1 %v6329_v46  ;;  %7168 = vmatpush3.bf16.msra.mxu0 %v6331_v4  ;;  %v4022_v46 = vld [vmem:[%s9632_s4 + $0x28] sm:$0xff] }
 0xb4e   : > { %3811 = vmatprep.subr.bf16.mxu1 %v6333_v62  ;;  %7169 = vmatprep.subr.bf16.mxu0 %v8019_v10  ;;  %v7473_v4 = vpack.c.bf16 %v4022_v46, %v4021_v15  ;;  %v4023_v62 = vld [vmem:[%s9632_s4 + $0x30] sm:$0xff]  ;;  %v4148_v15 = vld [vmem:[%s9631_s3 + $0x8] sm:$0xff] }
 0xb4f   : > { %v7476_v58 = vpack.c.bf16 %v4024_v47, %v4023_v62  ;;  %v4135_v62 = vld [vmem:[%s9630_s2 + $0x10] sm:$0xff] }
 0xb51   : > { %3812 = vmatpush1.bf16.msra.mxu1 %v6332_v8  ;;  %7170 = vmatpush3.bf16.msra.mxu0 %v6334_v63  ;;  %v7479_v8 = vpack.c.bf16 %v4026_v2, %v4025_v57  ;;  %v4027_v63 = vld [vmem:[%s9632_s4 + $0x50] sm:$0xff] }
 0xb52   : > { %3813 = vmatprep.subr.bf16.mxu1 %v6336_v11  ;;  %7171 = vmatprep.subr.bf16.mxu0 %v8019_v10  ;;  %v4028_v11 = vld [vmem:[%s9632_s4 + $0x58] sm:$0xff]  ;;  %v4149_v2 = vld [vmem:[%s9631_s3 + $0x10] sm:$0xff] }
 0xb53   : > { %v7482_v61 = vpack.c.bf16 %v4028_v11, %v4027_v63 }
 0xb55   : > { %3814 = vmatpush1.bf16.msra.mxu1 %v6335_v12  ;;  %7172 = vmatpush3.bf16.msra.mxu0 %v6337_v21  ;;  %v4032_v12 = vld [vmem:[%s9632_s4 + $0x78] sm:$0xff] }
 0xb56   : > { %3976 = vmatprep.subr.bf16.mxu1 %v6355_v17  ;;  %7466 = vmatprep.subr.bf16.mxu0 %v8022_v60  ;;  %v7488_v21 = vpack.c.bf16 %v4032_v12, %v4031_v7  ;;  %v4136_v7 = vld [vmem:[%s9630_s2 + $0x18] sm:$0xff] }
 0xb57   : > { %v4150_v12 = vld [vmem:[%s9631_s3 + $0x18] sm:$0xff] }
 0xb58   : > { %3832 = vmatmul.mubr.bf16.vlgmr.msra.gmra.mrb[64].mxu1 %v3151_v28  ;;  %7174 = vmatmul.mubr.bf16.vlgmr.msra.gmra.mrb[72].mxu0 %v3151_v28 }
 0xb59   : > { %3977 = vmatpush1.bf16.msra.mxu1 %v6354_v26  ;;  %4008 = vmatprep.mubr.bf16.mxu1 %v8020_v56 }
 0xb5a   : > { %3978 = vmatprep.subr.bf16.mxu1 %v6357_v32  ;;  %7209 = vmatprep.mubr.msk.f32.mxu0 %vm8021_vm0, %v8019_v10 }
 0xb5b   : > { %7468 = vmatpush3.bf16.msra.mxu0 %v7467_v50 }
 0xb5c   : > { %7469 = vmatprep.subr.bf16.mxu0 %v8022_v60 }
 0xb5d   : > { %3979 = vmatpush1.bf16.msra.mxu1 %v6356_v33 }
 0xb5e   : > { %3980 = vmatprep.subr.bf16.mxu1 %v6359_v36 }
 0xb5f   : > { %7471 = vmatpush3.bf16.msra.mxu0 %v7470_v31  ;;  %v4134_v31 = vld [vmem:[%s9630_s2 + $0x8] sm:$0xff] }
 0xb60   : > { %7472 = vmatprep.subr.bf16.mxu0 %v8022_v60 }
 0xb61   : > { %3981 = vmatpush1.bf16.msra.mxu1 %v6358_v49 }
 0xb62   : > { %3982 = vmatprep.subr.bf16.mxu1 %v6361_v34 }
 0xb63   : > { %7474 = vmatpush3.bf16.msra.mxu0 %v7473_v4 }
 0xb64   : > { %7475 = vmatprep.subr.bf16.mxu0 %v8022_v60 }
 0xb65   : > { %3983 = vmatpush1.bf16.msra.mxu1 %v6360_v38 }
 0xb66   : > { %3984 = vmatprep.subr.bf16.mxu1 %v6363_v41 }
 0xb67   : > { %7477 = vmatpush3.bf16.msra.mxu0 %v7476_v58 }
 0xb68   : > { %7478 = vmatprep.subr.bf16.mxu0 %v8022_v60 }
 0xb69   : > { %3985 = vmatpush1.bf16.msra.mxu1 %v6362_v48 }
 0xb6a   : > { %3986 = vmatprep.subr.bf16.mxu1 %v6365_v27 }
 0xb6b   : > { %7480 = vmatpush3.bf16.msra.mxu0 %v7479_v8 }
 0xb6c   : > { %7481 = vmatprep.subr.bf16.mxu0 %v8022_v60 }
 0xb6d   : > { %3987 = vmatpush1.bf16.msra.mxu1 %v6364_v53 }
 0xb6e   : > { %3988 = vmatprep.subr.bf16.mxu1 %v6367_v23 }
 0xb6f   : > { %7483 = vmatpush3.bf16.msra.mxu0 %v7482_v61 }
 0xb70   : > { %7484 = vmatprep.subr.bf16.mxu0 %v8022_v60 }
 0xb71   : > { %3989 = vmatpush1.bf16.msra.mxu1 %v6366_v39 }
 0xb72   : > { %3990 = vmatprep.subr.bf16.mxu1 %v6369_v40 }
 0xb73   : > { %7486 = vmatpush3.bf16.msra.mxu0 %v7485_v6 }
 0xb74   : > { %7487 = vmatprep.subr.bf16.mxu0 %v8022_v60 }
 0xb75   : > { %3991 = vmatpush1.bf16.msra.mxu1 %v6368_v3 }
 0xb76   : > { %7490 = vmatprep.subr.bf16.mxu1 %v8022_v60 }
 0xb77   : > { %7489 = vmatpush3.bf16.msra.mxu0 %v7488_v21 }
 0xb78   : > { %4009 = vmatmul.mubr.bf16.vlgmr.msra.gmra.mrb[68].mxu1 %v3152_v54  ;;  %7504 = vmatprep.subr.bf16.mxu0 %v8022_v60  ;;  %v4133_v54 = vld [vmem:[%s9630_s2] sm:$0xff] }
 0xb79   : > { %7238 = vmatprep.mubr.msk.f32.mxu1 %vm8021_vm0, %v8019_v10 }
 0xbeb   : > { %v3348_v22 = vpop.f32.mrb[56].mxu1  ;;  %v9105_v17 = vpop.f32.mrb[64].mxu0 }
 0xbec   : > { %v3350_v18 = vpop.f32.mrb[57].mxu1  ;;  %v7135_v24 = vpop.f32.mrb[65].mxu0  ;;  %v4142_v63 = vmul.f32 %v4135_v62, %v3348_v22 }
 0xbed   : > { %v3352_v26 = vpop.f32.mrb[58].mxu1  ;;  %v3392_v28 = vpop.f32.mrb[66].mxu0  ;;  %v4141_v47 = vmul.f32 %v4134_v31, %v3350_v18 }
 0xbee   : > { %v3353_v32 = vpop.f32.mrb[59].mxu1  ;;  %v7136_v29 = vpop.f32.mrb[67].mxu0  ;;  %v4137_v28 = vld [vmem:[%s9630_s2 + $0x20] sm:$0xff] }
 0xbef   : > { %v4151_v32 = vld [vmem:[%s9631_s3 + $0x20] sm:$0xff] }
 0xc0b   : > { %v9107_v30 = vpop.f32.mrb[60].mxu1  ;;  %v9109_v33 = vpop.f32.mrb[68].mxu0 }
 0xc0c   : > { %v9111_v36 = vpop.f32.mrb[61].mxu1  ;;  %v7155_v20 = vpop.f32.mrb[69].mxu0 }
 0xc0d   : > { %v3596_v25 = vpop.f32.mrb[62].mxu1  ;;  %v3636_v49 = vpop.f32.mrb[70].mxu0 }
 0xc0e   : > { %v3597_v34 = vpop.f32.mrb[63].mxu1  ;;  %v7156_v35 = vpop.f32.mrb[71].mxu0 }
 0xc0f   : > { %v4152_v35 = vld [vmem:[%s9631_s3 + $0x28] sm:$0xff] }
 0xc2b   : > { %v9113_v42 = vpop.f32.mrb[64].mxu1  ;;  %v9115_v38 = vpop.f32.mrb[72].mxu0 }
 0xc2c   : > { %v9119_v41 = vpack.i.bf16 %v9115_v38, %v9109_v33  ;;  %v7502_v37 = vpack.c.bf16 %v9115_v38, %v9109_v33  ;;  %v9123_v14 = vpop.f32.mrb[65].mxu1  ;;  %v7175_v48 = vpop.f32.mrb[73].mxu0  ;;  %v4144_v25 = vmul.f32 %v4137_v28, %v9113_v42 }
 0xc2d   : > { %v3837_v27 = vpop.f32.mrb[66].mxu1  ;;  %v3877_v51 = vpop.f32.mrb[74].mxu0 }
 0xc2e   : > { %v3838_v52 = vpop.f32.mrb[67].mxu1  ;;  %v7176_v53 = vpop.f32.mrb[75].mxu0 }
 0xc4b   : > { %v4010_v23 = vpop.f32.mrb[68].mxu1 }
 0xc4c   : > { %v9125_v44 = vpop.f32.mrb[69].mxu1  ;;  %7210 = vmatmul.mubr.f32.vlgmr.msra.gmra.mrb[46].mxu0 %v4010_v23  ;;  %v4140_v50 = vmul.f32 %v4133_v54, %v4010_v23  ;;  %v4153_v23 = vld [vmem:[%s9631_s3 + $0x30] sm:$0xff] }
 0xc4d   : > { %v9129_v5 = vpack.i.bf16 %v9105_v17, %v9125_v44  ;;  %v7499_v39 = vpack.c.bf16 %v9105_v17, %v9125_v44  ;;  %v4014_v40 = vpop.f32.mrb[70].mxu1  ;;  %7212 = vmatprep.mubr.msk.f32.mxu0 %vm8021_vm0, %v8019_v10 }
 0xc4e   : > { %v4015_v3 = vpop.f32.mrb[71].mxu1 }
 0xc50   : > { %7213 = vmatmul.mubr.f32.gmra.mrb[76].mxu0 %v3350_v18  ;;  %v4143_v18 = vmul.f32 %v4136_v7, %v9107_v30 }
 0xc51   : > { %7215 = vmatprep.mubr.msk.f32.mxu0 %vm8021_vm0, %v8019_v10 }
 0xc54   : > { %7216 = vmatmul.mubr.f32.gmra.mrb[78].mxu0 %v3348_v22 }
 0xc55   : > { %7218 = vmatprep.mubr.msk.f32.mxu0 %vm8021_vm0, %v8019_v10 }
 0xc58   : > { %7219 = vmatmul.mubr.f32.gmra.mrb[80].mxu0 %v9107_v30  ;;  %v4138_v30 = vld [vmem:[%s9630_s2 + $0x28] sm:$0xff] }
 0xc59   : > { %7221 = vmatprep.mubr.msk.f32.mxu0 %vm8021_vm0, %v8019_v10  ;;  %v4145_v51 = vmul.f32 %v4138_v30, %v9111_v36  ;;  %v9285_v30 = vld [vmem:[%s9633_s5 + $0x8] sm:$0xff] }
 0xc5c   : > { %7222 = vmatmul.mubr.f32.gmra.mrb[82].mxu0 %v9113_v42  ;;  %v4139_v42 = vld [vmem:[%s9630_s2 + $0x30] sm:$0xff] }
 0xc5d   : > { %7224 = vmatprep.mubr.msk.f32.mxu0 %vm8021_vm0, %v8019_v10  ;;  %v4146_v54 = vmul.f32 %v4139_v42, %v9123_v14 }
 0xc60   : > { %7225 = vmatmul.mubr.f32.gmra.mrb[84].mxu0 %v9111_v36 }
 0xc61   : > { %7227 = vmatprep.mubr.msk.f32.mxu0 %vm8021_vm0, %v8019_v10 }
 0xc64   : > { %7228 = vmatmul.mubr.f32.gmra.mrb[86].mxu0 %v9123_v14 }
 0xc65   : > { %7272 = vmatprep.mubr.msk.f32.mxu0 %vm8021_vm0, %v8019_v10 }
 0xd1f   : > { %v4099_v45 = vpop.f32.mrb[46].mxu0 }
 0xd20   : > { %v4154_v43 = vmul.f32 %v4147_v55, %v4099_v45  ;;  %v7211_v59 = vpop.f32.mrb[47].mxu0 }
 0xd22   : > { %v4161_v46 = vadd.f32 %v4154_v43, %v4140_v50 }
 0xd23   : > { %v4104_v4 = vpop.f32.mrb[76].mxu0 }
 0xd24   : > { %v4155_v58 = vmul.f32 %v4148_v15, %v4104_v4  ;;  %v7214_v57 = vpop.f32.mrb[77].mxu0 }
 0xd26   : > { %v4162_v8 = vadd.f32 %v4155_v58, %v4141_v47 }
 0xd27   : > { %v4109_v11 = vpop.f32.mrb[78].mxu0 }
 0xd28   : > { %v7491_v61 = vpack.c.bf16 %v4162_v8, %v4161_v46  ;;  %v4156_v19 = vmul.f32 %v4149_v2, %v4109_v11  ;;  %v7217_v16 = vpop.f32.mrb[79].mxu0  ;;  %v7669_v6 = vpack.i.bf16 %v4162_v8, %v4161_v46 }
 0xd2a   : > { %v4163_v21 = vadd.f32 %v4156_v19, %v4142_v63  ;;  %7670 = vrot.lane.b32.xlu0 %v7669_v6, %s8023_s11  ;;  %7493 = vmatpush3.bf16.xpose.msk.msra.mxu1 %vm8460_vm2, %v7491_v61 }
 0xd2b   : > { %v4114_v22 = vpop.f32.mrb[80].mxu0  ;;  %7494 = vmatprep.subr.bf16.mxu1 %v8022_v60 }
 0xd2c   : > { %v4157_v24 = vmul.f32 %v4150_v12, %v4114_v22  ;;  %v7220_v26 = vpop.f32.mrb[81].mxu0 }
 0xd2e   : > { %v4164_v29 = vadd.f32 %v4157_v24, %v4143_v18 }
 0xd2f   : > { %v4119_v20 = vpop.f32.mrb[82].mxu0 }
 0xd30   : > { %v4158_v49 = vmul.f32 %v4151_v32, %v4119_v20  ;;  %v7223_v34 = vpop.f32.mrb[83].mxu0 }
 0xd32   : > { %v4165_v48 = vadd.f32 %v4158_v49, %v4144_v25 }
 0xd33   : > { %v4124_v27 = vpop.f32.mrb[84].mxu0 }
 0xd34   : > { %v4159_v52 = vmul.f32 %v4152_v35, %v4124_v27  ;;  %v7226_v53 = vpop.f32.mrb[85].mxu0 }
 0xd35   : > { %v4170_v53 = vld [vmem:[%s9633_s5 + $0x10] sm:$0xff] }
 0xd36   : > { %v4166_v40 = vadd.f32 %v4159_v52, %v4145_v51 }
 0xd37   : > { %v4129_v3 = vpop.f32.mrb[86].mxu0 }
 0xd38   : > { %v4160_v55 = vmul.f32 %v4153_v23, %v4129_v3  ;;  %v7229_v45 = vpop.f32.mrb[87].mxu0 }
 0xd3a   : > { %v4167_v50 = vadd.f32 %v4160_v55, %v4146_v54 }
 0xd3c   : > { %v7495_v43 = vpack.c.bf16 %v4167_v50, %v4166_v40  ;;  %v7684_v59 = vpack.i.bf16 %v4167_v50, %v4166_v40 }
 0xd3e   : > { %7685 = vrot.lane.b32.xlu0 %v7684_v59, %s8024_s12  ;;  %7675 = vrot.lane.b32.xlu1 %v7684_v59, %s8023_s11 }
 0xd3f   : > { %7497 = vmatpush3.bf16.xpose.msk.msra.mxu1 %vm8460_vm2, %v7495_v43 }
 0xd40   : > { %7498 = vmatprep.subr.bf16.mxu1 %v8022_v60 }
 0xd42   : > { %4404 = vrot.lane.b32.xlu0 %v4165_v48, %s8023_s11  ;;  %7680 = vrot.lane.b32.xlu1 %v7669_v6, %s8024_s12 }
 0xd46   : > { %7239 = vmatmul.mubr.msk.f32.vlgmr.msra.gmra.mrb[72].mxu1 %vm1425_vm1, %v4163_v21  ;;  %4652 = vrot.lane.b32.xlu0 %v4163_v21, %s8024_s12 }
 0xd47   : > { %4400 = vrot.lane.b32.xlu1 %v4163_v21, %s8023_s11  ;;  %7500 = vmatpush3.bf16.msra.mxu1 %v7499_v39 }
 0xd48   : > { %7241 = vmatprep.mubr.msk.f32.mxu1 %vm8021_vm0, %v8019_v10  ;;  %7501 = vmatprep.subr.bf16.mxu1 %v8022_v60 }
 0xd4a   : > { %7242 = vmatmul.mubr.msk.f32.gmra.mrb[74].mxu1 %vm1425_vm1, %v4164_v29  ;;  %4654 = vrot.lane.b32.xlu0 %v4164_v29, %s8024_s12 }
 0xd4b   : > { %4402 = vrot.lane.b32.xlu1 %v4164_v29, %s8023_s11  ;;  %7503 = vmatpush3.bf16.msra.mxu1 %v7502_v37 }
 0xd4c   : > { %7244 = vmatprep.mubr.msk.f32.mxu1 %vm8021_vm0, %v8019_v10  ;;  %7512 = vmatprep.subr.bf16.mxu1 %v8022_v60 }
 0xd4e   : > { %7245 = vmatmul.mubr.msk.f32.gmra.mrb[76].mxu1 %vm1425_vm1, %v4165_v48  ;;  %4900 = vrot.lane.b32.xlu0 %v4163_v21, %s8025_s25 }
 0xd4f   : > { %7690 = vrot.lane.b32.xlu1 %v7669_v6, %s8025_s25  ;;  %7255 = vmatprep.mubr.msk.f32.mxu1 %vm8021_vm0, %v8019_v10 }
 0xd52   : > { %4904 = vrot.lane.b32.xlu0 %v4165_v48, %s8025_s25 }
 0xd53   : > { %7695 = vrot.lane.b32.xlu1 %v7684_v59, %s8025_s25 }
 0xd57   : > { %4656 = vrot.lane.b32.xlu1 %v4165_v48, %s8024_s12 }
 0xd5b   : > { %4902 = vrot.lane.b32.xlu1 %v4164_v29, %s8025_s25  ;;  %v4168_v29 = vld [vmem:[%s9633_s5] sm:$0xff] }
 0xd9c   : > { %v7671_v17 = vpop.permute.xlu0 %7670 }
 0xd9d   : > { %v7673_v33 = vunpack.i.h.bf16 %v7671_v17  ;;  %v7672_v36 = vunpack.i.l.bf16 %v7671_v17 }
 0xd9f   : > { %v7505_v38 = vpack.c.bf16 %v7673_v33, %v7672_v36 }
 0xda1   : > { %7507 = vmatpush3.bf16.xpose.msk.msra.mxu0 %vm8460_vm2, %v7505_v38 }
 0xda2   : > { %7508 = vmatprep.subr.bf16.mxu0 %v8022_v60 }
 0xdb0   : > { %v7676_v37 = vpop.permute.xlu1 %7675  ;;  %v7686_v47 = vpop.permute.xlu0 %7685 }
 0xdb1   : > { %v7678_v14 = vunpack.i.h.bf16 %v7676_v37  ;;  %v7677_v44 = vunpack.i.l.bf16 %v7676_v37  ;;  %v7688_v57 = vunpack.i.h.bf16 %v7686_v47  ;;  %v7687_v2 = vunpack.i.l.bf16 %v7686_v47 }
 0xdb3   : > { %v7509_v39 = vpack.c.bf16 %v7678_v14, %v7677_v44  ;;  %v7523_v8 = vpack.c.bf16 %v7688_v57, %v7687_v2 }
 0xdb4   : > { %v7681_v31 = vpop.permute.xlu1 %7680  ;;  %v4405_v63 = vpop.permute.xlu0 %4404 }
 0xdb5   : > { %7511 = vmatpush3.bf16.xpose.msk.msra.mxu0 %vm8460_vm2, %v7509_v39  ;;  %v7683_v15 = vunpack.i.h.bf16 %v7681_v31  ;;  %v7682_v46 = vunpack.i.l.bf16 %v7681_v31 }
 0xdb6   : > { %7518 = vmatprep.subr.bf16.mxu0 %v8022_v60 }
 0xdb7   : > { %v7519_v62 = vpack.c.bf16 %v7683_v15, %v7682_v46 }
 0xdb8   : > { %v4653_v16 = vpop.permute.xlu0 %4652 }
 0xdb9   : > { %v4401_v4 = vpop.permute.xlu1 %4400 }
 0xdbc   : > { %7273 = vmatmul.mubr.msk.f32.vlgmr.msra.gmra.mrb[88].mxu0 %vm1425_vm1, %v4401_v4  ;;  %v4655_v12 = vpop.permute.xlu0 %4654 }
 0xdbd   : > { %7521 = vmatpush3.bf16.xpose.msk.msra.mxu0 %vm8460_vm2, %v7519_v62  ;;  %7275 = vmatprep.mubr.msk.f32.mxu0 %vm8021_vm0, %v8019_v10  ;;  %v4403_v58 = vpop.permute.xlu1 %4402 }
 0xdbe   : > { %7522 = vmatprep.subr.bf16.mxu0 %v8022_v60 }
 0xdc0   : > { %7276 = vmatmul.mubr.msk.f32.gmra.mrb[90].mxu0 %vm1425_vm1, %v4403_v58  ;;  %v4901_v26 = vpop.permute.xlu0 %4900 }
 0xdc1   : > { %7278 = vmatprep.mubr.msk.f32.mxu0 %vm8021_vm0, %v8019_v10  ;;  %v7691_v11 = vpop.permute.xlu1 %7690 }
 0xdc2   : > { %v7693_v61 = vunpack.i.h.bf16 %v7691_v11  ;;  %v7692_v19 = vunpack.i.l.bf16 %v7691_v11 }
 0xdc4   : > { %7279 = vmatmul.mubr.msk.f32.gmra.mrb[92].mxu0 %vm1425_vm1, %v4405_v63  ;;  %v7533_v6 = vpack.c.bf16 %v7693_v61, %v7692_v19  ;;  %v4905_v32 = vpop.permute.xlu0 %4904 }
 0xdc5   : > { %7525 = vmatpush3.bf16.xpose.msk.msra.mxu0 %vm8460_vm2, %v7523_v8  ;;  %7306 = vmatprep.mubr.msk.f32.mxu0 %vm8021_vm0, %v8019_v10  ;;  %v7696_v7 = vpop.permute.xlu1 %7695 }
 0xdc6   : > { %7532 = vmatprep.subr.bf16.mxu0 %v8022_v60  ;;  %v7698_v21 = vunpack.i.h.bf16 %v7696_v7  ;;  %v7697_v22 = vunpack.i.l.bf16 %v7696_v7 }
 0xdc8   : > { %v7537_v18 = vpack.c.bf16 %v7698_v21, %v7697_v22 }
 0xdc9   : > { %v4657_v24 = vpop.permute.xlu1 %4656 }
 0xdcc   : > { %7307 = vmatmul.mubr.msk.f32.vlgmr.msra.gmra.mrb[94].mxu0 %vm1425_vm1, %v4653_v16 }
 0xdcd   : > { %7535 = vmatpush3.bf16.xpose.msk.msra.mxu0 %vm8460_vm2, %v7533_v6  ;;  %7309 = vmatprep.mubr.msk.f32.mxu0 %vm8021_vm0, %v8019_v10  ;;  %v4903_v28 = vpop.permute.xlu1 %4902 }
 0xdce   : > { %7536 = vmatprep.subr.bf16.mxu0 %v8022_v60 }
 0xdd0   : > { %7310 = vmatmul.mubr.msk.f32.gmra.mrb[96].mxu0 %vm1425_vm1, %v4655_v12 }
 0xdd1   : > { %7312 = vmatprep.mubr.msk.f32.mxu0 %vm8021_vm0, %v8019_v10 }
 0xdd4   : > { %7313 = vmatmul.mubr.msk.f32.gmra.mrb[98].mxu0 %vm1425_vm1, %v4657_v24 }
 0xdd5   : > { %7539 = vmatpush3.bf16.xpose.msk.msra.mxu0 %vm8460_vm2, %v7537_v18  ;;  %7340 = vmatprep.mubr.msk.f32.mxu0 %vm8021_vm0, %v8019_v10 }
 0xddc   : > { %7341 = vmatmul.mubr.msk.f32.vlgmr.msra.gmra.mrb[100].mxu0 %vm1425_vm1, %v4901_v26 }
 0xddd   : > { %7343 = vmatprep.mubr.msk.f32.mxu0 %vm8021_vm0, %v8019_v10 }
 0xde0   : > { %7344 = vmatmul.mubr.msk.f32.gmra.mrb[102].mxu0 %vm1425_vm1, %v4903_v28 }
 0xde1   : > { %7346 = vmatprep.mubr.msk.f32.mxu0 %vm8021_vm0, %v8019_v10 }
 0xde4   : > { %7347 = vmatmul.mubr.msk.f32.gmra.mrb[104].mxu0 %vm1425_vm1, %v4905_v32 }
 0xe19   : > { %v4258_v9 = vpop.f32.mrb[72].mxu1 }
 0xe1a   : > { %v4272_v20 = vmul.f32 0.17677669, %v4258_v9  ;;  %v7240_v25 = vpop.f32.mrb[73].mxu1 }
 0xe1c   : > { %v9280_v49 = vadd.f32 %v4272_v20, %v4168_v29 }
 0xe1d   : > { %v4263_v34 = vpop.f32.mrb[74].mxu1 }
 0xe1e   : > { %v4273_v35 = vmul.f32 0.17677669, %v4263_v34  ;;  %v7243_v48 = vpop.f32.mrb[75].mxu1  ;;  %v4278_v27 = vsel %vm1425_vm1, %v9280_v49, -inf }
 0xe1f   : > { %4279 = vmax.xlane.f32.xlu1 %v4278_v27 }
 0xe20   : > { %v9290_v51 = vadd.f32 %v4273_v35, %v9285_v30 }
 0xe21   : > { %v4268_v52 = vpop.f32.mrb[76].mxu1 }
 0xe22   : > { %v4274_v42 = vmul.f32 0.17677669, %v4268_v52  ;;  %v7246_v23 = vpop.f32.mrb[77].mxu1  ;;  %v4281_v40 = vsel %vm1425_vm1, %v9290_v51, -inf }
 0xe23   : > { %4282 = vmax.xlane.f32.xlu0 %v4281_v40 }
 0xe24   : > { %v9297_v3 = vadd.f32 %v4274_v42, %v4170_v53 }
 0xe26   : > { %v4284_v54 = vsel %vm1425_vm1, %v9297_v3, -inf }
 0xe27   : > { %4285 = vmax.xlane.f32.xlu0 %v4284_v54 }
 0xe8f   : > { %v4494_v55 = vpop.f32.mrb[88].mxu0 }
 0xe90   : > { %v4508_v45 = vmul.f32 0.17677669, %v4494_v55  ;;  %v7274_v50 = vpop.f32.mrb[89].mxu0 }
 0xe92   : > { %v9301_v43 = vadd.f32 %v4508_v45, %v4168_v29 }
 0xe93   : > { %v4499_v59 = vpop.f32.mrb[90].mxu0 }
 0xe94   : > { %v4509_v17 = vmul.f32 0.17677669, %v4499_v59  ;;  %v7277_v33 = vpop.f32.mrb[91].mxu0  ;;  %v4514_v36 = vsel %vm1425_vm1, %v9301_v43, -inf }
 0xe95   : > { %4515 = vmax.xlane.f32.xlu0 %v4514_v36 }
 0xe96   : > { %v9306_v38 = vadd.f32 %v4509_v17, %v9285_v30 }
 0xe97   : > { %v4504_v37 = vpop.f32.mrb[92].mxu0 }
 0xe98   : > { %v4510_v14 = vmul.f32 0.17677669, %v4504_v37  ;;  %v7280_v44 = vpop.f32.mrb[93].mxu0  ;;  %v4517_v39 = vsel %vm1425_vm1, %v9306_v38, -inf }
 0xe99   : > { %4518 = vmax.xlane.f32.xlu1 %v4517_v39 }
 0xe9a   : > { %v9310_v31 = vadd.f32 %v4510_v14, %v4170_v53 }
 0xe9c   : > { %v4520_v15 = vsel %vm1425_vm1, %v9310_v31, -inf }
 0xe9d   : > { %4521 = vmax.xlane.f32.xlu0 %v4520_v15 }
 0xe9f   : > { %v4746_v46 = vpop.f32.mrb[94].mxu0 }
 0xea0   : > { %v4760_v4 = vmul.f32 0.17677669, %v4746_v46  ;;  %v7308_v62 = vpop.f32.mrb[95].mxu0 }
 0xea2   : > { %v9314_v47 = vadd.f32 %v4760_v4, %v4168_v29 }
 0xea3   : > { %v4751_v58 = vpop.f32.mrb[96].mxu0 }
 0xea4   : > { %v4761_v57 = vmul.f32 0.17677669, %v4751_v58  ;;  %v7311_v2 = vpop.f32.mrb[97].mxu0  ;;  %v4766_v8 = vsel %vm1425_vm1, %v9314_v47, -inf }
 0xea5   : > { %4767 = vmax.xlane.f32.xlu1 %v4766_v8 }
 0xea6   : > { %v9319_v63 = vadd.f32 %v4761_v57, %v9285_v30 }
 0xea7   : > { %v4756_v11 = vpop.f32.mrb[98].mxu0 }
 0xea8   : > { %v4762_v61 = vmul.f32 0.17677669, %v4756_v11  ;;  %v7314_v19 = vpop.f32.mrb[99].mxu0  ;;  %v4769_v16 = vsel %vm1425_vm1, %v9319_v63, -inf }
 0xea9   : > { %4770 = vmax.xlane.f32.xlu0 %v4769_v16 }
 0xeaa   : > { %v9323_v6 = vadd.f32 %v4762_v61, %v4170_v53 }
 0xeac   : > { %v4772_v7 = vsel %vm1425_vm1, %v9323_v6, -inf }
 0xead   : > { %4773 = vmax.xlane.f32.xlu1 %v4772_v7 }
 0xeaf   : > { %v4994_v12 = vpop.f32.mrb[100].mxu0 }
 0xeb0   : > { %v5008_v21 = vmul.f32 0.17677669, %v4994_v12  ;;  %v7342_v22 = vpop.f32.mrb[101].mxu0  ;;  %v4283_v27 = vpop.xlane.xlu0 %4282 }
 0xeb2   : > { %v9327_v18 = vadd.f32 %v5008_v21, %v4168_v29  ;;  %v4280_v29 = vpop.xlane.xlu1 %4279 }
 0xeb3   : > { %v4999_v24 = vpop.f32.mrb[102].mxu0  ;;  %v4287_v35 = vsub.f32 %v9280_v49, %v4280_v29 }
 0xeb4   : > { %v7345_v26 = vpop.f32.mrb[103].mxu0  ;;  %v5014_v28 = vsel %vm1425_vm1, %v9327_v18, -inf  ;;  %v5009_v52 = vmul.f32 0.17677669, %v4999_v24 }
 0xeb5   : > { %5015 = vmax.xlane.f32.xlu0 %v5014_v28  ;;  %v4290_v48 = vmul.f32 1.442695, %v4287_v35 }
 0xeb6   : > { %v9342_v42 = vadd.f32 %v5009_v52, %v9285_v30  ;;  %v4286_v30 = vpop.xlane.xlu0 %4285 }
 0xeb7   : > { %v5004_v32 = vpop.f32.mrb[104].mxu0  ;;  %7874 = vpow2.f32 %v4290_v48  ;;  %v4289_v45 = vsub.f32 %v9297_v3, %v4286_v30 }
 0xeb8   : > { %v5010_v9 = vmul.f32 0.17677669, %v5004_v32  ;;  %v7348_v20 = vpop.f32.mrb[105].mxu0  ;;  %v5017_v40 = vsel %vm1425_vm1, %v9342_v42, -inf }
 0xeb9   : > { %v4294_v50 = vmul.f32 1.442695, %v4289_v45 }
 0xeba   : > { %v9331_v25 = vadd.f32 %v5010_v9, %v4170_v53  ;;  %v4288_v53 = vsub.f32 %v9290_v51, %v4283_v27 }
 0xebc   : > { %v5020_v34 = vsel %vm1425_vm1, %v9331_v25, -inf  ;;  %v4292_v23 = vmul.f32 1.442695, %v4288_v53 }
 0xebd   : > { %5021 = vmax.xlane.f32.xlu0 %v5020_v34 }
 0xebe   : > { %7700 = vrot.lane.b32.xlu1 %v9129_v5, %s8023_s11  ;;  %7876 = vpow2.f32 %v4292_v23 }
 0xebf   : > { %7878 = vpow2.f32 %v4294_v50 }
 0xec1   : > { %v9346_v54 = vpop.eup %7874 }
 0xec2   : > { %v4296_v49 = vsel %vm1425_vm1, %v9346_v54, 0.0 }
 0xec8   : > { %v9350_v55 = vpop.eup %7876 }
 0xec9   : > { %v4299_v51 = vsel %vm1425_vm1, %v9350_v55, 0.0  ;;  %v9357_v59 = vpop.eup %7878 }
 0xeca   : > { %v4302_v17 = vsel %vm1425_vm1, %v9357_v59, 0.0 }
 0xed3   : > { %7705 = vrot.lane.b32.xlu0 %v9119_v41, %s8023_s11 }
 0xee2   : > { %5018 = vmax.xlane.f32.xlu1 %v5017_v40 }
 0xee6   : > { %4297 = vadd.xlane.f32.xlu1 %v4296_v49 }
 0xef2   : > { %4300 = vadd.xlane.f32.xlu0 %v4299_v51 }
 0xef7   : > { %7710 = vrot.lane.b32.xlu1 %v9129_v5, %s8024_s12 }
 0xf1b   : > { %4303 = vadd.xlane.f32.xlu1 %v4302_v17 }
 0xf22   : > { %v4516_v33 = vpop.xlane.xlu0 %4515 }
 0xf23   : > { %v4523_v36 = vsub.f32 %v9301_v43, %v4516_v33 }
 0xf25   : > { %v4526_v37 = vmul.f32 1.442695, %v4523_v36 }
 0xf26   : > { %v4519_v14 = vpop.xlane.xlu1 %4518 }
 0xf27   : > { %7880 = vpow2.f32 %v4526_v37  ;;  %v4524_v44 = vsub.f32 %v9306_v38, %v4519_v14 }
 0xf29   : > { %v4528_v39 = vmul.f32 1.442695, %v4524_v44 }
 0xf2a   : > { %v4522_v15 = vpop.xlane.xlu0 %4521 }
 0xf2b   : > { %7882 = vpow2.f32 %v4528_v39  ;;  %v4525_v3 = vsub.f32 %v9310_v31, %v4522_v15 }
 0xf2d   : > { %v4530_v46 = vmul.f32 1.442695, %v4525_v3 }
 0xf2f   : > { %7884 = vpow2.f32 %v4530_v46 }
 0xf31   : > { %v9364_v4 = vpop.eup %7880 }
 0xf32   : > { %v4768_v62 = vpop.xlane.xlu1 %4767  ;;  %v4532_v58 = vsel %vm1425_vm1, %v9364_v4, 0.0 }
 0xf33   : > { %v4775_v43 = vsub.f32 %v9314_v47, %v4768_v62  ;;  %4533 = vadd.xlane.f32.xlu0 %v4532_v58 }
 0xf35   : > { %v9369_v57 = vpop.eup %7882  ;;  %v4778_v2 = vmul.f32 1.442695, %v4775_v43 }
 0xf36   : > { %v4771_v38 = vpop.xlane.xlu0 %4770  ;;  %v4535_v8 = vsel %vm1425_vm1, %v9369_v57, 0.0 }
 0xf37   : > { %7886 = vpow2.f32 %v4778_v2  ;;  %v4776_v31 = vsub.f32 %v9319_v63, %v4771_v38  ;;  %4536 = vadd.xlane.f32.xlu1 %v4535_v8 }
 0xf39   : > { %v9374_v11 = vpop.eup %7884  ;;  %v4780_v61 = vmul.f32 1.442695, %v4776_v31 }
 0xf3a   : > { %v4774_v19 = vpop.xlane.xlu1 %4773  ;;  %v4538_v16 = vsel %vm1425_vm1, %v9374_v11, 0.0 }
 0xf3b   : > { %7888 = vpow2.f32 %v4780_v61  ;;  %v4777_v47 = vsub.f32 %v9323_v6, %v4774_v19  ;;  %4539 = vadd.xlane.f32.xlu0 %v4538_v16 }
 0xf3d   : > { %v4782_v7 = vmul.f32 1.442695, %v4777_v47 }
 0xf3e   : > { %v7701_v20 = vpop.permute.xlu1 %7700 }
 0xf3f   : > { %7890 = vpow2.f32 %v4782_v7  ;;  %v7703_v40 = vunpack.i.h.bf16 %v7701_v20  ;;  %v7702_v49 = vunpack.i.l.bf16 %v7701_v20 }
 0xf41   : > { %v9379_v12 = vpop.eup %7886  ;;  %v7513_v50 = vpack.c.bf16 %v7703_v40, %v7702_v49 }
 0xf42   : > { %v5016_v21 = vpop.xlane.xlu0 %5015  ;;  %v4784_v63 = vsel %vm1425_vm1, %v9379_v12, 0.0 }
 0xf43   : > { %v5023_v22 = vsub.f32 %v9327_v18, %v5016_v21  ;;  %4785 = vadd.xlane.f32.xlu1 %v4784_v63 }
 0xf45   : > { %v9384_v24 = vpop.eup %7888  ;;  %v5026_v26 = vmul.f32 1.442695, %v5023_v22 }
 0xf46   : > { %v4787_v28 = vsel %vm1425_vm1, %v9384_v24, 0.0 }
 0xf47   : > { %7892 = vpow2.f32 %v5026_v26  ;;  %4788 = vadd.xlane.f32.xlu0 %v4787_v28 }
 0xf49   : > { %v9388_v6 = vpop.eup %7890 }
 0xf4a   : > { %v4790_v32 = vsel %vm1425_vm1, %v9388_v6, 0.0  ;;  %v5022_v34 = vpop.xlane.xlu0 %5021 }
 0xf4b   : > { %4791 = vadd.xlane.f32.xlu0 %v4790_v32  ;;  %v5025_v29 = vsub.f32 %v9331_v25, %v5022_v34 }
 0xf4d   : > { %v5030_v27 = vmul.f32 1.442695, %v5025_v29 }
 0xf4e   : > { %v7706_v23 = vpop.permute.xlu0 %7705 }
 0xf4f   : > { %v7708_v17 = vunpack.i.h.bf16 %v7706_v23  ;;  %v7707_v33 = vunpack.i.l.bf16 %v7706_v23 }
 0xf51   : > { %v9392_v9 = vpop.eup %7892  ;;  %v7516_v37 = vpack.c.bf16 %v7708_v17, %v7707_v33  ;;  %v6410_v17 = vld [vmem:[%s8134_s10 + $0x42c] sm:$0xf] }
 0xf52   : > { %v5032_v18 = vsel %vm1425_vm1, %v9392_v9, 0.0 }
 0xf53   : > { %5033 = vadd.xlane.f32.xlu1 %v5032_v18 }
 0xf64   : > { %7720 = vrot.lane.b32.xlu1 %v9129_v5, %s8025_s25 }
 0xf68   : > { %7725 = vrot.lane.b32.xlu1 %v9119_v41, %s8025_s25 }
 0xf6f   : > { %v5019_v35 = vpop.xlane.xlu1 %5018 }
 0xf70   : > { %v5024_v48 = vsub.f32 %v9342_v42, %v5019_v35 }
 0xf72   : > { %v5028_v52 = vmul.f32 1.442695, %v5024_v48 }
 0xf73   : > { %v4298_v53 = vpop.xlane.xlu1 %4297 }
 0xf74   : > { %7894 = vpow2.f32 %v5028_v52 }
 0xf75   : > { %7896 = vrcp.f32 %v4298_v53 }
 0xf76   : > { %7898 = vpow2.f32 %v5030_v27 }
 0xf77   : > { %v7711_v44 = vpop.permute.xlu1 %7710 }
 0xf78   : > { %v7713_v58 = vunpack.i.h.bf16 %v7711_v44  ;;  %v7712_v43 = vunpack.i.l.bf16 %v7711_v44  ;;  %v6415_v44 = vld [vmem:[%s8134_s10 + $0x56c] sm:$0xf] }
 0xf7a   : > { %v7527_v38 = vpack.c.bf16 %v7713_v58, %v7712_v43 }
 0xf7e   : > { %v9402_v5 = vpop.eup %7894 }
 0xf7f   : > { %v7897_v51 = vpop.eup %7896  ;;  %v4301_v30 = vpop.xlane.xlu0 %4300  ;;  %v5035_v45 = vsel %vm1425_vm1, %v9402_v5, 0.0 }
 0xf80   : > { %v9406_v25 = vpop.eup %7898  ;;  %v4306_v42 = vmul.f32 %v7897_v51, %v9346_v54  ;;  %7900 = vrcp.f32 %v4301_v30  ;;  %5036 = vadd.xlane.f32.xlu0 %v5035_v45 }
 0xf81   : > { %v5038_v36 = vsel %vm1425_vm1, %v9406_v25, 0.0 }
 0xf82   : > { %7256 = vmatmul.mubr.msk.f32.vlgmr.msra.gmra.mrb[78].mxu1 %vm1425_vm1, %v4306_v42 }
 0xf83   : > { %7514 = vmatpush3.bf16.msra.mxu1 %v7513_v50  ;;  %7258 = vmatprep.mubr.msk.f32.mxu1 %vm8021_vm0, %v8019_v10 }
 0xf84   : > { %7515 = vmatprep.subr.bf16.mxu1 %v8022_v60  ;;  %5039 = vadd.xlane.f32.xlu0 %v5038_v36  ;;  %v6413_v36 = vld [vmem:[%s8134_s10 + $0x4ec] sm:$0xf] }
 0xf87   : > { %7517 = vmatpush3.bf16.msra.mxu1 %v7516_v37 }
 0xf88   : > { %7526 = vmatprep.subr.bf16.mxu1 %v8022_v60 }
 0xf8a   : > { %v7901_v54 = vpop.eup %7900 }
 0xf8b   : > { %v4308_v14 = vmul.f32 %v7901_v54, %v9350_v55 }
 0xf8d   : > { %7259 = vmatmul.mubr.msk.f32.gmra.mrb[80].mxu1 %vm1425_vm1, %v4308_v14  ;;  %v6414_v14 = vld [vmem:[%s8134_s10 + $0x52c] sm:$0xf] }
 0xf8e   : > { %7261 = vmatprep.mubr.msk.f32.mxu1 %vm8021_vm0, %v8019_v10 }
 0xf9a   : > { %7715 = vrot.lane.b32.xlu0 %v9119_v41, %s8024_s12 }
 0xfa8   : > { %v4304_v39 = vpop.xlane.xlu1 %4303 }
 0xfa9   : > { %7902 = vrcp.f32 %v4304_v39 }
 0xfb3   : > { %v7903_v15 = vpop.eup %7902 }
 0xfb4   : > { %v4310_v3 = vmul.f32 %v7903_v15, %v9357_v59  ;;  %v6428_v15 = vcombine.low %v6414_v14, %v6415_v44  ;;  %v6434_v44 = vld [vmem:[%s8134_s10 + $0x430] sm:$0xff] }
 0xfb6   : > { %7262 = vmatmul.mubr.msk.f32.gmra.mrb[82].mxu1 %vm1425_vm1, %v4310_v3 }
 0xfb7   : > { %7289 = vmatprep.mubr.msk.f32.mxu1 %vm8021_vm0, %v8019_v10 }
 0xfc0   : > { %v4534_v55 = vpop.xlane.xlu0 %4533 }
 0xfc1   : > { %7904 = vrcp.f32 %v4534_v55  ;;  %v6416_v55 = vld [vmem:[%s8134_s10 + $0x5ac] sm:$0xf] }
 0xfc4   : > { %v4537_v46 = vpop.xlane.xlu1 %4536 }
 0xfc5   : > { %7906 = vrcp.f32 %v4537_v46  ;;  %v6417_v46 = vld [vmem:[%s8134_s10 + $0x5ec] sm:$0xf] }
 0xfc6   : > { %v6429_v43 = vcombine.low %v6416_v55, %v6417_v46  ;;  %v6437_v46 = vld [vmem:[%s8134_s10 + $0x478] sm:$0xff] }
 0xfc8   : > { %v4540_v62 = vpop.xlane.xlu0 %4539 }
 0xfc9   : > { %7908 = vrcp.f32 %v4540_v62 }
 0xfcb   : > { %v7905_v41 = vpop.eup %7904 }
 0xfcc   : > { %v4542_v2 = vmul.f32 %v7905_v41, %v9364_v4 }
 0xfce   : > { %7290 = vmatmul.mubr.msk.f32.vlgmr.msra.gmra.mrb[84].mxu1 %vm1425_vm1, %v4542_v2 }
 0xfcf   : > { %v7907_v59 = vpop.eup %7906  ;;  %7528 = vmatpush3.bf16.msra.mxu1 %v7527_v38  ;;  %7292 = vmatprep.mubr.msk.f32.mxu1 %vm8021_vm0, %v8019_v10  ;;  %v6418_v38 = vld [vmem:[%s8134_s10 + $0x62c] sm:$0xf] }
 0xfd0   : > { %v4544_v8 = vmul.f32 %v7907_v59, %v9369_v57  ;;  %7529 = vmatprep.subr.bf16.mxu1 %v8022_v60  ;;  %v4786_v19 = vpop.xlane.xlu1 %4785  ;;  %v6419_v59 = vld [vmem:[%s8134_s10 + $0x66c] sm:$0xf] }
 0xfd1   : > { %7910 = vrcp.f32 %v4786_v19  ;;  %v6422_v19 = vld [vmem:[%s8134_s10 + $0x72c] sm:$0xf] }
 0xfd2   : > { %7293 = vmatmul.mubr.msk.f32.gmra.mrb[86].mxu1 %vm1425_vm1, %v4544_v8  ;;  %v6430_v8 = vcombine.low %v6418_v38, %v6419_v59  ;;  %v6439_v38 = vld [vmem:[%s8134_s10 + $0x4b8] sm:$0xff] }
 0xfd3   : > { %v7909_v31 = vpop.eup %7908  ;;  %7295 = vmatprep.mubr.msk.f32.mxu1 %vm8021_vm0, %v8019_v10  ;;  %v6441_v59 = vld [vmem:[%s8134_s10 + $0x4f8] sm:$0xff] }
 0xfd4   : > { %v4546_v4 = vmul.f32 %v7909_v31, %v9374_v11  ;;  %v4789_v61 = vpop.xlane.xlu0 %4788  ;;  %v6420_v31 = vld [vmem:[%s8134_s10 + $0x6ac] sm:$0xf] }
 0xfd5   : > { %7912 = vrcp.f32 %v4789_v61 }
 0xfd6   : > { %7296 = vmatmul.mubr.msk.f32.gmra.mrb[88].mxu1 %vm1425_vm1, %v4546_v4  ;;  %v6421_v4 = vld [vmem:[%s8134_s10 + $0x6ec] sm:$0xf] }
 0xfd7   : > { %7323 = vmatprep.mubr.msk.f32.mxu1 %vm8021_vm0, %v8019_v10  ;;  %v6431_v61 = vcombine.low %v6420_v31, %v6421_v4  ;;  %v6473_v31 = vcombine.high %v6439_v38, %v6441_v59  ;;  %v6444_v4 = vld [vmem:[%s8134_s10 + $0x570] sm:$0xff] }
 0xfd8   : > { %v4792_v16 = vpop.xlane.xlu0 %4791 }
 0xfd9   : > { %7914 = vrcp.f32 %v4792_v16  ;;  %v6423_v16 = vld [vmem:[%s8134_s10 + $0x76c] sm:$0xf] }
 0xfdb   : > { %v7911_v28 = vpop.eup %7910 }
 0xfdc   : > { %v4794_v34 = vmul.f32 %v7911_v28, %v9379_v12  ;;  %v6425_v28 = vld [vmem:[%s8134_s10 + $0x7ec] sm:$0xf] }
 0xfdf   : > { %v7913_v29 = vpop.eup %7912 }
 0xfe0   : > { %v5034_v47 = vpop.xlane.xlu1 %5033  ;;  %v4796_v52 = vmul.f32 %v7913_v29, %v9384_v24 }
 0xfe1   : > { %7916 = vrcp.f32 %v5034_v47 }
 0xfe3   : > { %v7915_v53 = vpop.eup %7914 }
 0xfe4   : > { %v7721_v21 = vpop.permute.xlu1 %7720  ;;  %v4798_v12 = vmul.f32 %v7915_v53, %v9388_v6 }
 0xfe5   : > { %v7723_v11 = vunpack.i.h.bf16 %v7721_v21  ;;  %v7722_v32 = vunpack.i.l.bf16 %v7721_v21 }
 0xfe7   : > { %v7541_v35 = vpack.c.bf16 %v7723_v11, %v7722_v32 }
 0xfe8   : > { %v7726_v20 = vpop.permute.xlu1 %7725 }
 0xfe9   : > { %v7728_v48 = vunpack.i.h.bf16 %v7726_v20  ;;  %v7727_v27 = vunpack.i.l.bf16 %v7726_v20 }
 0xfeb   : > { %v7544_v23 = vpack.c.bf16 %v7728_v48, %v7727_v27  ;;  %v7917_v40 = vpop.eup %7916 }
 0xfec   : > { %v5042_v24 = vmul.f32 %v7917_v40, %v9392_v9 }
0x100d   : > { %v5037_v57 = vpop.xlane.xlu0 %5036 }
0x100e   : > { %7918 = vrcp.f32 %v5037_v57  ;;  %v6432_v57 = vcombine.low %v6422_v19, %v6423_v16  ;;  %v6445_v19 = vld [vmem:[%s8134_s10 + $0x578] sm:$0xff] }
0x1011   : > { %v5040_v7 = vpop.xlane.xlu0 %5039 }
0x1012   : > { %7920 = vrcp.f32 %v5040_v7 }
0x1015   : > { %v7716_v63 = vpop.permute.xlu0 %7715 }
0x1016   : > { %v7718_v22 = vunpack.i.h.bf16 %v7716_v63  ;;  %v7717_v26 = vunpack.i.l.bf16 %v7716_v63 }
0x1018   : > { %v7530_v18 = vpack.c.bf16 %v7718_v22, %v7717_v26  ;;  %v6424_v26 = vld [vmem:[%s8134_s10 + $0x7ac] sm:$0xf] }
0x1019   : > { %v6433_v32 = vcombine.low %v6424_v26, %v6425_v28 }
0x101a   : > { %7531 = vmatpush3.bf16.msra.mxu1 %v7530_v18 }
0x101b   : > { %7540 = vmatprep.subr.bf16.mxu1 %v8022_v60 }
0x101d   : > { %7324 = vmatmul.mubr.msk.f32.vlgmr.msra.gmra.mrb[90].mxu1 %vm1425_vm1, %v4794_v34 }
0x101e   : > { %7542 = vmatpush3.bf16.msra.mxu1 %v7541_v35  ;;  %7326 = vmatprep.mubr.msk.f32.mxu1 %vm8021_vm0, %v8019_v10 }
0x101f   : > { %7543 = vmatprep.subr.bf16.mxu1 %v8022_v60  ;;  %v7919_v60 = vpop.eup %7918 }
0x1020   : > { %v5044_v49 = vmul.f32 %v7919_v60, %v9402_v5  ;;  %v7921_v6 = vpop.eup %7920 }
0x1021   : > { %7327 = vmatmul.mubr.msk.f32.gmra.mrb[92].mxu1 %vm1425_vm1, %v4796_v52  ;;  %v5046_v9 = vmul.f32 %v7921_v6, %v9406_v25  ;;  %v6412_v25 = vld [vmem:[%s8134_s10 + $0x4ac] sm:$0xf] }
0x1022   : > { %7545 = vmatpush3.bf16.msra.mxu1 %v7544_v23  ;;  %7329 = vmatprep.mubr.msk.f32.mxu1 %vm8021_vm0, %v8019_v10  ;;  %v6427_v54 = vcombine.low %v6412_v25, %v6413_v36 }
0x1025   : > { %7330 = vmatmul.mubr.msk.f32.gmra.mrb[94].mxu1 %vm1425_vm1, %v4798_v12 }
0x1026   : > { %7357 = vmatprep.mubr.msk.f32.mxu1 %vm8021_vm0, %v8019_v10 }
0x1029   : > { %7358 = vmatmul.mubr.msk.f32.vlgmr.msra.gmra.mrb[96].mxu1 %vm1425_vm1, %v5042_v24 }
0x102a   : > { %7360 = vmatprep.mubr.msk.f32.mxu1 %vm8021_vm0, %v8019_v10 }
0x102d   : > { %7361 = vmatmul.mubr.msk.f32.gmra.mrb[98].mxu1 %vm1425_vm1, %v5044_v49 }
0x102e   : > { %7363 = vmatprep.mubr.msk.f32.mxu1 %vm8021_vm0, %v8019_v10  ;;  %v6411_v10 = vld [vmem:[%s8134_s10 + $0x46c] sm:$0xf] }
0x102f   : > { %v6426_v33 = vcombine.low %v6410_v17, %v6411_v10 }
0x1031   : > { %7364 = vmatmul.mubr.msk.f32.gmra.mrb[100].mxu1 %vm1425_vm1, %v5046_v9  ;;  %7366 = vmatprep.subr.bf16.mxu0 %v6426_v33 }
0x1032   : > { %5557 = vmatprep.mubr.bf16.mxu1 %v8020_v56  ;;  %7367 = vmatpush3.bf16.msra.mxu0 %v6426_v33 }
0x1033   : > { %7368 = vmatprep.subr.bf16.mxu0 %v6427_v54 }
0x1036   : > { %7369 = vmatpush3.bf16.msra.mxu0 %v6427_v54 }
0x1037   : > { %7370 = vmatprep.subr.bf16.mxu0 %v6428_v15 }
0x103a   : > { %7371 = vmatpush3.bf16.msra.mxu0 %v6428_v15  ;;  %v6435_v15 = vld [vmem:[%s8134_s10 + $0x438] sm:$0xff] }
0x103b   : > { %7372 = vmatprep.subr.bf16.mxu0 %v6429_v43 }
0x103e   : > { %7373 = vmatpush3.bf16.msra.mxu0 %v6429_v43  ;;  %v6468_v43 = vcombine.low %v6435_v15, %v6437_v46 }
0x103f   : > { %7374 = vmatprep.subr.bf16.mxu0 %v6430_v8 }
0x1042   : > { %7375 = vmatpush3.bf16.msra.mxu0 %v6430_v8  ;;  %v6442_v8 = vld [vmem:[%s8134_s10 + $0x530] sm:$0xff] }
0x1043   : > { %7376 = vmatprep.subr.bf16.mxu0 %v6431_v61 }
0x1046   : > { %7377 = vmatpush3.bf16.msra.mxu0 %v6431_v61  ;;  %v6443_v61 = vld [vmem:[%s8134_s10 + $0x538] sm:$0xff] }
0x1047   : > { %7378 = vmatprep.subr.bf16.mxu0 %v6432_v57 }
0x104a   : > { %7379 = vmatpush3.bf16.msra.mxu0 %v6432_v57  ;;  %v6475_v57 = vcombine.high %v6442_v8, %v6444_v4 }
0x104b   : > { %7380 = vmatprep.subr.bf16.mxu0 %v6433_v32 }
0x104e   : > { %7381 = vmatpush3.bf16.msra.mxu0 %v6433_v32 }
0x1055   : > { %v9464_v51 = vpop.f32.mrb[78].mxu1 }
0x1056   : > { %v7257_v30 = vpop.f32.mrb[79].mxu1 }
0x1060   : > { %v9466_v45 = vpop.f32.mrb[80].mxu1 }
0x1061   : > { %v7260_v5 = vpop.f32.mrb[81].mxu1 }
0x1089   : > { %v9468_v42 = vpop.f32.mrb[82].mxu1 }
0x108a   : > { %v7263_v50 = vpop.f32.mrb[83].mxu1 }
0x10a1   : > { %v4638_v37 = vpop.f32.mrb[84].mxu1 }
0x10a2   : > { %v7291_v39 = vpop.f32.mrb[85].mxu1 }
0x10a3   : > { %v6436_v39 = vld [vmem:[%s8134_s10 + $0x470] sm:$0xff] }
0x10a4   : > { %v6467_v55 = vcombine.high %v6434_v44, %v6436_v39 }
0x10a5   : > { %v4643_v3 = vpop.f32.mrb[86].mxu1 }
0x10a6   : > { %v7729_v62 = vpack.i.bf16 %v4643_v3, %v4638_v37  ;;  %v7294_v58 = vpop.f32.mrb[87].mxu1  ;;  %v6466_v3 = vcombine.low %v6434_v44, %v6436_v39  ;;  %5525 = vmatprep.subr.bf16.mxu1 %v6467_v55  ;;  %v6464_v55 = vld [vmem:[%s8134_s10 + $0x7f0] sm:$0xff] }
0x10a7   : > { %v6440_v58 = vld [vmem:[%s8134_s10 + $0x4f0] sm:$0xff] }
0x10a8   : > { %7730 = vrot.lane.b32.xlu1 %v7729_v62, %s8025_s25  ;;  %v6438_v62 = vld [vmem:[%s8134_s10 + $0x4b0] sm:$0xff]  ;;  %5526 = vmatpush1.bf16.msra.mxu1 %v6466_v3 }
0x10a9   : > { %v4648_v41 = vpop.f32.mrb[88].mxu1  ;;  %v6470_v16 = vcombine.low %v6438_v62, %v6440_v58  ;;  %v6462_v3 = vld [vmem:[%s8134_s10 + $0x7b0] sm:$0xff] }
0x10aa   : > { %v7297_v2 = vpop.f32.mrb[89].mxu1 }
0x10ab   : > { %v6471_v2 = vcombine.high %v6438_v62, %v6440_v58  ;;  %v6494_v62 = vcombine.low %v6462_v3, %v6464_v55  ;;  %v6495_v58 = vcombine.high %v6462_v3, %v6464_v55 }
0x10ac   : > { %5155 = vrot.lane.b32.xlu1 %v4648_v41, %s8025_s25  ;;  %v6469_v41 = vcombine.high %v6435_v15, %v6437_v46  ;;  %v6463_v46 = vld [vmem:[%s8134_s10 + $0x7b8] sm:$0xff]  ;;  %s5876_s25 = sshll.u32 %s8141_s17, 4  ;;  %s9580_s25 = int_to_ptr.vmem [resolvable:$true] %s5876_s25 }
0x10ad   : > { %5527 = vmatprep.subr.bf16.mxu1 %v6471_v2  ;;  %s7955_s23 = scalar_lea.vmem %s9580_s25, 256 }
0x10ae   : > { %5576 = vmatprep.subr.bf16.mxu0 %v6469_v41  ;;  %5528 = vmatpush1.bf16.msra.mxu1 %v6470_v16  ;;  %p7956_p12 = scmp.ne.s32.totalorder %s9580_s25, %s7955_s23 }
0x10af   : > { %5529 = vmatprep.subr.bf16.mxu1 %v6475_v57 }
0x10b0   : > { %p7957_p13 = pnand %p7956_p12, %p8112_p5 }
0x10b2   : > { %p7958_p0 = pneg %p7957_p13 }
0x10f0   : > { %v4886_v47 = vpop.f32.mrb[90].mxu1 }
0x10f1   : > { %v7325_v7 = vpop.f32.mrb[91].mxu1 }
0x10f2   : > { %v6477_v7 = vcombine.high %v6443_v61, %v6445_v19 }
0x10f4   : > { %v4891_v21 = vpop.f32.mrb[92].mxu1 }
0x10f5   : > { %v7734_v63 = vpack.i.bf16 %v4891_v21, %v4886_v47  ;;  %v7328_v22 = vpop.f32.mrb[93].mxu1  ;;  %v6472_v47 = vcombine.low %v6439_v38, %v6441_v59  ;;  %v6474_v21 = vcombine.low %v6442_v8, %v6444_v4 }
0x10f7   : > { %7735 = vrot.lane.b32.xlu1 %v7734_v63, %s8024_s12  ;;  %v6476_v63 = vcombine.low %v6443_v61, %v6445_v19  ;;  %5530 = vmatpush1.bf16.msra.mxu1 %v6474_v21 }
0x10f8   : > { %v4896_v11 = vpop.f32.mrb[94].mxu1 }
0x10f9   : > { %5167 = vrot.lane.b32.xlu0 %v4896_v11, %s8024_s12  ;;  %v7331_v18 = vpop.f32.mrb[95].mxu1 }
0x10fc   : > { %v5134_v20 = vpop.f32.mrb[96].mxu1 }
0x10fd   : > { %v7359_v34 = vpop.f32.mrb[97].mxu1 }
0x1100   : > { %v5139_v29 = vpop.f32.mrb[98].mxu1 }
0x1101   : > { %v7739_v35 = vpack.i.bf16 %v5139_v29, %v5134_v20  ;;  %v7362_v48 = vpop.f32.mrb[99].mxu1 }
0x1102   : > { %v6447_v48 = vld [vmem:[%s8134_s10 + $0x5b8] sm:$0xff] }
0x1103   : > { %7740 = vrot.lane.b32.xlu1 %v7739_v35, %s8023_s11  ;;  %v6448_v35 = vld [vmem:[%s8134_s10 + $0x5f0] sm:$0xff] }
0x1104   : > { %v5144_v27 = vpop.f32.mrb[100].mxu1 }
0x1105   : > { %5179 = vrot.lane.b32.xlu0 %v5144_v27, %s8023_s11  ;;  %v7365_v52 = vpop.f32.mrb[101].mxu1 }
0x1106   : > { %v6449_v52 = vld [vmem:[%s8134_s10 + $0x5f8] sm:$0xff] }
0x111a   : > { %v7731_v53 = vpop.permute.xlu1 %7730 }
0x111b   : > { %v7733_v40 = vunpack.i.h.bf16 %v7731_v53  ;;  %v7732_v24 = vunpack.i.l.bf16 %v7731_v53  ;;  %v6480_v53 = vcombine.low %v6447_v48, %v6449_v52 }
0x111d   : > { %v5185_v9 = vsel %vm1425_vm1, %v9466_v45, %v7733_v40  ;;  %v5184_v5 = vsel %vm1425_vm1, %v9464_v51, %v7732_v24  ;;  %v6452_v40 = vld [vmem:[%s8134_s10 + $0x670] sm:$0xff]  ;;  %v6451_v24 = vld [vmem:[%s8134_s10 + $0x638] sm:$0xff] }
0x111e   : > { %v5156_v23 = vpop.permute.xlu1 %5155 }
0x111f   : > { %v5186_v50 = vsel %vm1425_vm1, %v9468_v42, %v5156_v23  ;;  %v6481_v23 = vcombine.high %v6447_v48, %v6449_v52  ;;  %v7766_v48 = vld [vmem:[%s8139_s29 + $0xd8] sm:$0xff]   ;;  %v7768_v52 = vld [vmem:[%s8139_s29 + $0xe0] sm:$0xff]  }
0x1169   : > { %v7736_v12 = vpop.permute.xlu1 %7735 }
0x116a   : > { %v7738_v60 = vunpack.i.h.bf16 %v7736_v12  ;;  %v7737_v49 = vunpack.i.l.bf16 %v7736_v12  ;;  %v6450_v12 = vld [vmem:[%s8134_s10 + $0x630] sm:$0xff] }
0x116b   : > { %v5168_v6 = vpop.permute.xlu0 %5167 }
0x116c   : > { %v5188_v25 = vsel %vm2442_vm3, %v5185_v9, %v7738_v60  ;;  %v5187_v33 = vsel %vm2442_vm3, %v5184_v5, %v7737_v49  ;;  %v5189_v36 = vsel %vm2442_vm3, %v5186_v50, %v5168_v6  ;;  %v6483_v60 = vcombine.high %v6450_v12, %v6452_v40  ;;  %v6453_v49 = vld [vmem:[%s8134_s10 + $0x678] sm:$0xff]  ;;  %v6454_v5 = vld [vmem:[%s8134_s10 + $0x6b0] sm:$0xff] }
0x116d   : > { %v6482_v6 = vcombine.low %v6450_v12, %v6452_v40  ;;  %v6484_v9 = vcombine.low %v6451_v24, %v6453_v49  ;;  %v6456_v50 = vld [vmem:[%s8134_s10 + $0x6f0] sm:$0xff] }
0x116e   : > { %v7772_v12 = vld [vmem:[%s8139_s29 + $0xf0] sm:$0xff]  }
0x116f   : > { %v7773_v40 = vld [vmem:[%s8139_s29 + $0xb0] sm:$0xff]  }
0x1175   : > { %v7741_v30 = vpop.permute.xlu1 %7740 }
0x1176   : > { %v7743_v17 = vunpack.i.h.bf16 %v7741_v30  ;;  %v7742_v10 = vunpack.i.l.bf16 %v7741_v30  ;;  %v6485_v30 = vcombine.high %v6451_v24, %v6453_v49  ;;  %v7774_v24 = vld [vmem:[%s8139_s29 + $0xf8] sm:$0xff]  }
0x1177   : > { %v5180_v45 = vpop.permute.xlu0 %5179 }
0x1178   : > { %v5192_v51 = vsel %vm2446_vm4, %v5189_v36, %v5180_v45  ;;  %v5190_v37 = vsel %vm2446_vm4, %v5187_v33, %v7742_v10  ;;  %v5191_v42 = vsel %vm2446_vm4, %v5188_v25, %v7743_v17  ;;  %v6455_v17 = vld [vmem:[%s8134_s10 + $0x6b8] sm:$0xff]  ;;  %v6487_v10 = vcombine.high %v6454_v5, %v6456_v50 }
0x1179   : > { %v5194_v54 = vpack.c.bf16 %v5192_v51, %v5192_v51  ;;  %v5193_v14 = vpack.c.bf16 %v5191_v42, %v5190_v37  ;;  %v6457_v25 = vld [vmem:[%s8134_s10 + $0x6f8] sm:$0xff]  ;;  %v6486_v33 = vcombine.low %v6454_v5, %v6456_v50  ;;  %v6458_v51 = vld [vmem:[%s8134_s10 + $0x730] sm:$0xff] }
0x117a   : > { %v6488_v36 = vcombine.low %v6455_v17, %v6457_v25  ;;  %v6489_v45 = vcombine.high %v6455_v17, %v6457_v25  ;;  %v6460_v37 = vld [vmem:[%s8134_s10 + $0x770] sm:$0xff]  ;;  %v6459_v42 = vld [vmem:[%s8134_s10 + $0x738] sm:$0xff] }
0x117b   : > { %7382 = vmatprep.mubr.bf16.mxu0 %v5193_v14  ;;  %v6461_v14 = vld [vmem:[%s8134_s10 + $0x778] sm:$0xff]  ;;  %v6490_v44 = vcombine.low %v6458_v51, %v6460_v37 }
0x117c   : > { %7383 = vmatmul.mubr.bf16.vlgmr.msra.gmra.mrb[108].mxu0 %v5194_v54  ;;  %v6491_v54 = vcombine.high %v6458_v51, %v6460_v37  ;;  %v6492_v39 = vcombine.low %v6459_v42, %v6461_v14  ;;  %v6493_v15 = vcombine.high %v6459_v42, %v6461_v14 }
0x117d   : > { %5608 = vmatprep.mubr.bf16.mxu0 %v8020_v56  ;;  %5577 = vmatpush1.bf16.msra.mxu0 %v6468_v43  ;;  %v6465_v43 = vld [vmem:[%s8134_s10 + $0x7f8] sm:$0xff] }
0x117e   : > { %5578 = vmatprep.subr.bf16.mxu0 %v6473_v31  ;;  %v6496_v41 = vcombine.low %v6463_v46, %v6465_v43  ;;  %v6497_v2 = vcombine.high %v6463_v46, %v6465_v43 }
0x1181   : > { %5579 = vmatpush1.bf16.msra.mxu0 %v6472_v47 }
0x1182   : > { %5580 = vmatprep.subr.bf16.mxu0 %v6477_v7 }
0x1185   : > { %5581 = vmatpush1.bf16.msra.mxu0 %v6476_v63 }
0x1186   : > { %5582 = vmatprep.subr.bf16.mxu0 %v6481_v23  ;;  %v7771_v23 = vld [vmem:[%s8139_s29 + $0xa8] sm:$0xff]  }
0x1189   : > { %5583 = vmatpush1.bf16.msra.mxu0 %v6480_v53  ;;  %v7770_v53 = vld [vmem:[%s8139_s29 + $0xe8] sm:$0xff]  }
0x118a   : > { %5584 = vmatprep.subr.bf16.mxu0 %v6485_v30 }
0x118d   : > { %5585 = vmatpush1.bf16.msra.mxu0 %v6484_v9 }
0x118e   : > { %5586 = vmatprep.subr.bf16.mxu0 %v6489_v45 }
0x1191   : > { %5587 = vmatpush1.bf16.msra.mxu0 %v6488_v36 }
0x1192   : > { %5588 = vmatprep.subr.bf16.mxu0 %v6493_v15 }
0x1195   : > { %5589 = vmatpush1.bf16.msra.mxu0 %v6492_v39 }
0x1196   : > { %5590 = vmatprep.subr.bf16.mxu0 %v6497_v2 }
0x1199   : > { %5591 = vmatpush1.bf16.msra.mxu0 %v6496_v41 }
0x124f   : > { %v7384_v22 = vpop.f32.mrb[108].mxu0 }
0x1250   : > { %v5293_v26 = vpop.f32.mrb[109].mxu0  ;;  %v9526_v34 = vadd.f32 %v7384_v22, %v8895_v13 }
0x1251   : > { %v9518_v28 = vadd.f32 %v5293_v26, %v8885_v0  ;;  %v7385_v11 = vpop.f32.mrb[110].mxu0 }
0x1252   : > { %v5296_v32 = vpop.f32.mrb[111].mxu0  ;;  %v5312_v0 = vmul.f32 %v9526_v34, %v9526_v34 }
0x1253   : > { %v9521_v18 = vadd.f32 %v5296_v32, %v8888_v1  ;;  %v5310_v20 = vmul.f32 %v9518_v28, %v9518_v28  ;;  %v6446_v1 = vld [vmem:[%s8134_s10 + $0x5b0] sm:$0xff] }
0x1254   : > { %v6479_v27 = vcombine.high %v6446_v1, %v6448_v35  ;;  %v6478_v13 = vcombine.low %v6446_v1, %v6448_v35  ;;  %v7763_v1 = vld [vmem:[%s8139_s29 + $0x88] sm:$0xff]   ;;  %v7765_v35 = vld [vmem:[%s8139_s29 + $0x90] sm:$0xff]  }
0x1255   : > { %5313 = vadd.xlane.f32.xlu1 %v5310_v20  ;;  %v5311_v29 = vmul.f32 %v9521_v18, %v9521_v18  ;;  %v7760_v20 = vld [vmem:[%s8139_s29 + $0xc0] sm:$0xff]  }
0x1256   : > { %5531 = vmatprep.subr.bf16.mxu1 %v6479_v27  ;;  %v7767_v27 = vld [vmem:[%s8139_s29 + $0x98] sm:$0xff]  }
0x1257   : > { %5315 = vadd.xlane.f32.xlu0 %v5311_v29  ;;  %5532 = vmatpush1.bf16.msra.mxu1 %v6478_v13  ;;  %v7761_v29 = vld [vmem:[%s8139_s29 + $0x80] sm:$0xff]  }
0x1258   : > { %5533 = vmatprep.subr.bf16.mxu1 %v6483_v60  ;;  %v7769_v13 = vld [vmem:[%s8139_s29 + $0xa0] sm:$0xff]   ;;  %v7775_v60 = vld [vmem:[%s8139_s29 + $0xb8] sm:$0xff]  }
0x125b   : > { %5317 = vadd.xlane.f32.xlu0 %v5312_v0  ;;  %5534 = vmatpush1.bf16.msra.mxu1 %v6482_v6  ;;  %v7762_v0 = vld [vmem:[%s8139_s29 + $0xc8] sm:$0xff]  }
0x125c   : > { %5535 = vmatprep.subr.bf16.mxu1 %v6487_v10 }
0x125f   : > { %5536 = vmatpush1.bf16.msra.mxu1 %v6486_v33 }
0x1260   : > { %5537 = vmatprep.subr.bf16.mxu1 %v6491_v54 }
0x1263   : > { %5538 = vmatpush1.bf16.msra.mxu1 %v6490_v44 }
0x1264   : > { %5539 = vmatprep.subr.bf16.mxu1 %v6495_v58 }
0x1267   : > { %5540 = vmatpush1.bf16.msra.mxu1 %v6494_v62 }
0x1268   : > { %6820 = vmatprep.subr.bf16.mxu1 %v7760_v20 }
0x12e2   : > { %v5314_v38 = vpop.xlane.xlu1 %5313 }
0x12e3   : > { %v5319_v59 = vmul.f32 0.0078125, %v5314_v38 }
0x12e4   : > { %v5316_v8 = vpop.xlane.xlu0 %5315 }
0x12e5   : > { %v5322_v31 = vadd.f32 1e-06, %v5319_v59  ;;  %v5320_v4 = vmul.f32 0.0078125, %v5316_v8 }
0x12e7   : > { %7922 = vrsqrt.f32 %v5322_v31  ;;  %v5323_v61 = vadd.f32 1e-06, %v5320_v4 }
0x12e8   : > { %v5318_v19 = vpop.xlane.xlu0 %5317 }
0x12e9   : > { %7924 = vrsqrt.f32 %v5323_v61  ;;  %v5321_v16 = vmul.f32 0.0078125, %v5318_v19 }
0x12eb   : > { %v5324_v47 = vadd.f32 1e-06, %v5321_v16 }
0x12ed   : > { %7926 = vrsqrt.f32 %v5324_v47 }
0x12f1   : > { %v7923_v57 = vpop.eup %7922 }
0x12f2   : > { %v5328_v21 = vmul.f32 %v7923_v57, %v9518_v28 }
0x12f3   : > { %v7925_v7 = vpop.eup %7924 }
0x12f4   : > { %v5329_v63 = vmul.f32 %v7925_v7, %v9521_v18 }
0x12f6   : > { %v5331_v22 = vpack.c.bf16 %v5329_v63, %v5328_v21 }
0x12f7   : > { %v7927_v26 = vpop.eup %7926 }
0x12f8   : > { %5558 = vmatmul.mubr.bf16.vlgmr.msra.gmra.mrb[104].mxu1 %v5331_v22  ;;  %5609 = vmatmul.mubr.bf16.vlgmr.msra.gmra.mrb[112].mxu0 %v5331_v22  ;;  %v5330_v11 = vmul.f32 %v7927_v26, %v9526_v34 }
0x12f9   : > { %5567 = vmatprep.mubr.bf16.mxu1 %v8020_v56  ;;  %5618 = vmatprep.mubr.bf16.mxu0 %v8020_v56  ;;  %v7764_v56 = vld [vmem:[%s8139_s29 + $0xd0] sm:$0xff]   ;;  %s6559_s29 = sshll.u32 %s8095_s9, 8  ;;  %s8026_s9 = smov [#allocation3]  }
0x12fa   : > { %v5332_v32 = vpack.c.bf16 %v5330_v11, %v5330_v11  ;;  %6821 = vmatpush3.bf16.msra.mxu1 %v7761_v29  ;;  %s9577_s12 = scalar_lea.hbm %s9636_s8, %s6559_s29  ;;  %s7959_s21 = sshll.u32 %s8026_s9, 4  ;;  %s7960_s21 = int_to_ptr.vmem [resolvable:$false] %s7959_s21 }
0x12fb   : > { %6822 = vmatprep.subr.bf16.mxu1 %v7762_v0  ;;  %s7961_s24 = scalar_lea.vmem %s7960_s21, 512  ;;  %p7962_p1 = scmp.lt.s32.totalorder %s9580_s25, %s7960_s21 }
0x12fc   : > { %p7963_p2 = scmp.lt.s32.totalorder %s7961_s24, %s7955_s23 }
0x12fe   : > { %6823 = vmatpush3.bf16.msra.mxu1 %v7763_v1  ;;  %p7964_p3 = por %p7963_p2, %p7962_p1 }
0x12ff   : > { %6824 = vmatprep.subr.bf16.mxu1 %v7764_v56 }
0x1300   : > { %5568 = vmatmul.mubr.bf16.gmra.mrb[108].mxu1 %v5332_v32  ;;  %5619 = vmatmul.mubr.bf16.gmra.mrb[116].mxu0 %v5332_v32  ;;  %p7965_p4 = pnand %p7964_p3, %p7958_p0 }
0x1302   : > { %6825 = vmatpush3.bf16.msra.mxu1 %v7765_v35 }
0x1303   : > { %6826 = vmatprep.subr.bf16.mxu1 %v7766_v48 }
0x1306   : > { %6827 = vmatpush3.bf16.msra.mxu1 %v7767_v27 }
0x1307   : > { %6828 = vmatprep.subr.bf16.mxu1 %v7768_v52 }
0x130a   : > { %6829 = vmatpush3.bf16.msra.mxu1 %v7769_v13 }
0x130b   : > { %6830 = vmatprep.subr.bf16.mxu1 %v7770_v53 }
0x130e   : > { %6831 = vmatpush3.bf16.msra.mxu1 %v7771_v23 }
0x130f   : > { %6832 = vmatprep.subr.bf16.mxu1 %v7772_v12 }
0x1312   : > { %6833 = vmatpush3.bf16.msra.mxu1 %v7773_v40 }
0x1313   : > { %6834 = vmatprep.subr.bf16.mxu1 %v7774_v24 }
0x1316   : > { %6835 = vmatpush3.bf16.msra.mxu1 %v7775_v60 }
0x13cb   : > { %v5559_v49 = vpop.f32.mrb[104].mxu1  ;;  %v5610_v6 = vpop.f32.mrb[112].mxu0 }
0x13cc   : > { %v6498_v9 = vmul.f32 -1.442695, %v5559_v49  ;;  %v5561_v30 = vpop.f32.mrb[105].mxu1  ;;  %v5612_v5 = vpop.f32.mrb[113].mxu0 }
0x13cd   : > { %v6499_v50 = vmul.f32 -1.442695, %v5561_v30  ;;  %v5563_v17 = vpop.f32.mrb[106].mxu1  ;;  %v5614_v10 = vpop.f32.mrb[114].mxu0 }
0x13ce   : > { %7928 = vpow2.f32 %v6498_v9  ;;  %v6500_v25 = vmul.f32 -1.442695, %v5563_v17  ;;  %v5565_v33 = vpop.f32.mrb[107].mxu1  ;;  %v5616_v36 = vpop.f32.mrb[115].mxu0 }
0x13cf   : > { %7930 = vpow2.f32 %v6499_v50  ;;  %v6501_v45 = vmul.f32 -1.442695, %v5565_v33 }
0x13d0   : > { %7932 = vpow2.f32 %v6500_v25 }
0x13d1   : > { %7934 = vpow2.f32 %v6501_v45 }
0x13d3   : > { %v5569_v51 = vpop.f32.mrb[108].mxu1  ;;  %v5620_v37 = vpop.f32.mrb[116].mxu0 }
0x13d4   : > { %v6502_v42 = vmul.f32 -1.442695, %v5569_v51  ;;  %v5571_v54 = vpop.f32.mrb[109].mxu1  ;;  %v5622_v14 = vpop.f32.mrb[117].mxu0 }
0x13d5   : > { %v6503_v44 = vmul.f32 -1.442695, %v5571_v54  ;;  %v5573_v39 = vpop.f32.mrb[110].mxu1  ;;  %v5624_v15 = vpop.f32.mrb[118].mxu0 }
0x13d6   : > { %7936 = vpow2.f32 %v6502_v42  ;;  %v5574_v3 = vpop.f32.mrb[111].mxu1  ;;  %v5625_v55 = vpop.f32.mrb[119].mxu0 }
0x13d7   : > { %7938 = vpow2.f32 %v6503_v44 }
0x13d8   : > { %v7929_v46 = vpop.eup %7928 }
0x13d9   : > { %v7931_v62 = vpop.eup %7930  ;;  %v5645_v58 = vadd.f32 1.0, %v7929_v46 }
0x13da   : > { %v7933_v43 = vpop.eup %7932  ;;  %v5646_v41 = vadd.f32 1.0, %v7931_v62 }
0x13db   : > { %v7935_v2 = vpop.eup %7934  ;;  %7940 = vrcp.f32 %v5645_v58  ;;  %v5647_v38 = vadd.f32 1.0, %v7933_v43 }
0x13dc   : > { %7942 = vrcp.f32 %v5646_v41  ;;  %v5648_v59 = vadd.f32 1.0, %v7935_v2 }
0x13dd   : > { %7944 = vrcp.f32 %v5647_v38 }
0x13de   : > { %7946 = vrcp.f32 %v5648_v59 }
0x13e0   : > { %v7937_v8 = vpop.eup %7936 }
0x13e1   : > { %v7939_v31 = vpop.eup %7938  ;;  %v5649_v4 = vadd.f32 1.0, %v7937_v8 }
0x13e2   : > { %v5650_v61 = vadd.f32 1.0, %v7939_v31 }
0x13e3   : > { %7948 = vrcp.f32 %v5649_v4 }
0x13e4   : > { %7950 = vrcp.f32 %v5650_v61 }
0x13e5   : > { %v7941_v19 = vpop.eup %7940 }
0x13e6   : > { %v7943_v16 = vpop.eup %7942  ;;  %v5663_v47 = vmul.f32 %v7941_v19, %v5559_v49 }
0x13e7   : > { %v7945_v57 = vpop.eup %7944  ;;  %v5664_v7 = vmul.f32 %v7943_v16, %v5561_v30 }
0x13e8   : > { %v7947_v21 = vpop.eup %7946  ;;  %v5669_v63 = vmul.f32 %v5663_v47, %v5610_v6  ;;  %v5665_v22 = vmul.f32 %v7945_v57, %v5563_v17 }
0x13e9   : > { %v5670_v26 = vmul.f32 %v5664_v7, %v5612_v5  ;;  %v5666_v11 = vmul.f32 %v7947_v21, %v5565_v33 }
0x13ea   : > { %v5671_v32 = vmul.f32 %v5665_v22, %v5614_v10 }
0x13eb   : > { %v5672_v20 = vmul.f32 %v5666_v11, %v5616_v36 }
0x13ec   : > { %v5675_v29 = vpack.c.bf16 %v5671_v32, %v5669_v63 }
0x13ed   : > { %v7949_v0 = vpop.eup %7948  ;;  %v5676_v1 = vpack.c.bf16 %v5672_v20, %v5670_v26 }
0x13ee   : > { %v7951_v56 = vpop.eup %7950  ;;  %v5667_v35 = vmul.f32 %v7949_v0, %v5569_v51 }
0x13ef   : > { %v5668_v48 = vmul.f32 %v7951_v56, %v5571_v54  ;;  %5840 = vmatprep.mubr.bf16.mxu1 %v5676_v1 }
0x13f0   : > { %v5673_v27 = vmul.f32 %v5667_v35, %v5620_v37  ;;  %5841 = vmatmul.mubr.bf16.vlgmr.msra.gmra.mrb[112].mxu1 %v5675_v29 }
0x13f1   : > { %v5674_v52 = vmul.f32 %v5668_v48, %v5622_v14 }
0x13f2   : > { %v5677_v53 = vpack.c.bf16 %v5673_v27, %v5673_v27 }
0x13f3   : > { %v5678_v13 = vpack.c.bf16 %v5674_v52, %v5674_v52 }
0x13f5   : > { %5848 = vmatprep.mubr.bf16.mxu1 %v5678_v13 }
0x13f8   : > { %5849 = vmatmul.mubr.bf16.gmra.mrb[116].mxu1 %v5677_v53 }
0x13f9   : > { %7968 = shalt.err (!%p7965_p4)
}
0x13fa   : > { %s7969_s17 = scalar_lea.hbm %s9577_s12, 256  ;;  %s7973_s19 = scalar_lea.hbm %s9636_s8, 512 }
0x13fb   : > { %p7970_p7 = scmp.ne.s32.totalorder %s9577_s12, %s7969_s17  ;;  %p7974_p10 = scmp.lt.u32.totalorder %s9577_s12, %s9636_s8 }
0x13fc   : > { %p7975_p11 = scmp.lt.u32.totalorder %s7973_s19, %s7969_s17  ;;  %p7977_p13 = scmp.lt.u32.totalorder %s7969_s17, %s9577_s12 }
0x13fd   : > { %p7971_p8 = pnand %p7970_p7, %p8112_p5 }
0x13fe   : > { %p7976_p12 = por %p7975_p11, %p7974_p10 }
0x13ff   : > { %p7972_p9 = pneg %p7971_p8 }
0x1400   : > { %p7978_p0 = por %p7977_p13, %p7976_p12 }
0x1402   : > { %p7979_p1 = pnand %p7978_p0, %p7972_p9 }
0x1404   : > { %7982 = shalt.err (!%p7979_p1)
}
0x1405   : > { %s8027_s29 = smov 128   ;;  %s8028_s10 = smov 8  }
0x1406   : > { %7546 = dma.vmem_to_hbm [thread:$0]  (%p8112_p5), %s9580_s25, 256, %s9577_s12, %s9584_s20, %s8027_s29, %s8027_s29, %s8028_s10  }
0x14c3   : > { %v6836_v23 = vpop.f32.mrb[112].mxu1 }
0x14c4   : > { %v6837_v12 = vpop.f32.mrb[113].mxu1 }
0x14c5   : > { %v6838_v40 = vadd.f32 %v6837_v12, %v6836_v23  ;;  %v6839_v24 = vpop.f32.mrb[114].mxu1 }
0x14c6   : > { %v6840_v60 = vpop.f32.mrb[115].mxu1 }
0x14c7   : > { %v5856_v49 = vadd.f32 %v6838_v40, %v9518_v28  ;;  %v6841_v6 = vadd.f32 %v6840_v60, %v6839_v24 }
0x14c9   : > { %5859 = vst [vmem:[#allocation2] sm:$0xff] %v5856_v49  ;;  %v5857_v9 = vadd.f32 %v6841_v6, %v9521_v18 }
0x14cb   : > { %5860 = vst [vmem:[#allocation2 + $0x8] sm:$0xff] %v5857_v9  ;;  %v6842_v30 = vpop.f32.mrb[116].mxu1 }
0x14cc   : > { %v6843_v5 = vpop.f32.mrb[117].mxu1 }
0x14cd   : > { %v6844_v50 = vadd.f32 %v6843_v5, %v6842_v30  ;;  %v6845_v17 = vpop.f32.mrb[118].mxu1 }
0x14ce   : > { %v6846_v10 = vpop.f32.mrb[119].mxu1 }
0x14cf   : > { %v5858_v25 = vadd.f32 %v6844_v50, %v9526_v34 }
0x14d1   : > { %5861 = vst [vmem:[#allocation2 + $0x10] sm:$0xff] %v5858_v25 }
0x14d2 PF: > { %p7552_p5 = scmp.ge.s32.totalorder %s8017_s30, 2  ;;  %s5891_s15 = sand.u32 1, %s8005_s27  }
0x14d3   : > { %s5892_s11 = scalar_lea.sflag [#allocation4], %s5891_s15 }
0x14d4   : > { %p7549_p2 = pnand %p7552_p5, %p8116_p6 }
0x14d6   : > { %8000 = dma.done.wait (!%p7549_p2), %s5892_s11, 256  }
0x14d7   : > { %8002 = vsyncadd (!%p7549_p2), %s5892_s11, 4294967040  ;;  %s9649_s30 = sld [smem:[#allocation7_spill]]  ;;  %s9650_s12 = sld [smem:[#allocation6_spill]] }
0x14d8   : > { %s9651_s29 = sld [smem:[#allocation8_spill]]  ;;  %s9652_s27 = smov %s8009_s28 }
0x14dd   : > { %p18_p3 = scmp.ge.s32.totalorder %s9649_s30, 4   ;;  %s9653_s28 = smov %s9650_s12 }
0x14df   :  { %20 = sbr.rel (!%p18_p3) target bundleno = 3 (0x3), region = 101 }
0x14e6   :  { %5897 = vsyncpa [#allocation4], 1 }
0x14e7   :  { %5899 = vsyncpa [#allocation4 + $0x1], 1 }

</bundles_post_ra>
